<compile_context>
chip_gen: v5e
topology: v5e:2x2
jax: 0.10.0
libtpu: 0.0.40
codegen_flags: <defaults>
</compile_context>

<pallas_src>
import jax
import jax.numpy as jnp
from jax.experimental import pallas as pl
from jax.experimental.pallas import tpu as pltpu

HIDDEN = 100
HIDDEN_PAD = 128
TM = 512


def _round_up(v, m):
    return (v + m - 1) // m * m


def _pick_tk(n_pad):
    for t in (2048, 1024, 512):
        if n_pad % t == 0:
            return t
    return 512


def _vmem_limit_bytes(tm, tk, g_pad):
    # Double-buffered pipeline windows + scratch + headroom for the in-kernel
    # int8->bf16 upcast temporaries.  Kept explicit (per review) so it stays
    # honest on v7x's 64 MiB per-TC VMEM as well as v5e/v6e's 128 MiB.
    buf = (2 * tm * tk * 1 +            # A+I tile, int8
           2 * tk * HIDDEN_PAD * 2 +    # XW1 k-block, bf16
           2 * tm * HIDDEN_PAD * 2 +    # h1 out, bf16
           2 * g_pad * tk * 2 +         # pa partial out, bf16
           2 * g_pad * tm * 2 +         # pooling one-hot, bf16
           2 * (tm + HIDDEN_PAD) * 4 +  # dinv rows + b1
           tm * HIDDEN_PAD * 4 +        # f32 accumulator scratch
           2 * tm * tk * 2)             # bf16 upcast temporaries
    return min(64 * 1024 * 1024, buf + 8 * 1024 * 1024)


def _gcn_stream_kernel(a_ref, dinvr_ref, xw1_ref, b1_ref, oh_ref,
                       h1_ref, pa_ref, acc_ref):
    k = pl.program_id(1)

    @pl.when(k == 0)
    def _():
        acc_ref[...] = jnp.zeros_like(acc_ref)

    # int8 -> bf16 upcast of the raw A+I tile.  Normalization is folded out of
    # the loop, so this is the only non-MXU work per step and hides under DMA.
    a_bf = a_ref[...].astype(jnp.bfloat16)

    # Layer-1 aggregation: acc += A_tile @ (D^{-1/2} X W1)[k-block]  (MXU, f32 acc).
    acc_ref[...] += jnp.dot(a_bf, xw1_ref[...],
                            preferred_element_type=jnp.float32)

    # Partial pooled adjacency for this (row-tile, col-tile):
    #   (g_pad, tm) @ (tm, tk); LHS one-hot already carries D^{-1/2}.
    pa_ref[...] = jnp.dot(oh_ref[...], a_bf,
                          preferred_element_type=jnp.float32).astype(pa_ref.dtype)

    @pl.when(k == pl.num_programs(1) - 1)
    def _():
        # Remaining row scale D^{-1/2} applied once per row-tile (tm x 128 mul).
        h1_ref[...] = jnp.tanh(dinvr_ref[...] * acc_ref[...] + b1_ref[...]
                               ).astype(h1_ref.dtype)


def build_dense_graph(edge_index, num_nodes, n_pad):
    """Dense unnormalized A+I (int8) plus D^{-1/2} (f32, zero on padding).

    If the graph topology is reused across forwards, compute this once and pass
    it to gcn_forward via `dense_graph=` — rebuilding the dense N^2 matrix every
    call writes roughly as many HBM bytes as the kernel reads.
    """
    src = edge_index[0].astype(jnp.int32)
    dst = edge_index[1].astype(jnp.int32)
    # PyG convention: aggregation at dst, so dense A[dst, src] = 1.
    adj = jnp.zeros((n_pad, n_pad), jnp.int8).at[dst, src].add(jnp.int8(1))
    idx = jnp.arange(num_nodes, dtype=jnp.int32)
    adj = adj.at[idx, idx].add(jnp.int8(1))
    # deg[i] = 1 + in-degree(i)  (row sums of A+I; matches PyG gcn_norm).
    deg = jnp.zeros((num_nodes,), jnp.float32).at[dst].add(1.0) + 1.0
    dinv = jnp.pad(jax.lax.rsqrt(deg), (0, n_pad - num_nodes))
    return adj, dinv


def gcn_forward(x, edge_index, batch, params, num_graphs, dense_graph=None):
    """x: (N, F) float32; edge_index: (2, E) int32; batch: (N,) int32."""
    n, _ = x.shape
    n_pad = _round_up(max(n, TM), TM)
    tm = TM
    tk = _pick_tk(n_pad)
    g_pad = _round_up(max(num_graphs, 16), 16)   # bf16 LHS sublane packing = 16
    n_i = n_pad // tm
    n_k = n_pad // tk

    if dense_graph is None:
        dense_graph = build_dense_graph(edge_index, n, n_pad)
    adj, dinv = dense_graph
    dinv_r = dinv[:, None]                                  # (n_pad, 1) f32

    # Sum-pool one-hot with the D^{-1/2} column scale pre-applied in f32; mean
    # normalization is applied in the epilogue.
    oh = (batch[None, :] == jnp.arange(g_pad, dtype=batch.dtype)[:, None]
          ).astype(jnp.float32)                             # (g_pad, n)
    counts = jnp.maximum(oh.sum(axis=1, keepdims=True), 1.0)
    onehot = jnp.pad(oh * dinv[None, :n],
                     ((0, 0), (0, n_pad - n))).astype(jnp.bfloat16)

    # Pad hidden 100 -> 128 (zero padding is exact through the network).
    w1 = jnp.pad(params["w1"], ((0, 0), (0, HIDDEN_PAD - HIDDEN)))
    b1 = jnp.pad(params["b1"], ((0, 0), (0, HIDDEN_PAD - HIDDEN)))
    w2 = jnp.pad(params["w2"], ((0, HIDDEN_PAD - HIDDEN), (0, HIDDEN_PAD - HIDDEN)))
    b2 = jnp.pad(params["b2"], ((0, 0), (0, HIDDEN_PAD - HIDDEN)))
    wl = jnp.pad(params["wl"], ((0, HIDDEN_PAD - HIDDEN), (0, 0)))
    bl = params["bl"]

    # X@W1 with the column half of the normalization folded in (f32 scaling,
    # then a single bf16 cast for the MXU).
    x_pad = jnp.pad(x, ((0, n_pad - n), (0, 0)))
    xw1 = (dinv[:, None] * jnp.dot(x_pad, w1)).astype(jnp.bfloat16)  # (n_pad, 128)

    grid_spec = pltpu.PrefetchScalarGridSpec(
        num_scalar_prefetch=0,
        grid=(n_i, n_k),
        in_specs=[
            pl.BlockSpec((tm, tk), lambda i, k: (i, k)),             # A + I (int8)
            pl.BlockSpec((tm, 1), lambda i, k: (i, 0)),              # D^{-1/2} rows
            pl.BlockSpec((tk, HIDDEN_PAD), lambda i, k: (k, 0)),     # scaled XW1 (k-blocked)
            pl.BlockSpec((1, HIDDEN_PAD), lambda i, k: (0, 0)),      # b1
            pl.BlockSpec((g_pad, tm), lambda i, k: (0, i)),          # scaled one-hot
        ],
        out_specs=[
            pl.BlockSpec((tm, HIDDEN_PAD), lambda i, k: (i, 0)),     # h1 (bf16)
            pl.BlockSpec((g_pad, tk), lambda i, k: (i, k)),          # onehot@A partials
        ],
        scratch_shapes=[pltpu.VMEM((tm, HIDDEN_PAD), jnp.float32)],
    )

    h1, pa_part = pl.pallas_call(
        _gcn_stream_kernel,
        out_shape=(
            jax.ShapeDtypeStruct((n_pad, HIDDEN_PAD), jnp.bfloat16),
            jax.ShapeDtypeStruct((n_i * g_pad, n_pad), jnp.bfloat16),
        ),
        grid_spec=grid_spec,
        compiler_params=pltpu.CompilerParams(
            dimension_semantics=("parallel", "arbitrary"),
            vmem_limit_bytes=_vmem_limit_bytes(tm, tk, g_pad),
        ),
    )(adj, dinv_r, xw1, b1, onehot)

    # --- tiny lane-1 epilogue kept in XLA ------------------------------------
    # Note: padded h1 rows equal tanh(b1) != 0 (dinv and acc are 0 there), but
    # they never contribute: pa's padded columns are exactly 0 (zero one-hot
    # and zero adjacency columns) and the dinv column scale below is 0 as well.
    pa = pa_part.astype(jnp.float32).reshape(n_i, g_pad, n_pad).sum(axis=0) / counts
    w2l = jnp.dot(w2, wl)                                    # (128, 1)
    y = jnp.dot(h1.astype(jnp.float32), w2l)                 # (n_pad, 1)
    out = jnp.dot(pa, dinv[:, None] * y) + (jnp.dot(b2, wl) + bl)   # (g_pad, 1)
    return out[:num_graphs]


def gcn_reference(x, edge_index, batch, params, num_graphs):
    """Pure-JAX f32 reference with the same dense-GCN semantics."""
    n = x.shape[0]
    src, dst = edge_index[0], edge_index[1]
    adj = jnp.zeros((n, n), jnp.float32).at[dst, src].add(1.0) + jnp.eye(n)
    deg = adj.sum(axis=1)
    dinv = jax.lax.rsqrt(deg)
    a_hat = dinv[:, None] * adj * dinv[None, :]
    h1 = jnp.tanh(a_hat @ (x @ params["w1"]) + params["b1"])
    h2 = a_hat @ (h1 @ params["w2"]) + params["b2"]
    oh = (batch[None, :] == jnp.arange(num_graphs)[:, None]).astype(jnp.float32)
    pool = oh / jnp.maximum(oh.sum(axis=1, keepdims=True), 1.0)
    return (pool @ h2) @ params["wl"] + params["bl"]


def init_params(key, data_size, hidden=HIDDEN, num_classes=1):
    ks = jax.random.split(key, 6)
    w1 = jax.random.normal(ks[0], (data_size, hidden), jnp.float32) * 0.1
    b1 = jax.random.normal(ks[1], (1, hidden), jnp.float32) * 0.01
    w2 = jax.random.normal(ks[2], (hidden, hidden), jnp.float32) * 0.1
    b2 = jax.random.normal(ks[3], (1, hidden), jnp.float32) * 0.01
    wl = jax.random.normal(ks[4], (hidden, num_classes), jnp.float32) * 0.1
    bl = jax.random.normal(ks[5], (1, num_classes), jnp.float32) * 0.01
    return {"w1": w1, "b1": b1, "w2": w2, "b2": b2, "wl": wl, "bl": bl}


if __name__ == "__main__":
    key = jax.random.PRNGKey(0)
    k_x, k_p = jax.random.split(key)

    # Small synthetic graph batch: 2 graphs of 8 nodes each (N=16), data_size=8.
    N, F, G = 16, 8, 2
    x = jax.random.normal(k_x, (N, F), jnp.float32)
    batch = jnp.concatenate([jnp.zeros(8, jnp.int32), jnp.ones(8, jnp.int32)])

    # Directed ring edges within each graph (no cross-graph edges).
    def ring_edges(offset, n):
        s = jnp.arange(n, dtype=jnp.int32) + offset
        d = (jnp.arange(n, dtype=jnp.int32) + 1) % n + offset
        return jnp.stack([s, d])

    edge_index = jnp.concatenate([ring_edges(0, 8), ring_edges(8, 8)], axis=1)

    params = init_params(k_p, data_size=F, hidden=HIDDEN, num_classes=1)

    fwd = jax.jit(gcn_forward, static_argnames=("num_graphs",))
    out = fwd(x, edge_index, batch, params, num_graphs=G)
    jax.block_until_ready(out)

    ref = gcn_reference(x, edge_index, batch, params, G)
    assert out.shape == (G, 1) and out.dtype == jnp.float32
    assert bool(jnp.all(jnp.isfinite(out)))
    # Normalization now stays in f32; remaining drift is bf16 MXU inputs and
    # bf16 h1/pa writebacks -> tighter tolerance than the previous version.
    assert bool(jnp.allclose(out, ref, rtol=5e-2, atol=5e-2)), (out, ref)
    print("KERNEL_OK")
</pallas_src>

<mosaic_0001>
module attributes {stable_mosaic.version = 11 : i64} {
  func.func @_gcn_stream_kernel(%arg0: i32, %arg1: i32, %arg2: memref<512x512xi8, #tpu.memory_space<vmem>>, %arg3: memref<512x1xf32, #tpu.memory_space<vmem>>, %arg4: memref<512x128xbf16, #tpu.memory_space<vmem>>, %arg5: memref<1x128xf32, #tpu.memory_space<vmem>>, %arg6: memref<16x512xbf16, #tpu.memory_space<vmem>>, %arg7: memref<512x128xbf16, #tpu.memory_space<vmem>>, %arg8: memref<16x512xbf16, #tpu.memory_space<vmem>>, %arg9: memref<512x128xf32, #tpu.memory_space<vmem>>) attributes {dimension_semantics = [#tpu.dimension_semantics<parallel>, #tpu.dimension_semantics<arbitrary>], iteration_bounds = array<i64: 1, 1>, scalar_prefetch = 0 : i64, scratch_operands = 1 : i64, tpu.core_type = #tpu.core_type<tc>, window_params = [{transform_indices = @transform_0, window_bounds = array<i64: 512, 512>}, {transform_indices = @transform_1, window_bounds = array<i64: 512, 1>}, {transform_indices = @transform_2, window_bounds = array<i64: 512, 128>}, {pipeline_mode = #tpu.pipeline_mode<synchronous>, transform_indices = @transform_3, window_bounds = array<i64: 1, 128>}, {transform_indices = @transform_4, window_bounds = array<i64: 16, 512>}, {transform_indices = @transform_5, window_bounds = array<i64: 512, 128>}, {transform_indices = @transform_6, window_bounds = array<i64: 16, 512>}]} {
    %c0_i32 = arith.constant 0 : i32
    %0 = arith.cmpi eq, %arg1, %c0_i32 : i32
    %1 = arith.extui %0 : i1 to i32
    %c0_i32_0 = arith.constant 0 : i32
    %2 = arith.cmpi ne, %1, %c0_i32_0 : i32
    scf.if %2 {
      %cst_15 = arith.constant 0.000000e+00 : f32
      %17 = vector.broadcast %cst_15 : f32 to vector<512x128xf32>
      %c0_16 = arith.constant 0 : index
      %c0_17 = arith.constant 0 : index
      %18 = vector.load %arg9[%c0_16, %c0_17] : memref<512x128xf32, #tpu.memory_space<vmem>>, vector<512x128xf32>
      tpu.vector_store %arg9[%c0_16, %c0_17], %17 {strides = array<i32>} : memref<512x128xf32, #tpu.memory_space<vmem>>, vector<512x128xf32>,
    } else {
    }
    %c0 = arith.constant 0 : index
    %c0_1 = arith.constant 0 : index
    %3 = vector.load %arg2[%c0, %c0_1] : memref<512x512xi8, #tpu.memory_space<vmem>>, vector<512x512xi8>
    %4 = arith.sitofp %3 : vector<512x512xi8> to vector<512x512xbf16>
    %c0_2 = arith.constant 0 : index
    %c0_3 = arith.constant 0 : index
    %5 = vector.load %arg9[%c0_2, %c0_3] : memref<512x128xf32, #tpu.memory_space<vmem>>, vector<512x128xf32>
    %c0_4 = arith.constant 0 : index
    %c0_5 = arith.constant 0 : index
    %6 = vector.load %arg4[%c0_4, %c0_5] : memref<512x128xbf16, #tpu.memory_space<vmem>>, vector<512x128xbf16>
    %cst = arith.constant dense<0.000000e+00> : vector<512x128xf32>
    %7 = tpu.matmul %4, %6, %cst {dimension_numbers = #tpu.dot_dimension_numbers<[1], [0], [0], [1], [0, 0, 1, 1], [], []>} : vector<512x512xbf16>, vector<512x128xbf16>, vector<512x128xf32> -> vector<512x128xf32>
    %8 = arith.addf %5, %7 : vector<512x128xf32>
    %c0_6 = arith.constant 0 : index
    %c0_7 = arith.constant 0 : index
    %9 = vector.load %arg9[%c0_6, %c0_7] : memref<512x128xf32, #tpu.memory_space<vmem>>, vector<512x128xf32>
    tpu.vector_store %arg9[%c0_6, %c0_7], %8 {strides = array<i32>} : memref<512x128xf32, #tpu.memory_space<vmem>>, vector<512x128xf32>,
    %c0_8 = arith.constant 0 : index
    %c0_9 = arith.constant 0 : index
    %10 = vector.load %arg6[%c0_8, %c0_9] : memref<16x512xbf16, #tpu.memory_space<vmem>>, vector<16x512xbf16>
    %cst_10 = arith.constant dense<0.000000e+00> : vector<16x512xf32>
    %11 = tpu.matmul %10, %4, %cst_10 {dimension_numbers = #tpu.dot_dimension_numbers<[1], [0], [0], [1], [0, 0, 1, 1], [], []>} : vector<16x512xbf16>, vector<512x512xbf16>, vector<16x512xf32> -> vector<16x512xf32>
    %12 = arith.truncf %11 : vector<16x512xf32> to vector<16x512xbf16>
    %c0_11 = arith.constant 0 : index
    %c0_12 = arith.constant 0 : index
    %13 = vector.load %arg8[%c0_11, %c0_12] : memref<16x512xbf16, #tpu.memory_space<vmem>>, vector<16x512xbf16>
    tpu.vector_store %arg8[%c0_11, %c0_12], %12 {strides = array<i32>} : memref<16x512xbf16, #tpu.memory_space<vmem>>, vector<16x512xbf16>,
    %c0_i32_13 = arith.constant 0 : i32
    %14 = arith.cmpi eq, %arg1, %c0_i32_13 : i32
    %15 = arith.extui %14 : i1 to i32
    %c0_i32_14 = arith.constant 0 : i32
    %16 = arith.cmpi ne, %15, %c0_i32_14 : i32
    scf.if %16 {
      %c0_15 = arith.constant 0 : index
      %c0_16 = arith.constant 0 : index
      %17 = vector.load %arg3[%c0_15, %c0_16] : memref<512x1xf32, #tpu.memory_space<vmem>>, vector<512x1xf32>
      %c0_17 = arith.constant 0 : index
      %c0_18 = arith.constant 0 : index
      %18 = vector.load %arg9[%c0_17, %c0_18] : memref<512x128xf32, #tpu.memory_space<vmem>>, vector<512x128xf32>
      %19 = vector.broadcast %17 : vector<512x1xf32> to vector<512x128xf32>
      %20 = arith.mulf %19, %18 : vector<512x128xf32>
      %c0_19 = arith.constant 0 : index
      %c0_20 = arith.constant 0 : index
      %21 = vector.load %arg5[%c0_19, %c0_20] : memref<1x128xf32, #tpu.memory_space<vmem>>, vector<1x128xf32>
      %22 = vector.broadcast %21 : vector<1x128xf32> to vector<512x128xf32>
      %23 = arith.addf %20, %22 : vector<512x128xf32>
      %24 = math.tanh %23 : vector<512x128xf32>
      %25 = arith.truncf %24 : vector<512x128xf32> to vector<512x128xbf16>
      %c0_21 = arith.constant 0 : index
      %c0_22 = arith.constant 0 : index
      %26 = vector.load %arg7[%c0_21, %c0_22] : memref<512x128xbf16, #tpu.memory_space<vmem>>, vector<512x128xbf16>
      tpu.vector_store %arg7[%c0_21, %c0_22], %25 {strides = array<i32>} : memref<512x128xbf16, #tpu.memory_space<vmem>>, vector<512x128xbf16>,
    } else {
    }
    return
  }
  func.func @transform_0(%arg0: i32, %arg1: i32) -> (i32, i32) {
    %c0_i32 = arith.constant 0 : i32
    return %arg0, %arg1 : i32, i32
  }
  func.func @transform_1(%arg0: i32, %arg1: i32) -> (i32, i32) {
    %c0_i32 = arith.constant 0 : i32
    %c0_i32_0 = arith.constant 0 : i32
    return %arg0, %c0_i32 : i32, i32
  }
  func.func @transform_2(%arg0: i32, %arg1: i32) -> (i32, i32) {
    %c0_i32 = arith.constant 0 : i32
    %c0_i32_0 = arith.constant 0 : i32
    return %arg1, %c0_i32 : i32, i32
  }
  func.func @transform_3(%arg0: i32, %arg1: i32) -> (i32, i32) {
    %c0_i32 = arith.constant 0 : i32
    %c0_i32_0 = arith.constant 0 : i32
    %c0_i32_1 = arith.constant 0 : i32
    return %c0_i32, %c0_i32_0 : i32, i32
  }
  func.func @transform_4(%arg0: i32, %arg1: i32) -> (i32, i32) {
    %c0_i32 = arith.constant 0 : i32
    %c0_i32_0 = arith.constant 0 : i32
    return %c0_i32, %arg0 : i32, i32
  }
  func.func @transform_5(%arg0: i32, %arg1: i32) -> (i32, i32) {
    %c0_i32 = arith.constant 0 : i32
    %c0_i32_0 = arith.constant 0 : i32
    return %arg0, %c0_i32 : i32, i32
  }
  func.func @transform_6(%arg0: i32, %arg1: i32) -> (i32, i32) {
    %c0_i32 = arith.constant 0 : i32
    return %arg0, %arg1 : i32, i32
  }
}

</mosaic_0001>

<bundles_post_ra>
// kernel: gcn_forward.1
= control target key start
LH: loop header
LB: loop body
LE: loop exit
PB: predicated region body
PF: predicated region fallthrough
CT: control target
= control target key end

     0   :  { %v3481_v62 = vmov 0   ;;  %s4954_s2 = inlined_call_operand.vmem [shape: bf16[512,128], index: 2, kind: input, shape index: {}]   ;;  %s4955_s0 = inlined_call_operand.vmem [shape: s8[512,512], index: 0, kind: input, shape index: {}]   ;;  %s4956_s1 = inlined_call_operand.vmem [shape: f32[512,1], index: 1, kind: input, shape index: {}]   ;;  %s4957_s3 = inlined_call_operand.vmem [shape: f32[1,128], index: 3, kind: input, shape index: {}]   ;;  %s4958_s5 = inlined_call_operand.vmem [shape: bf16[512,128], index: 5, kind: output, shape index: {0}]   ;;  %s4959_s4 = inlined_call_operand.vmem [shape: bf16[16,512], index: 4, kind: input, shape index: {}]   ;;  %s4960_s6 = inlined_call_operand.vmem [shape: bf16[16,512], index: 6, kind: output, shape index: {1}]  }
   0x1   :  { %v3108_v0 = vld [vmem:[%s4954_s2 + $0x38] sm:$0xff]  ;;  %v3107_v4 = vld [vmem:[%s4954_s2 + $0x30] sm:$0xff]  ;;  %v3106_v8 = vld [vmem:[%s4954_s2 + $0x28] sm:$0xff]  ;;  %3329 = vset.pattern.permute.xlu0 %v3481_v62  ;;  %3330 = vset.pattern.permute.xlu1 %v3481_v62 }
   0x2   :  { %v3116_v1 = vld [vmem:[%s4954_s2 + $0x78] sm:$0xff]  ;;  %1114 = vmatpush.bf16.msra.mxu0 %v3108_v0  ;;  %v3115_v5 = vld [vmem:[%s4954_s2 + $0x70] sm:$0xff]  ;;  %v3114_v9 = vld [vmem:[%s4954_s2 + $0x68] sm:$0xff]  ;;  %3331 = vset.pattern.permute.xlu2 %v3481_v62 }
   0x3   :  { %v3124_v2 = vld [vmem:[%s4954_s2 + $0xb8] sm:$0xff]  ;;  %1283 = vmatpush.bf16.msra.mxu1 %v3116_v1  ;;  %v3123_v6 = vld [vmem:[%s4954_s2 + $0xb0] sm:$0xff]  ;;  %v3122_v10 = vld [vmem:[%s4954_s2 + $0xa8] sm:$0xff] }
   0x4   :  { %v3132_v3 = vld [vmem:[%s4954_s2 + $0xf8] sm:$0xff]  ;;  %1452 = vmatpush.bf16.msra.mxu2 %v3124_v2  ;;  %v3131_v7 = vld [vmem:[%s4954_s2 + $0xf0] sm:$0xff]  ;;  %v3130_v11 = vld [vmem:[%s4954_s2 + $0xe8] sm:$0xff] }
   0x5   :  { %1621 = vmatpush.bf16.msra.mxu3 %v3132_v3  ;;  %v3105_v12 = vld [vmem:[%s4954_s2 + $0x20] sm:$0xff]  ;;  %v3104_v16 = vld [vmem:[%s4954_s2 + $0x18] sm:$0xff]  ;;  %v91_v21 = vld [vmem:[%s4955_s0 + $0x8] sm:$0xff] }
   0x6   :  { %1115 = vmatpush.bf16.msra.mxu0 %v3107_v4  ;;  %v3113_v13 = vld [vmem:[%s4954_s2 + $0x60] sm:$0xff]  ;;  %v3112_v17 = vld [vmem:[%s4954_s2 + $0x58] sm:$0xff]  ;;  %v152_v22 = vld [vmem:[%s4955_s0 + $0x1f0] sm:$0xff]  ;;  %v158_v29 = vunpack.c.0.s8 %v91_v21  ;;  %v159_v35 = vunpack.c.1.s8 %v91_v21  ;;  %v160_v40 = vunpack.c.2.s8 %v91_v21  ;;  %v161_v43 = vunpack.c.3.s8 %v91_v21 }
   0x7   :  { %1284 = vmatpush.bf16.msra.mxu1 %v3115_v5  ;;  %v3121_v14 = vld [vmem:[%s4954_s2 + $0xa0] sm:$0xff]  ;;  %v3120_v18 = vld [vmem:[%s4954_s2 + $0x98] sm:$0xff]  ;;  %v3103_v24 = vld [vmem:[%s4954_s2 + $0x10] sm:$0xff]  ;;  %v402_v36 = vunpack.c.0.s8 %v152_v22 }
   0x8   :  { %1453 = vmatpush.bf16.msra.mxu2 %v3123_v6  ;;  %v3129_v15 = vld [vmem:[%s4954_s2 + $0xe0] sm:$0xff]  ;;  %v3128_v19 = vld [vmem:[%s4954_s2 + $0xd8] sm:$0xff]  ;;  %v3111_v25 = vld [vmem:[%s4954_s2 + $0x50] sm:$0xff]  ;;  %v414_v51 = vcvt.s32.f32 %v158_v29  ;;  %v415_v55 = vcvt.s32.f32 %v159_v35  ;;  %v416_v2 = vcvt.s32.f32 %v160_v40  ;;  %v417_v3 = vcvt.s32.f32 %v161_v43 }
   0x9   :  { %1622 = vmatpush.bf16.msra.mxu3 %v3131_v7  ;;  %v90_v20 = vld [vmem:[%s4955_s0] sm:$0xff]  ;;  %v153_v23 = vld [vmem:[%s4955_s0 + $0x1f8] sm:$0xff]  ;;  %v3119_v26 = vld [vmem:[%s4954_s2 + $0x90] sm:$0xff]  ;;  %v658_v56 = vcvt.s32.f32 %v402_v36 }
   0xa   :  { %1116 = vmatpush.bf16.msra.mxu0 %v3106_v8  ;;  %v154_v27 = vunpack.c.0.s8 %v90_v20  ;;  %v3127_v28 = vld [vmem:[%s4954_s2 + $0xd0] sm:$0xff]  ;;  %v155_v30 = vunpack.c.1.s8 %v90_v20  ;;  %v156_v31 = vunpack.c.2.s8 %v90_v20  ;;  %v157_v32 = vunpack.c.3.s8 %v90_v20  ;;  %v137_v34 = vld [vmem:[%s4955_s0 + $0x178] sm:$0xff]  ;;  %v3102_v38 = vld [vmem:[%s4954_s2 + $0x8] sm:$0xff] }
   0xb   :  { %1285 = vmatpush.bf16.msra.mxu1 %v3114_v9  ;;  %v136_v33 = vld [vmem:[%s4955_s0 + $0x170] sm:$0xff]  ;;  %v406_v37 = vunpack.c.0.s8 %v153_v23  ;;  %v3110_v39 = vld [vmem:[%s4954_s2 + $0x48] sm:$0xff]  ;;  %v342_v45 = vunpack.c.0.s8 %v137_v34  ;;  %v3621_v46 = vld [vmem:[%s4955_s0 + $0x78] sm:$0xff] }
   0xc   :  { %1454 = vmatpush.bf16.msra.mxu2 %v3122_v10  ;;  %v3616_v41 = vld [vmem:[%s4955_s0 + $0x70] sm:$0xff]  ;;  %v410_v42 = vcvt.s32.f32 %v154_v27  ;;  %v338_v44 = vunpack.c.0.s8 %v136_v33  ;;  %v121_v48 = vld [vmem:[%s4955_s0 + $0xf8] sm:$0xff]  ;;  %v3118_v49 = vld [vmem:[%s4954_s2 + $0x88] sm:$0xff]  ;;  %v411_v52 = vcvt.s32.f32 %v155_v30  ;;  %v412_v53 = vcvt.s32.f32 %v156_v31 }
   0xd   :  { %1623 = vmatpush.bf16.msra.mxu3 %v3130_v11  ;;  %v120_v47 = vld [vmem:[%s4955_s0 + $0xf0] sm:$0xff]  ;;  %v3126_v50 = vld [vmem:[%s4954_s2 + $0xc8] sm:$0xff]  ;;  %v413_v54 = vcvt.s32.f32 %v157_v32  ;;  %v662_v57 = vcvt.s32.f32 %v406_v37  ;;  %v210_v58 = vunpack.c.0.s8 %v3616_v41  ;;  %v214_v59 = vunpack.c.0.s8 %v3621_v46  ;;  %v2177_v63 = vld [vmem:[%s4956_s1] sm:$0xff] }
   0xe   :  { %1117 = vmatpush.bf16.msra.mxu0 %v3105_v12  ;;  %v274_v60 = vunpack.c.0.s8 %v120_v47  ;;  %v278_v61 = vunpack.c.0.s8 %v121_v48  ;;  %v3101_v0 = vld [vmem:[%s4954_s2] sm:$0xff]  ;;  %v594_v4 = vcvt.s32.f32 %v338_v44  ;;  %v598_v5 = vcvt.s32.f32 %v342_v45  ;;  %2307 = vperm.xlu0 %3329, %v2177_v63   ;;  %v2178_v20 = vld [vmem:[%s4956_s1 + $0x8] sm:$0xff]  ;;  %v92_v21 = vld [vmem:[%s4955_s0 + $0x10] sm:$0xff] }
   0xf   :  { %1286 = vmatpush.bf16.msra.mxu1 %v3113_v13  ;;  %v3109_v1 = vld [vmem:[%s4954_s2 + $0x40] sm:$0xff]  ;;  %v3652_v8 = vpack.c.bf16 %v414_v51, %v410_v42  ;;  %v3654_v9 = vpack.c.bf16 %v415_v55, %v411_v52  ;;  %v3656_v10 = vpack.c.bf16 %v662_v57, %v658_v56  ;;  %v466_v11 = vcvt.s32.f32 %v210_v58  ;;  %v93_v22 = vld [vmem:[%s4955_s0 + $0x18] sm:$0xff]  ;;  %v2179_v23 = vld [vmem:[%s4956_s1 + $0x10] sm:$0xff] }
  0x10   :  { %1455 = vmatpush.bf16.msra.mxu2 %v3121_v14  ;;  %v3117_v6 = vld [vmem:[%s4954_s2 + $0x80] sm:$0xff]  ;;  %v470_v12 = vcvt.s32.f32 %v214_v59  ;;  %v530_v13 = vcvt.s32.f32 %v274_v60  ;;  %v534_v14 = vcvt.s32.f32 %v278_v61  ;;  %2317 = vperm.xlu1 %3330, %v2179_v23   ;;  %v167_v27 = vunpack.c.1.s8 %v93_v22  ;;  %v2180_v36 = vld [vmem:[%s4956_s1 + $0x18] sm:$0xff]  ;;  %v95_v48 = vld [vmem:[%s4955_s0 + $0x28] sm:$0xff] }
  0x11   :  { %1624 = vmatpush.bf16.msra.mxu3 %v3129_v15  ;;  %v3125_v7 = vld [vmem:[%s4954_s2 + $0xc0] sm:$0xff]  ;;  %v3658_v15 = vpack.c.bf16 %v416_v2, %v412_v53  ;;  %v168_v29 = vunpack.c.2.s8 %v93_v22  ;;  %v165_v30 = vunpack.c.3.s8 %v92_v21  ;;  %v169_v31 = vunpack.c.3.s8 %v93_v22 }
  0x12   :  { %1118 = vmatpush.bf16.msra.mxu0 %v3104_v16  ;;  %v3660_v16 = vpack.c.bf16 %v417_v3, %v413_v54  ;;  %v423_v35 = vcvt.s32.f32 %v167_v27  ;;  %v94_v47 = vld [vmem:[%s4955_s0 + $0x20] sm:$0xff]  ;;  %v175_v52 = vunpack.c.1.s8 %v95_v48  ;;  %v176_v54 = vunpack.c.2.s8 %v95_v48  ;;  %v151_v27 = vld [vmem:[%s4955_s0 + $0x1e8] sm:$0xff] }
  0x13   :  { %1287 = vmatpush.bf16.msra.mxu1 %v3112_v17  ;;  %4998 = vst [vmem:[#allocation3_spill] sm:$0xff] %v3658_v15  ;;  %v3662_v17 = vpack.c.bf16 %v598_v5, %v594_v4  ;;  %v425_v40 = vcvt.s32.f32 %v169_v31  ;;  %v171_v51 = vunpack.c.1.s8 %v94_v47  ;;  %v172_v53 = vunpack.c.2.s8 %v94_v47  ;;  %v96_v5 = vld [vmem:[%s4955_s0 + $0x30] sm:$0xff]  ;;  %v150_v23 = vld [vmem:[%s4955_s0 + $0x1e0] sm:$0xff] }
  0x14   :  { %1456 = vmatpush.bf16.msra.mxu2 %v3120_v18  ;;  %4999 = vst [vmem:[#allocation4_spill] sm:$0xff] %v3660_v16  ;;  %v3668_v18 = vpack.c.bf16 %v470_v12, %v466_v11  ;;  %v173_v55 = vunpack.c.3.s8 %v94_v47  ;;  %v177_v56 = vunpack.c.3.s8 %v95_v48  ;;  %v431_v60 = vcvt.s32.f32 %v175_v52  ;;  %v134_v11 = vld [vmem:[%s4955_s0 + $0x160] sm:$0xff]  ;;  %v135_v12 = vld [vmem:[%s4955_s0 + $0x168] sm:$0xff] }
  0x15   :  { %1625 = vmatpush.bf16.msra.mxu3 %v3128_v19  ;;  %v3670_v19 = vpack.c.bf16 %v534_v14, %v530_v13  ;;  %v427_v59 = vcvt.s32.f32 %v171_v51  ;;  %v428_v61 = vcvt.s32.f32 %v172_v53  ;;  %v432_v62 = vcvt.s32.f32 %v176_v54 }
  0x16   :  { %1119 = vmatpush.bf16.msra.mxu0 %v3103_v24  ;;  %2312 = vperm.xlu0 %3329, %v2178_v20   ;;  %v162_v24 = vunpack.c.0.s8 %v92_v21  ;;  %v429_v63 = vcvt.s32.f32 %v173_v55  ;;  %v178_v13 = vunpack.c.0.s8 %v96_v5  ;;  %v330_v14 = vunpack.c.0.s8 %v134_v11 }
  0x17   :  { %1288 = vmatpush.bf16.msra.mxu1 %v3111_v25  ;;  %v166_v25 = vunpack.c.0.s8 %v93_v22  ;;  %v3711_v2 = vpack.c.bf16 %v431_v60, %v427_v59  ;;  %v3713_v3 = vpack.c.bf16 %v432_v62, %v428_v61  ;;  %v334_v20 = vunpack.c.0.s8 %v135_v12  ;;  %v2184_v22 = vld [vmem:[%s4956_s1 + $0x38] sm:$0xff]  ;;  %v3768_v59 = vld [vmem:[%s4955_s0 + $0x50] sm:$0xff]  ;;  %v99_v61 = vld [vmem:[%s4955_s0 + $0x48] sm:$0xff] }
  0x18   :  { %1457 = vmatpush.bf16.msra.mxu2 %v3119_v26  ;;  %v163_v26 = vunpack.c.1.s8 %v92_v21  ;;  %v418_v32 = vcvt.s32.f32 %v162_v24  ;;  %2322 = vperm.xlu1 %3330, %v2180_v36   ;;  %v3773_v60 = vld [vmem:[%s4955_s0 + $0x58] sm:$0xff] }
  0x19   :  { %1626 = vmatpush.bf16.msra.mxu3 %v3127_v28  ;;  %v164_v28 = vunpack.c.2.s8 %v92_v21  ;;  %v422_v33 = vcvt.s32.f32 %v166_v25  ;;  %v2181_v21 = vld [vmem:[%s4956_s1 + $0x20] sm:$0xff]  ;;  %v179_v25 = vunpack.c.1.s8 %v96_v5  ;;  %v590_v31 = vcvt.s32.f32 %v334_v20  ;;  %v2182_v20 = vld [vmem:[%s4956_s1 + $0x28] sm:$0xff] }
  0x1a   :  { %1120 = vmatpush.bf16.msra.mxu0 %v3102_v38  ;;  %v419_v34 = vcvt.s32.f32 %v163_v26  ;;  %v424_v38 = vcvt.s32.f32 %v168_v29  ;;  %2327 = vperm.xlu2 %3331, %v2181_v21   ;;  %v180_v29 = vunpack.c.2.s8 %v96_v5  ;;  %v2186_v21 = vld [vmem:[%s4956_s1 + $0x48] sm:$0xff] }
  0x1b   :  { %1289 = vmatpush.bf16.msra.mxu1 %v3110_v39  ;;  %v420_v37 = vcvt.s32.f32 %v164_v28  ;;  %v421_v39 = vcvt.s32.f32 %v165_v30  ;;  %v3691_v42 = vpack.c.bf16 %v422_v33, %v418_v32  ;;  %v394_v28 = vunpack.c.0.s8 %v150_v23 }
  0x1c   :  { %1458 = vmatpush.bf16.msra.mxu2 %v3118_v49  ;;  %v3693_v43 = vpack.c.bf16 %v423_v35, %v419_v34  ;;  %v170_v49 = vunpack.c.0.s8 %v94_v47  ;;  %v586_v30 = vcvt.s32.f32 %v330_v14  ;;  %v398_v32 = vunpack.c.0.s8 %v151_v27 }
  0x1d   :  { %1627 = vmatpush.bf16.msra.mxu3 %v3126_v50  ;;  %v3695_v44 = vpack.c.bf16 %v424_v38, %v420_v37  ;;  %v3697_v45 = vpack.c.bf16 %v425_v40, %v421_v39  ;;  %v174_v50 = vunpack.c.0.s8 %v95_v48  ;;  %v181_v34 = vunpack.c.3.s8 %v96_v5  ;;  %v3791_v5 = vld [vmem:[%s4955_s0 + $0x68] sm:$0xff] }
  0x1e   :  { %1121 = vmatpush.bf16.msra.mxu0 %v3101_v0  ;;  %v426_v57 = vcvt.s32.f32 %v170_v49  ;;  %v433_v0 = vcvt.s32.f32 %v177_v56  ;;  %v650_v36 = vcvt.s32.f32 %v394_v28  ;;  %v3748_v37 = vpack.c.bf16 %v590_v31, %v586_v30 }
  0x1f   :  { %1290 = vmatpush.bf16.msra.mxu1 %v3109_v1  ;;  %5000 = vst [vmem:[#allocation5_spill] sm:$0xff] %v3695_v44  ;;  %v430_v58 = vcvt.s32.f32 %v174_v50  ;;  %v654_v38 = vcvt.s32.f32 %v398_v32  ;;  %v434_v39 = vcvt.s32.f32 %v178_v13  ;;  %v435_v47 = vcvt.s32.f32 %v179_v25  ;;  %v3804_v13 = vld [vmem:[%s4955_s0 + $0xe8] sm:$0xff] }
  0x20   :  { %1459 = vmatpush.bf16.msra.mxu2 %v3117_v6  ;;  %5001 = vst [vmem:[#allocation6_spill] sm:$0xff] %v3697_v45  ;;  %v3715_v4 = vpack.c.bf16 %v433_v0, %v429_v63  ;;  %v97_v6 = vld [vmem:[%s4955_s0 + $0x38] sm:$0xff]  ;;  %2342 = vperm.xlu1 %3330, %v2184_v22   ;;  %v436_v50 = vcvt.s32.f32 %v180_v29  ;;  %v437_v52 = vcvt.s32.f32 %v181_v34  ;;  %v194_v63 = vunpack.c.0.s8 %v3768_v59  ;;  %v3786_v0 = vld [vmem:[%s4955_s0 + $0x60] sm:$0xff] }
  0x21   :  { %1628 = vmatpush.bf16.msra.mxu3 %v3125_v7  ;;  %1122 = vmatmul.bf16.vlgmr.msra.gmra.mxu0 %v3652_v8  ;;  %v3709_v1 = vpack.c.bf16 %v430_v58, %v426_v57  ;;  %v2183_v7 = vld [vmem:[%s4956_s1 + $0x30] sm:$0xff]  ;;  %v182_v24 = vunpack.c.0.s8 %v97_v6  ;;  %v183_v26 = vunpack.c.1.s8 %v97_v6  ;;  %v184_v33 = vunpack.c.2.s8 %v97_v6  ;;  %v98_v58 = vld [vmem:[%s4955_s0 + $0x40] sm:$0xff] }
  0x22   :  { %1291 = vmatmul.bf16.vlgmr.msra.gmra.mxu1 %v3654_v9  ;;  %1942 = vmatpush.bf16.msrb.mxu0 %v3668_v18  ;;  %5002 = vst [vmem:[#allocation7_spill] sm:$0xff] %v3715_v4  ;;  %v185_v35 = vunpack.c.3.s8 %v97_v6  ;;  %v3751_v49 = vpack.c.bf16 %v654_v38, %v650_v36  ;;  %v186_v62 = vunpack.c.0.s8 %v98_v58  ;;  %v3796_v6 = vld [vmem:[%s4955_s0 + $0xe0] sm:$0xff]  ;;  %v202_v11 = vunpack.c.0.s8 %v3786_v0 }
  0x23   :  { %1460 = vmatmul.bf16.vlgmr.msra.gmra.mxu2 %v3658_v15  ;;  %1956 = vmatpush.bf16.msrb.mxu1 %v3670_v19  ;;  %v438_v40 = vcvt.s32.f32 %v182_v24  ;;  %v439_v48 = vcvt.s32.f32 %v183_v26  ;;  %v440_v51 = vcvt.s32.f32 %v184_v33  ;;  %v206_v12 = vunpack.c.0.s8 %v3791_v5 }
  0x24   :  { %1970 = vmatpush.bf16.msrb.mxu2 %v3662_v17  ;;  %1629 = vmatmul.bf16.vlgmr.msra.gmra.mxu3 %v3660_v16  ;;  %v441_v53 = vcvt.s32.f32 %v185_v35  ;;  %v266_v14 = vunpack.c.0.s8 %v3796_v6  ;;  %v190_v22 = vunpack.c.0.s8 %v99_v61  ;;  %v187_v23 = vunpack.c.1.s8 %v98_v58 }
  0x25   :  { %1984 = vmatpush.bf16.msrb.mxu3 %v3656_v10  ;;  %2337 = vperm.xlu0 %3329, %v2183_v7   ;;  %v3754_v54 = vpack.c.bf16 %v438_v40, %v434_v39  ;;  %v3756_v55 = vpack.c.bf16 %v439_v48, %v435_v47  ;;  %v3758_v56 = vpack.c.bf16 %v440_v51, %v436_v50  ;;  %v198_v7 = vunpack.c.0.s8 %v3773_v60 }
  0x26   :  { %v3760_v57 = vpack.c.bf16 %v441_v53, %v437_v52  ;;  %v191_v24 = vunpack.c.1.s8 %v99_v61  ;;  %v270_v25 = vunpack.c.0.s8 %v3804_v13  ;;  %2332 = vperm.xlu2 %3331, %v2182_v20   ;;  %v188_v26 = vunpack.c.2.s8 %v98_v58 }
  0x27   :  { %v458_v27 = vcvt.s32.f32 %v202_v11  ;;  %v462_v28 = vcvt.s32.f32 %v206_v12  ;;  %v522_v29 = vcvt.s32.f32 %v266_v14  ;;  %v192_v30 = vunpack.c.2.s8 %v99_v61  ;;  %v2185_v12 = vld [vmem:[%s4956_s1 + $0x40] sm:$0xff] }
  0x28   :  { %1971 = vmatpush.bf16.msrb.mxu2 %v3748_v37  ;;  %5003 = vst [vmem:[#allocation8_spill] sm:$0xff] %v3760_v57  ;;  %v189_v31 = vunpack.c.3.s8 %v98_v58  ;;  %v193_v32 = vunpack.c.3.s8 %v99_v61  ;;  %v526_v33 = vcvt.s32.f32 %v270_v25  ;;  %v450_v34 = vcvt.s32.f32 %v194_v63 }
  0x29   :  { %1985 = vmatpush.bf16.msrb.mxu3 %v3751_v49  ;;  %v454_v35 = vcvt.s32.f32 %v198_v7  ;;  %v3814_v36 = vpack.c.bf16 %v462_v28, %v458_v27  ;;  %v442_v39 = vcvt.s32.f32 %v186_v62  ;;  %v446_v40 = vcvt.s32.f32 %v190_v22  ;;  %v2187_v62 = vld [vmem:[%s4956_s1 + $0x50] sm:$0xff] }
  0x2a   :  { %v3816_v38 = vpack.c.bf16 %v526_v33, %v522_v29  ;;  %v443_v47 = vcvt.s32.f32 %v187_v23  ;;  %v447_v48 = vcvt.s32.f32 %v191_v24  ;;  %v444_v50 = vcvt.s32.f32 %v188_v26  ;;  %2357 = vperm.xlu1 %3330, %v2187_v62  }
  0x2b   :  { %1943 = vmatpush.bf16.msrb.mxu0 %v3814_v36  ;;  %v448_v51 = vcvt.s32.f32 %v192_v30  ;;  %v445_v52 = vcvt.s32.f32 %v189_v31  ;;  %v449_v53 = vcvt.s32.f32 %v193_v32  ;;  %v686_v58 = vpack.c.bf16 %v454_v35, %v450_v34 }
  0x2c   :  { %1957 = vmatpush.bf16.msrb.mxu1 %v3816_v38  ;;  %v682_v61 = vpack.c.bf16 %v446_v40, %v442_v39  ;;  %v3820_v63 = vpack.c.bf16 %v447_v48, %v443_v47  ;;  %v195_v14 = vunpack.c.1.s8 %v3768_v59  ;;  %v199_v20 = vunpack.c.1.s8 %v3773_v60  ;;  %v2190_v40 = vld [vmem:[%s4956_s1 + $0x68] sm:$0xff] }
  0x2d   :  { %2352 = vperm.xlu0 %3329, %v2186_v21   ;;  %v3822_v7 = vpack.c.bf16 %v448_v51, %v444_v50  ;;  %v3824_v11 = vpack.c.bf16 %v449_v53, %v445_v52  ;;  %v196_v21 = vunpack.c.2.s8 %v3768_v59  ;;  %v200_v22 = vunpack.c.2.s8 %v3773_v60 }
  0x2e   :  { %2347 = vperm.xlu2 %3331, %v2185_v12   ;;  %v197_v23 = vunpack.c.3.s8 %v3768_v59  ;;  %v201_v24 = vunpack.c.3.s8 %v3773_v60  ;;  %v451_v25 = vcvt.s32.f32 %v195_v14  ;;  %v455_v26 = vcvt.s32.f32 %v199_v20 }
  0x2f   :  { %1944 = vmatpush.bf16.msrb.mxu0 %v686_v58  ;;  %5004 = vst [vmem:[#allocation9_spill] sm:$0xff] %v3824_v11  ;;  %v452_v27 = vcvt.s32.f32 %v196_v21  ;;  %v456_v28 = vcvt.s32.f32 %v200_v22  ;;  %v211_v31 = vunpack.c.1.s8 %v3616_v41  ;;  %v215_v32 = vunpack.c.1.s8 %v3621_v46 }
  0x30   :  { %v453_v29 = vcvt.s32.f32 %v197_v23  ;;  %v457_v30 = vcvt.s32.f32 %v201_v24  ;;  %v687_v33 = vpack.c.bf16 %v455_v26, %v451_v25  ;;  %v203_v60 = vunpack.c.1.s8 %v3786_v0  ;;  %v2188_v23 = vld [vmem:[%s4956_s1 + $0x58] sm:$0xff] }
  0x31   :  { %1127 = vmatmul.bf16.gmra.mxu0 %v3691_v42  ;;  %v3845_v34 = vpack.c.bf16 %v456_v28, %v452_v27  ;;  %v467_v35 = vcvt.s32.f32 %v211_v31  ;;  %v471_v39 = vcvt.s32.f32 %v215_v32  ;;  %v208_v51 = vunpack.c.2.s8 %v3791_v5  ;;  %v106_v28 = vld [vmem:[%s4955_s0 + $0x80] sm:$0xff]  ;;  %v149_v31 = vld [vmem:[%s4955_s0 + $0x1d8] sm:$0xff] }
  0x32   :  { %1296 = vmatmul.bf16.gmra.mxu1 %v3693_v43  ;;  %v3847_v59 = vpack.c.bf16 %v457_v30, %v453_v29  ;;  %v459_v47 = vcvt.s32.f32 %v203_v60  ;;  %2372 = vperm.xlu1 %3330, %v2190_v40   ;;  %v205_v52 = vunpack.c.3.s8 %v3786_v0  ;;  %v209_v53 = vunpack.c.3.s8 %v3791_v5 }
  0x33   :  { %1465 = vmatmul.bf16.gmra.mxu2 %v3695_v44  ;;  %1945 = vmatpush.bf16.msrb.mxu0 %v682_v61  ;;  %v695_v50 = vpack.c.bf16 %v471_v39, %v467_v35  ;;  %v464_v62 = vcvt.s32.f32 %v208_v51  ;;  %v217_v22 = vunpack.c.3.s8 %v3621_v46  ;;  %v218_v35 = vunpack.c.0.s8 %v106_v28 }
  0x34   :  { %1634 = vmatmul.bf16.gmra.mxu3 %v3697_v45  ;;  %5005 = vst [vmem:[#allocation10_spill] sm:$0xff] %v3847_v59  ;;  %v461_v12 = vcvt.s32.f32 %v205_v52  ;;  %v465_v14 = vcvt.s32.f32 %v209_v53  ;;  %v219_v40 = vunpack.c.1.s8 %v106_v28  ;;  %v221_v51 = vunpack.c.3.s8 %v106_v28 }
  0x35   :  { %v473_v26 = vcvt.s32.f32 %v217_v22 }
  0x36   :  { %v3867_v21 = vpack.c.bf16 %v465_v14, %v461_v12  ;;  %2362 = vperm.xlu2 %3331, %v2188_v23  }
  0x37   :  { %1946 = vmatpush.bf16.msrb.mxu0 %v3754_v54 }
  0x38   :  { %5006 = vst [vmem:[#allocation11_spill] sm:$0xff] %v3867_v21 }
  0x3b   :  { %1947 = vmatpush.bf16.msrb.mxu0 %v3709_v1 }
  0x3f   :  { %1948 = vmatpush.bf16.msrb.mxu0 %v3691_v42  ;;  %v204_v42 = vunpack.c.2.s8 %v3786_v0  ;;  %v216_v0 = vunpack.c.2.s8 %v3621_v46  ;;  %v132_v46 = vld [vmem:[%s4955_s0 + $0x150] sm:$0xff] }
  0x40   :  { %v322_v29 = vunpack.c.0.s8 %v132_v46  ;;  %v3935_v46 = vld [vmem:[%s4955_s0 + $0xd0] sm:$0xff] }
  0x41   :  { %1132 = vmatmul.bf16.gmra.mxu0 %v3709_v1  ;;  %v2189_v1 = vld [vmem:[%s4956_s1 + $0x60] sm:$0xff]  ;;  %v472_v24 = vcvt.s32.f32 %v216_v0  ;;  %v477_v0 = vcvt.s32.f32 %v221_v51 }
  0x42   :  { %1301 = vmatmul.bf16.gmra.mxu1 %v3711_v2  ;;  %2367 = vperm.xlu0 %3329, %v2189_v1  }
  0x43   :  { %1470 = vmatmul.bf16.gmra.mxu2 %v3713_v3  ;;  %1949 = vmatpush.bf16.msrb.mxu0 %v3652_v8  ;;  %v212_v8 = vunpack.c.2.s8 %v3616_v41 }
  0x44   :  { %1639 = vmatmul.bf16.gmra.mxu3 %v3715_v4 }
  0x47   :  { %1998 = vmatpush.bf16.msra.mxu0 %v695_v50 }
  0x51   :  { %1137 = vmatmul.bf16.gmra.mxu0 %v3754_v54  ;;  %v207_v54 = vunpack.c.1.s8 %v3791_v5  ;;  %v213_v5 = vunpack.c.3.s8 %v3616_v41  ;;  %v2192_v41 = vld [vmem:[%s4956_s1 + $0x78] sm:$0xff] }
  0x52   :  { %1306 = vmatmul.bf16.gmra.mxu1 %v3756_v55  ;;  %2382 = vperm.xlu0 %3329, %v2192_v41   ;;  %v2191_v41 = vld [vmem:[%s4956_s1 + $0x70] sm:$0xff] }
  0x53   :  { %1475 = vmatmul.bf16.gmra.mxu2 %v3758_v56  ;;  %v463_v48 = vcvt.s32.f32 %v207_v54  ;;  %v469_v25 = vcvt.s32.f32 %v213_v5  ;;  %2377 = vperm.xlu2 %3331, %v2191_v41  }
  0x54   :  { %1644 = vmatmul.bf16.gmra.mxu3 %v3760_v57 }
  0x55   :  { %v3884_v27 = vpack.c.bf16 %v473_v26, %v469_v25 }
  0x57   :  { %5007 = vst [vmem:[#allocation12_spill] sm:$0xff] %v3884_v27 }
  0x61   :  { %1142 = vmatmul.bf16.gmra.mxu0 %v682_v61  ;;  %v460_v61 = vcvt.s32.f32 %v204_v42 }
  0x62   :  { %1311 = vmatmul.bf16.gmra.mxu1 %v3820_v63 }
  0x63   :  { %1480 = vmatmul.bf16.gmra.mxu2 %v3822_v7  ;;  %v3865_v20 = vpack.c.bf16 %v464_v62, %v460_v61  ;;  %v475_v62 = vcvt.s32.f32 %v219_v40 }
  0x64   :  { %1649 = vmatmul.bf16.gmra.mxu3 %v3824_v11 }
  0x71   :  { %1147 = vmatmul.bf16.gmra.mxu0 %v686_v58  ;;  %v691_v58 = vpack.c.bf16 %v463_v48, %v459_v47  ;;  %v220_v48 = vunpack.c.2.s8 %v106_v28 }
  0x72   :  { %1316 = vmatmul.bf16.gmra.mxu1 %v687_v33 }
  0x73   :  { %1485 = vmatmul.bf16.gmra.mxu2 %v3845_v34  ;;  %1999 = vmatpush.bf16.msra.mxu0 %v691_v58  ;;  %v476_v14 = vcvt.s32.f32 %v220_v48 }
  0x74   :  { %1654 = vmatmul.bf16.gmra.mxu3 %v3847_v59 }
  0x77   :  { %2000 = vmatpush.bf16.msra.mxu0 %v687_v33  ;;  %v578_v33 = vcvt.s32.f32 %v322_v29 }
  0x7b   :  { %2001 = vmatpush.bf16.msra.mxu0 %v3820_v63 }
  0x7f   :  { %2002 = vmatpush.bf16.msra.mxu0 %v3756_v55  ;;  %v133_v55 = vld [vmem:[%s4955_s0 + $0x158] sm:$0xff] }
  0x80   :  { %v326_v30 = vunpack.c.0.s8 %v133_v55  ;;  %v3940_v55 = vld [vmem:[%s4955_s0 + $0xd8] sm:$0xff] }
  0x81   :  { %1152 = vmatmul.bf16.gmra.mxu0 %v3814_v36  ;;  %v468_v36 = vcvt.s32.f32 %v212_v8  ;;  %v262_v28 = vunpack.c.0.s8 %v3940_v55 }
  0x82   :  { %1321 = vmatmul.bf16.gmra.mxu1 %v691_v58  ;;  %v582_v60 = vcvt.s32.f32 %v326_v30  ;;  %v2193_v58 = vld [vmem:[%s4956_s1 + $0x80] sm:$0xff]  ;;  %v109_v30 = vld [vmem:[%s4955_s0 + $0x98] sm:$0xff] }
  0x83   :  { %1490 = vmatmul.bf16.gmra.mxu2 %v3865_v20  ;;  %2003 = vmatpush.bf16.msra.mxu0 %v3711_v2  ;;  %v3882_v63 = vpack.c.bf16 %v472_v24, %v468_v36  ;;  %v148_v2 = vld [vmem:[%s4955_s0 + $0x1d0] sm:$0xff]  ;;  %v231_v40 = vunpack.c.1.s8 %v109_v30 }
  0x84   :  { %1659 = vmatmul.bf16.gmra.mxu3 %v3867_v21  ;;  %v386_v32 = vunpack.c.0.s8 %v148_v2  ;;  %2387 = vperm.xlu1 %3330, %v2193_v58   ;;  %v258_v2 = vunpack.c.0.s8 %v3935_v46 }
  0x86   :  { %v642_v54 = vcvt.s32.f32 %v386_v32  ;;  %v518_v32 = vcvt.s32.f32 %v262_v28  ;;  %v3963_v28 = vld [vmem:[%s4957_s3] ss:$0 sm:$0xff] }
  0x87   :  { %2004 = vmatpush.bf16.msra.mxu0 %v3693_v43  ;;  %v107_v43 = vld [vmem:[%s4955_s0 + $0x88] sm:$0xff] }
  0x88   :  { %v222_v39 = vunpack.c.0.s8 %v107_v43  ;;  %v223_v47 = vunpack.c.1.s8 %v107_v43  ;;  %v224_v42 = vunpack.c.2.s8 %v107_v43  ;;  %v225_v52 = vunpack.c.3.s8 %v107_v43  ;;  %v108_v43 = vld [vmem:[%s4955_s0 + $0x90] sm:$0xff] }
  0x89   :  { %v229_v58 = vunpack.c.3.s8 %v108_v43 }
  0x8a   :  { %v478_v61 = vcvt.s32.f32 %v222_v39  ;;  %v479_v12 = vcvt.s32.f32 %v223_v47  ;;  %v480_v8 = vcvt.s32.f32 %v224_v42  ;;  %v481_v5 = vcvt.s32.f32 %v225_v52 }
  0x8b   :  { %2005 = vmatpush.bf16.msra.mxu0 %v3654_v9  ;;  %v474_v9 = vcvt.s32.f32 %v218_v35  ;;  %v230_v39 = vunpack.c.0.s8 %v109_v30  ;;  %v228_v47 = vunpack.c.2.s8 %v108_v43  ;;  %v232_v52 = vunpack.c.2.s8 %v109_v30 }
  0x8c   :  { %v3923_v23 = vpack.c.bf16 %v479_v12, %v475_v62  ;;  %v3925_v25 = vpack.c.bf16 %v480_v8, %v476_v14  ;;  %v3927_v26 = vpack.c.bf16 %v481_v5, %v477_v0  ;;  %v487_v0 = vcvt.s32.f32 %v231_v40  ;;  %v2196_v40 = vld [vmem:[%s4956_s1 + $0x98] sm:$0xff] }
  0x8d   :  { %v3921_v22 = vpack.c.bf16 %v478_v61, %v474_v9  ;;  %v233_v9 = vunpack.c.3.s8 %v109_v30  ;;  %v2195_v61 = vld [vmem:[%s4956_s1 + $0x90] sm:$0xff]  ;;  %v486_v14 = vcvt.s32.f32 %v230_v39  ;;  %v484_v5 = vcvt.s32.f32 %v228_v47  ;;  %2402 = vperm.xlu1 %3330, %v2196_v40  }
  0x8e   :  { %5008 = vst [vmem:[#allocation13_spill] sm:$0xff] %v3925_v25  ;;  %2397 = vperm.xlu0 %3329, %v2195_v61  }
  0x8f   :  { %5009 = vst [vmem:[#allocation14_spill] sm:$0xff] %v3927_v26  ;;  %v489_v41 = vcvt.s32.f32 %v233_v9 }
  0x91   :  { %1157 = vmatmul.bf16.gmra.mxu0 %v3668_v18  ;;  %v390_v18 = vunpack.c.0.s8 %v149_v31  ;;  %v514_v31 = vcvt.s32.f32 %v258_v2 }
  0x92   :  { %1326 = vmatmul.bf16.gmra.mxu1 %v695_v50  ;;  %v3912_v50 = vpack.c.bf16 %v582_v60, %v578_v33  ;;  %v226_v33 = vunpack.c.0.s8 %v108_v43 }
  0x93   :  { %1495 = vmatmul.bf16.gmra.mxu2 %v3882_v63  ;;  %v646_v1 = vcvt.s32.f32 %v390_v18  ;;  %v2308_v18 = vpop.permute.xlu0 %2307  ;;  %v3954_v60 = vpack.c.bf16 %v518_v32, %v514_v31 }
  0x94   :  { %1664 = vmatmul.bf16.gmra.mxu3 %v3884_v27  ;;  %1972 = vmatpush.bf16.msrb.mxu2 %v3912_v50  ;;  %v482_v62 = vcvt.s32.f32 %v226_v33 }
  0x95   :  { %v3914_v53 = vpack.c.bf16 %v646_v1, %v642_v54  ;;  %v227_v1 = vunpack.c.1.s8 %v108_v43  ;;  %1958 = vmatpush.bf16.msrb.mxu1 %v3954_v60 }
  0x96   :  { %v3965_v31 = vpack.c.bf16 %v486_v14, %v482_v62 }
  0x97   :  { %1986 = vmatpush.bf16.msrb.mxu3 %v3914_v53  ;;  %v483_v8 = vcvt.s32.f32 %v227_v1 }
  0x99   :  { %v3967_v32 = vpack.c.bf16 %v487_v0, %v483_v8  ;;  %v2318_v8 = vpop.permute.xlu1 %2317 }
  0x9b   :  { %v2313_v47 = vpop.permute.xlu0 %2312 }
  0x9e   :  { %v1123_v36 = vpop.f32.mrf.mxu0 }
  0x9f   :  { %v1292_v24 = vpop.f32.mrf.mxu1 }
  0xa0   :  { %v1293_v29 = vadd.f32 %v1292_v24, %v1123_v36  ;;  %v488_v36 = vcvt.s32.f32 %v232_v52  ;;  %v485_v24 = vcvt.s32.f32 %v229_v58 }
  0xa1   :  { %1162 = vmatmul.bf16.gmra.mxu0 %v3921_v22 }
  0xa2   :  { %1331 = vmatmul.bf16.gmra.mxu1 %v3923_v23  ;;  %v3969_v39 = vpack.c.bf16 %v488_v36, %v484_v5  ;;  %v3971_v1 = vpack.c.bf16 %v489_v41, %v485_v24 }
  0xa3   :  { %1500 = vmatmul.bf16.gmra.mxu2 %v3925_v25 }
  0xa4   :  { %1669 = vmatmul.bf16.gmra.mxu3 %v3927_v26  ;;  %5010 = vst [vmem:[#allocation15_spill] sm:$0xff] %v3969_v39 }
  0xa5   :  { %5011 = vst [vmem:[#allocation16_spill] sm:$0xff] %v3971_v1 }
  0xa6   :  { %v1461_v54 = vpop.f32.mrf.mxu2  ;;  %v1125_v42 = vpop.f32.mrf.mxu0 }
  0xa7   :  { %v1630_v35 = vpop.f32.mrf.mxu3  ;;  %v1462_v48 = vadd.f32 %v1461_v54, %v1293_v29  ;;  %v1294_v51 = vpop.f32.mrf.mxu1 }
  0xa8   :  { %v1295_v2 = vadd.f32 %v1294_v51, %v1125_v42  ;;  %v111_v42 = vld [vmem:[%s4955_s0 + $0xa8] sm:$0xff] }
  0xa9   :  { %v1631_v12 = vadd.f32 %v1630_v35, %v1462_v48  ;;  %v110_v48 = vld [vmem:[%s4955_s0 + $0xa0] sm:$0xff]  ;;  %v238_v61 = vunpack.c.0.s8 %v111_v42  ;;  %v240_v5 = vunpack.c.2.s8 %v111_v42 }
  0xaa   :  { %v234_v9 = vunpack.c.0.s8 %v110_v48  ;;  %v235_v62 = vunpack.c.1.s8 %v110_v48  ;;  %v236_v0 = vunpack.c.2.s8 %v110_v48 }
  0xab   :  { %v2625_v43 = vmul.f32 %v2308_v18, %v1631_v12  ;;  %v239_v12 = vunpack.c.1.s8 %v111_v42 }
  0xac   :  { %v491_v40 = vcvt.s32.f32 %v235_v62  ;;  %v4008_v62 = vld [vmem:[%s4955_s0 + $0xc0] sm:$0xff] }
  0xad   :  { %v2693_v51 = vadd.f32 %v3963_v28, %v2625_v43 }
  0xae   :  { %v1463_v29 = vpop.f32.mrf.mxu2  ;;  %v1128_v54 = vpop.f32.mrf.mxu0 }
  0xaf   :  { %v1632_v30 = vpop.f32.mrf.mxu3  ;;  %v1464_v33 = vadd.f32 %v1463_v29, %v1295_v2  ;;  %v1297_v35 = vpop.f32.mrf.mxu1  ;;  %3333 = vtanh.f32 %v2693_v51  ;;  %v237_v29 = vunpack.c.3.s8 %v110_v48  ;;  %v3999_v48 = vld [vmem:[%s4955_s0 + $0xb8] sm:$0xff] }
  0xb0   :  { %v1298_v52 = vadd.f32 %v1297_v35, %v1128_v54  ;;  %v490_v54 = vcvt.s32.f32 %v234_v9  ;;  %v494_v35 = vcvt.s32.f32 %v238_v61 }
  0xb1   :  { %v1633_v18 = vadd.f32 %v1632_v30, %v1464_v33  ;;  %1167 = vmatmul.bf16.gmra.mxu0 %v3965_v31  ;;  %v241_v30 = vunpack.c.3.s8 %v111_v42  ;;  %v2194_v33 = vld [vmem:[%s4956_s1 + $0x88] sm:$0xff]  ;;  %v493_v26 = vcvt.s32.f32 %v237_v29 }
  0xb2   :  { %1336 = vmatmul.bf16.gmra.mxu1 %v3967_v32  ;;  %2392 = vperm.xlu2 %3331, %v2194_v33   ;;  %v4001_v9 = vpack.c.bf16 %v494_v35, %v490_v54  ;;  %v246_v35 = vunpack.c.0.s8 %v3999_v48 }
  0xb3   :  { %v2626_v58 = vmul.f32 %v2313_v47, %v1633_v18  ;;  %1505 = vmatmul.bf16.gmra.mxu2 %v3969_v39  ;;  %v495_v47 = vcvt.s32.f32 %v239_v12  ;;  %v492_v18 = vcvt.s32.f32 %v236_v0  ;;  %v497_v16 = vcvt.s32.f32 %v241_v30  ;;  %v4013_v12 = vld [vmem:[%s4955_s0 + $0xc8] sm:$0xff] }
  0xb4   :  { %1674 = vmatmul.bf16.gmra.mxu3 %v3971_v1 }
  0xb5   :  { %v2694_v14 = vadd.f32 %v3963_v28, %v2626_v58  ;;  %v496_v58 = vcvt.s32.f32 %v240_v5  ;;  %v3334_v42 = vpop.eup %3333  ;;  %v4003_v61 = vpack.c.bf16 %v495_v47, %v491_v40  ;;  %v4021_v45 = vpack.c.bf16 %v497_v16, %v493_v26 }
  0xb6   :  { %v1466_v36 = vpop.f32.mrf.mxu2  ;;  %v1130_v2 = vpop.f32.mrf.mxu0  ;;  %v502_v26 = vcvt.s32.f32 %v246_v35 }
  0xb7   :  { %v1635_v24 = vpop.f32.mrf.mxu3  ;;  %3335 = vtanh.f32 %v2694_v14  ;;  %v1467_v41 = vadd.f32 %v1466_v36, %v1298_v52  ;;  %v1299_v43 = vpop.f32.mrf.mxu1  ;;  %v3994_v52 = vld [vmem:[%s4955_s0 + $0xb0] sm:$0xff]  ;;  %v4015_v5 = vpack.c.bf16 %v496_v58, %v492_v18  ;;  %v250_v36 = vunpack.c.0.s8 %v4008_v62  ;;  %5012 = vst [vmem:[#allocation17_spill] sm:$0xff] %v4021_v45 }
  0xb8   :  { %v1300_v0 = vadd.f32 %v1299_v43, %v1130_v2  ;;  %v242_v54 = vunpack.c.0.s8 %v3994_v52  ;;  %v2198_v2 = vld [vmem:[%s4956_s1 + $0xa8] sm:$0xff] }
  0xb9   :  { %v1636_v51 = vadd.f32 %v1635_v24, %v1467_v41  ;;  %v254_v24 = vunpack.c.0.s8 %v4013_v12  ;;  %v506_v43 = vcvt.s32.f32 %v250_v36  ;;  %2412 = vperm.xlu0 %3329, %v2198_v2   ;;  %v243_v36 = vunpack.c.1.s8 %v3994_v52 }
  0xba   :  { %v498_v16 = vcvt.s32.f32 %v242_v54 }
  0xbb   :  { %v2627_v29 = vmul.f32 %v2318_v8, %v1636_v51  ;;  %v510_v18 = vcvt.s32.f32 %v254_v24  ;;  %v2323_v8 = vpop.permute.xlu1 %2322  ;;  %v247_v24 = vunpack.c.1.s8 %v3999_v48 }
  0xbc   :  { %v710_v35 = vpack.c.bf16 %v502_v26, %v498_v16 }
  0xbd   :  { %v3336_v14 = vpop.eup %3335  ;;  %v2695_v51 = vadd.f32 %v3963_v28, %v2627_v29  ;;  %v248_v29 = vunpack.c.2.s8 %v3999_v48 }
  0xbe   :  { %v3140_v41 = vpack.c.bf16 %v3336_v14, %v3334_v42  ;;  %v1468_v30 = vpop.f32.mrf.mxu2  ;;  %v1133_v47 = vpop.f32.mrf.mxu0  ;;  %v4032_v42 = vpack.c.bf16 %v510_v18, %v506_v43  ;;  %v245_v43 = vunpack.c.3.s8 %v3994_v52  ;;  %v249_v18 = vunpack.c.3.s8 %v3999_v48 }
  0xbf   :  { %v1637_v33 = vpop.f32.mrf.mxu3  ;;  %v1469_v40 = vadd.f32 %v1468_v30, %v1300_v0  ;;  %v1302_v1 = vpop.f32.mrf.mxu1  ;;  %3337 = vtanh.f32 %v2695_v51  ;;  %v504_v4 = vcvt.s32.f32 %v248_v29 }
  0xc0   :  { %3141 = vst [vmem:[%s4958_s5] sm:$0xff] %v3140_v41   ;;  %v1303_v14 = vadd.f32 %v1302_v1, %v1133_v47  ;;  %v244_v41 = vunpack.c.2.s8 %v3994_v52  ;;  %1959 = vmatpush.bf16.msrb.mxu1 %v4032_v42  ;;  %v501_v16 = vcvt.s32.f32 %v245_v43  ;;  %v505_v26 = vcvt.s32.f32 %v249_v18 }
  0xc1   :  { %v1638_v58 = vadd.f32 %v1637_v33, %v1469_v40  ;;  %1172 = vmatmul.bf16.gmra.mxu0 %v4001_v9  ;;  %v2328_v33 = vpop.permute.xlu2 %2327  ;;  %v264_v43 = vunpack.c.2.s8 %v3940_v55 }
  0xc2   :  { %1341 = vmatmul.bf16.gmra.mxu1 %v4003_v61  ;;  %v4058_v18 = vpack.c.bf16 %v505_v26, %v501_v16 }
  0xc3   :  { %v2628_v0 = vmul.f32 %v2323_v8, %v1638_v58  ;;  %1510 = vmatmul.bf16.gmra.mxu2 %v4015_v5  ;;  %v2199_v8 = vld [vmem:[%s4956_s1 + $0xb0] sm:$0xff]  ;;  %v499_v58 = vcvt.s32.f32 %v243_v36  ;;  %v259_v36 = vunpack.c.1.s8 %v3935_v46 }
  0xc4   :  { %1679 = vmatmul.bf16.gmra.mxu3 %v4021_v45  ;;  %v503_v45 = vcvt.s32.f32 %v247_v24  ;;  %2417 = vperm.xlu1 %3330, %v2199_v8   ;;  %v263_v24 = vunpack.c.1.s8 %v3940_v55  ;;  %5013 = vst [vmem:[#allocation18_spill] sm:$0xff] %v4058_v18 }
  0xc5   :  { %v2696_v30 = vadd.f32 %v3963_v28, %v2628_v0  ;;  %v500_v0 = vcvt.s32.f32 %v244_v41  ;;  %1960 = vmatpush.bf16.msrb.mxu1 %v710_v35  ;;  %v260_v41 = vunpack.c.2.s8 %v3935_v46  ;;  %v515_v8 = vcvt.s32.f32 %v259_v36 }
  0xc6   :  { %v1471_v1 = vpop.f32.mrf.mxu2  ;;  %v1135_v47 = vpop.f32.mrf.mxu0 }
  0xc7   :  { %v1640_v54 = vpop.f32.mrf.mxu3  ;;  %3339 = vtanh.f32 %v2696_v30  ;;  %v1472_v40 = vadd.f32 %v1471_v1, %v1303_v14  ;;  %v1304_v2 = vpop.f32.mrf.mxu1  ;;  %v4047_v1 = vpack.c.bf16 %v503_v45, %v499_v58  ;;  %v4049_v52 = vpack.c.bf16 %v504_v4, %v500_v0 }
  0xc8   :  { %v3338_v14 = vpop.eup %3337  ;;  %v1305_v30 = vadd.f32 %v1304_v2, %v1135_v47  ;;  %v261_v45 = vunpack.c.3.s8 %v3935_v46  ;;  %v265_v4 = vunpack.c.3.s8 %v3940_v55  ;;  %v519_v58 = vcvt.s32.f32 %v263_v24 }
  0xc9   :  { %v1641_v51 = vadd.f32 %v1640_v54, %v1472_v40  ;;  %1961 = vmatpush.bf16.msrb.mxu1 %v4001_v9  ;;  %v2333_v0 = vpop.permute.xlu2 %2332  ;;  %v516_v46 = vcvt.s32.f32 %v260_v41  ;;  %v147_v41 = vld [vmem:[%s4955_s0 + $0x1c8] sm:$0xff] }
  0xca   :  { %v517_v55 = vcvt.s32.f32 %v261_v45  ;;  %v4081_v36 = vpack.c.bf16 %v519_v58, %v515_v8 }
  0xcb   :  { %v2629_v57 = vmul.f32 %v2328_v33, %v1641_v51  ;;  %v2197_v33 = vld [vmem:[%s4956_s1 + $0xa0] sm:$0xff]  ;;  %v520_v51 = vcvt.s32.f32 %v264_v43 }
  0xcc   :  { %2407 = vperm.xlu2 %3331, %v2197_v33  }
  0xcd   :  { %v3340_v48 = vpop.eup %3339  ;;  %1962 = vmatpush.bf16.msrb.mxu1 %v3965_v31  ;;  %v2697_v16 = vadd.f32 %v3963_v28, %v2629_v57  ;;  %v521_v31 = vcvt.s32.f32 %v265_v4  ;;  %v251_v4 = vunpack.c.1.s8 %v4008_v62 }
  0xce   :  { %v3145_v29 = vpack.c.bf16 %v3340_v48, %v3338_v14  ;;  %v1473_v54 = vpop.f32.mrf.mxu2  ;;  %v1138_v2 = vpop.f32.mrf.mxu0  ;;  %v4071_v14 = vld [vmem:[%s4955_s0 + $0x140] sm:$0xff] }
  0xcf   :  { %v1642_v40 = vpop.f32.mrf.mxu3  ;;  %v1474_v47 = vadd.f32 %v1473_v54, %v1305_v30  ;;  %v1307_v9 = vpop.f32.mrf.mxu1  ;;  %v4076_v30 = vld [vmem:[%s4955_s0 + $0x148] sm:$0xff]  ;;  %v146_v48 = vld [vmem:[%s4955_s0 + $0x1c0] sm:$0xff]  ;;  %v314_v57 = vunpack.c.0.s8 %v4071_v14  ;;  %v4089_v54 = vpack.c.bf16 %v520_v51, %v516_v46  ;;  %v4093_v45 = vpack.c.bf16 %v521_v31, %v517_v55 }
  0xd0   :  { %3297 = vst [vmem:[%s4958_s5 + $0x8] sm:$0xff] %v3145_v29   ;;  %v318_v24 = vunpack.c.0.s8 %v4076_v30  ;;  %v378_v29 = vunpack.c.0.s8 %v146_v48  ;;  %v255_v46 = vunpack.c.1.s8 %v4013_v12  ;;  %3341 = vtanh.f32 %v2697_v16  ;;  %v2201_v16 = vld [vmem:[%s4956_s1 + $0xc0] sm:$0xff] }
  0xd1   :  { %v1643_v26 = vadd.f32 %v1642_v40, %v1474_v47  ;;  %1177 = vmatmul.bf16.gmra.mxu0 %v710_v35  ;;  %v1308_v40 = vadd.f32 %v1307_v9, %v1138_v2  ;;  %v382_v35 = vunpack.c.0.s8 %v147_v41  ;;  %5014 = vst [vmem:[#allocation19_spill] sm:$0xff] %v4093_v45  ;;  %v570_v47 = vcvt.s32.f32 %v314_v57  ;;  %1963 = vmatpush.bf16.msrb.mxu1 %v3921_v22 }
  0xd2   :  { %1346 = vmatmul.bf16.gmra.mxu1 %v4047_v1  ;;  %v574_v33 = vcvt.s32.f32 %v318_v24  ;;  %v634_v8 = vcvt.s32.f32 %v378_v29  ;;  %v252_v2 = vunpack.c.2.s8 %v4008_v62  ;;  %v256_v55 = vunpack.c.2.s8 %v4013_v12  ;;  %2427 = vperm.xlu0 %3329, %v2201_v16  }
  0xd3   :  { %v2630_v43 = vmul.f32 %v2333_v0, %v1643_v26  ;;  %1515 = vmatmul.bf16.gmra.mxu2 %v4049_v52  ;;  %v638_v9 = vcvt.s32.f32 %v382_v35  ;;  %v253_v26 = vunpack.c.3.s8 %v4008_v62  ;;  %v257_v24 = vunpack.c.3.s8 %v4013_v12  ;;  %v2338_v35 = vpop.permute.xlu0 %2337 }
  0xd4   :  { %1684 = vmatmul.bf16.gmra.mxu3 %v4058_v18  ;;  %v4102_v48 = vpack.c.bf16 %v574_v33, %v570_v47  ;;  %v507_v29 = vcvt.s32.f32 %v251_v4  ;;  %v512_v47 = vcvt.s32.f32 %v256_v55 }
  0xd5   :  { %v2698_v58 = vadd.f32 %v3963_v28, %v2630_v43  ;;  %v4105_v41 = vpack.c.bf16 %v638_v9, %v634_v8  ;;  %v511_v43 = vcvt.s32.f32 %v255_v46  ;;  %v509_v33 = vcvt.s32.f32 %v253_v26  ;;  %v2202_v46 = vld [vmem:[%s4956_s1 + $0xc8] sm:$0xff] }
  0xd6   :  { %v1476_v0 = vpop.f32.mrf.mxu2  ;;  %v1140_v57 = vpop.f32.mrf.mxu0  ;;  %1973 = vmatpush.bf16.msrb.mxu2 %v4102_v48  ;;  %2432 = vperm.xlu1 %3330, %v2202_v46   ;;  %v271_v46 = vunpack.c.1.s8 %v3804_v13 }
  0xd7   :  { %v1645_v51 = vpop.f32.mrf.mxu3  ;;  %3343 = vtanh.f32 %v2698_v58  ;;  %v1477_v31 = vadd.f32 %v1476_v0, %v1308_v40  ;;  %v1309_v22 = vpop.f32.mrf.mxu1  ;;  %1987 = vmatpush.bf16.msrb.mxu3 %v4105_v41  ;;  %v508_v40 = vcvt.s32.f32 %v252_v2  ;;  %v513_v58 = vcvt.s32.f32 %v257_v24 }
  0xd8   :  { %v3342_v12 = vpop.eup %3341  ;;  %v1310_v9 = vadd.f32 %v1309_v22, %v1140_v57  ;;  %v4112_v21 = vpack.c.bf16 %v511_v43, %v507_v29  ;;  %v2343_v2 = vpop.permute.xlu1 %2342 }
  0xd9   :  { %v1646_v62 = vadd.f32 %v1645_v51, %v1477_v31  ;;  %v4114_v51 = vpack.c.bf16 %v512_v47, %v508_v40  ;;  %v4116_v4 = vpack.c.bf16 %v513_v58, %v509_v33  ;;  %v4136_v40 = vld [vmem:[%s4955_s0 + $0xf0] sm:$0xff]  ;;  %v4142_v33 = vld [vmem:[%s4955_s0 + $0xf8] sm:$0xff] }
  0xda   :  { %v275_v47 = vunpack.c.1.s8 %v4136_v40  ;;  %v279_v58 = vunpack.c.1.s8 %v4142_v33 }
  0xdb   :  { %v2631_v18 = vmul.f32 %v2338_v35, %v1646_v62  ;;  %5015 = vst [vmem:[#allocation20_spill] sm:$0xff] %v4116_v4 }
  0xdd   :  { %v3344_v8 = vpop.eup %3343  ;;  %v2699_v26 = vadd.f32 %v3963_v28, %v2631_v18 }
  0xde   :  { %v3150_v0 = vpack.c.bf16 %v3344_v8, %v3342_v12  ;;  %v1478_v11 = vpop.f32.mrf.mxu2  ;;  %v1143_v27 = vpop.f32.mrf.mxu0 }
  0xdf   :  { %v1647_v59 = vpop.f32.mrf.mxu3  ;;  %v1479_v16 = vadd.f32 %v1478_v11, %v1310_v9  ;;  %v1312_v25 = vpop.f32.mrf.mxu1  ;;  %3345 = vtanh.f32 %v2699_v26 }
  0xe0   :  { %3298 = vst [vmem:[%s4958_s5 + $0x10] sm:$0xff] %v3150_v0   ;;  %v1313_v11 = vadd.f32 %v1312_v25, %v1143_v27  ;;  %v2348_v25 = vpop.permute.xlu2 %2347 }
  0xe1   :  { %v1648_v55 = vadd.f32 %v1647_v59, %v1479_v16  ;;  %1182 = vmatmul.bf16.gmra.mxu0 %v4032_v42  ;;  %v2200_v42 = vld [vmem:[%s4956_s1 + $0xb8] sm:$0xff]  ;;  %v267_v16 = vunpack.c.1.s8 %v3796_v6 }
  0xe2   :  { %1351 = vmatmul.bf16.gmra.mxu1 %v4112_v21  ;;  %2422 = vperm.xlu2 %3331, %v2200_v42  }
  0xe3   :  { %v2632_v31 = vmul.f32 %v2343_v2, %v1648_v55  ;;  %1520 = vmatmul.bf16.gmra.mxu2 %v4114_v51 }
  0xe4   :  { %1689 = vmatmul.bf16.gmra.mxu3 %v4116_v4 }
  0xe5   :  { %v2700_v57 = vadd.f32 %v3963_v28, %v2632_v31  ;;  %v3346_v18 = vpop.eup %3345  ;;  %v531_v31 = vcvt.s32.f32 %v275_v47  ;;  %v268_v47 = vunpack.c.2.s8 %v3796_v6 }
  0xe6   :  { %v1481_v22 = vpop.f32.mrf.mxu2  ;;  %v1145_v59 = vpop.f32.mrf.mxu0 }
  0xe7   :  { %v1650_v24 = vpop.f32.mrf.mxu3  ;;  %3347 = vtanh.f32 %v2700_v57  ;;  %v1482_v62 = vadd.f32 %v1481_v22, %v1313_v11  ;;  %v1314_v29 = vpop.f32.mrf.mxu1  ;;  %v2204_v11 = vld [vmem:[%s4956_s1 + $0xd8] sm:$0xff]  ;;  %v535_v57 = vcvt.s32.f32 %v279_v58  ;;  %v272_v58 = vunpack.c.2.s8 %v3804_v13 }
  0xe8   :  { %v1315_v35 = vadd.f32 %v1314_v29, %v1145_v59  ;;  %v2353_v22 = vpop.permute.xlu0 %2352  ;;  %2442 = vperm.xlu0 %3329, %v2204_v11   ;;  %v523_v59 = vcvt.s32.f32 %v267_v16  ;;  %v527_v29 = vcvt.s32.f32 %v271_v46  ;;  %v273_v16 = vunpack.c.3.s8 %v3804_v13  ;;  %v2205_v46 = vld [vmem:[%s4956_s1 + $0xe0] sm:$0xff] }
  0xe9   :  { %v1651_v27 = vadd.f32 %v1650_v24, %v1482_v62  ;;  %v4156_v42 = vpack.c.bf16 %v535_v57, %v531_v31  ;;  %2447 = vperm.xlu1 %3330, %v2205_v46   ;;  %v528_v11 = vcvt.s32.f32 %v272_v58 }
  0xea   :  { %v529_v57 = vcvt.s32.f32 %v273_v16 }
  0xeb   :  { %v2633_v8 = vmul.f32 %v2348_v25, %v1651_v27  ;;  %2012 = vmatpush.bf16.msra.mxu1 %v4156_v42 }
  0xed   :  { %v3348_v43 = vpop.eup %3347  ;;  %v2701_v62 = vadd.f32 %v3963_v28, %v2633_v8 }
  0xee   :  { %v3155_v12 = vpack.c.bf16 %v3348_v43, %v3346_v18  ;;  %v1483_v9 = vpop.f32.mrf.mxu2  ;;  %v1148_v55 = vpop.f32.mrf.mxu0 }
  0xef   :  { %v1652_v0 = vpop.f32.mrf.mxu3  ;;  %v1484_v2 = vadd.f32 %v1483_v9, %v1315_v35  ;;  %v1317_v26 = vpop.f32.mrf.mxu1  ;;  %3349 = vtanh.f32 %v2701_v62 }
  0xf0   :  { %3299 = vst [vmem:[%s4958_s5 + $0x18] sm:$0xff] %v3155_v12   ;;  %v1318_v27 = vadd.f32 %v1317_v26, %v1148_v55  ;;  %v2358_v55 = vpop.permute.xlu1 %2357  ;;  %v524_v26 = vcvt.s32.f32 %v268_v47  ;;  %v2203_v47 = vld [vmem:[%s4956_s1 + $0xd0] sm:$0xff] }
  0xf1   :  { %v1653_v24 = vadd.f32 %v1652_v0, %v1484_v2  ;;  %1187 = vmatmul.bf16.gmra.mxu0 %v3954_v60  ;;  %v723_v60 = vpack.c.bf16 %v527_v29, %v523_v59  ;;  %v269_v0 = vunpack.c.3.s8 %v3796_v6  ;;  %2437 = vperm.xlu2 %3331, %v2203_v47  }
  0xf2   :  { %1356 = vmatmul.bf16.gmra.mxu1 %v4081_v36 }
  0xf3   :  { %v2634_v25 = vmul.f32 %v2353_v22, %v1653_v24  ;;  %1525 = vmatmul.bf16.gmra.mxu2 %v4089_v54  ;;  %2013 = vmatpush.bf16.msra.mxu1 %v723_v60  ;;  %v525_v31 = vcvt.s32.f32 %v269_v0 }
  0xf4   :  { %1694 = vmatmul.bf16.gmra.mxu3 %v4093_v45 }
  0xf5   :  { %v2702_v18 = vadd.f32 %v3963_v28, %v2634_v25  ;;  %v3350_v22 = vpop.eup %3349 }
  0xf6   :  { %v1486_v43 = vpop.f32.mrf.mxu2  ;;  %v1150_v8 = vpop.f32.mrf.mxu0 }
  0xf7   :  { %v1655_v35 = vpop.f32.mrf.mxu3  ;;  %3351 = vtanh.f32 %v2702_v18  ;;  %v1487_v12 = vadd.f32 %v1486_v43, %v1318_v27  ;;  %v1319_v9 = vpop.f32.mrf.mxu1  ;;  %2014 = vmatpush.bf16.msra.mxu1 %v4081_v36  ;;  %v4170_v43 = vpack.c.bf16 %v528_v11, %v524_v26  ;;  %v277_v26 = vunpack.c.3.s8 %v4136_v40 }
  0xf8   :  { %v1320_v62 = vadd.f32 %v1319_v9, %v1150_v8  ;;  %v2363_v36 = vpop.permute.xlu2 %2362  ;;  %v281_v11 = vunpack.c.3.s8 %v4142_v33 }
  0xf9   :  { %v1656_v2 = vadd.f32 %v1655_v35, %v1487_v12  ;;  %v4172_v35 = vpack.c.bf16 %v529_v57, %v525_v31  ;;  %v2368_v57 = vpop.permute.xlu0 %2367 }
  0xfb   :  { %v2635_v59 = vmul.f32 %v2358_v55, %v1656_v2  ;;  %5016 = vst [vmem:[#allocation21_spill] sm:$0xff] %v4172_v35  ;;  %2015 = vmatpush.bf16.msra.mxu1 %v4112_v21  ;;  %v276_v21 = vunpack.c.2.s8 %v4136_v40  ;;  %v280_v2 = vunpack.c.2.s8 %v4142_v33 }
  0xfd   :  { %v3352_v24 = vpop.eup %3351  ;;  %v2703_v12 = vadd.f32 %v3963_v28, %v2635_v59 }
  0xfe   :  { %v3160_v6 = vpack.c.bf16 %v3352_v24, %v3350_v22  ;;  %v1488_v13 = vpop.f32.mrf.mxu2  ;;  %v1153_v25 = vpop.f32.mrf.mxu0  ;;  %v532_v22 = vcvt.s32.f32 %v276_v21  ;;  %v536_v24 = vcvt.s32.f32 %v280_v2  ;;  %v4216_v21 = vld [vmem:[%s4955_s0 + $0x130] sm:$0xff]  ;;  %v4221_v2 = vld [vmem:[%s4955_s0 + $0x138] sm:$0xff] }
  0xff   :  { %v1657_v29 = vpop.f32.mrf.mxu3  ;;  %v1489_v27 = vadd.f32 %v1488_v13, %v1320_v62  ;;  %v1322_v18 = vpop.f32.mrf.mxu1  ;;  %2016 = vmatpush.bf16.msra.mxu1 %v4047_v1  ;;  %3353 = vtanh.f32 %v2703_v12  ;;  %v2207_v1 = vld [vmem:[%s4956_s1 + $0xf0] sm:$0xff]  ;;  %v533_v62 = vcvt.s32.f32 %v277_v26  ;;  %v145_v26 = vld [vmem:[%s4955_s0 + $0x1b8] sm:$0xff] }
 0x100   :  { %3300 = vst [vmem:[%s4958_s5 + $0x20] sm:$0xff] %v3160_v6   ;;  %v1323_v8 = vadd.f32 %v1322_v18, %v1153_v25  ;;  %2457 = vperm.xlu0 %3329, %v2207_v1   ;;  %v537_v6 = vcvt.s32.f32 %v281_v11  ;;  %v122_v18 = vld [vmem:[%s4955_s0 + $0x100] sm:$0xff]  ;;  %v4202_v12 = vpack.c.bf16 %v536_v24, %v532_v22  ;;  %v374_v22 = vunpack.c.0.s8 %v145_v26 }
 0x101   :  { %v1658_v58 = vadd.f32 %v1657_v29, %v1489_v27  ;;  %1192 = vmatmul.bf16.gmra.mxu0 %v3816_v38 }
 0x102   :  { %1361 = vmatmul.bf16.gmra.mxu1 %v723_v60 }
 0x103   :  { %v2636_v9 = vmul.f32 %v2363_v36, %v1658_v58  ;;  %1530 = vmatmul.bf16.gmra.mxu2 %v4170_v43  ;;  %2017 = vmatpush.bf16.msra.mxu1 %v4003_v61  ;;  %v123_v61 = vld [vmem:[%s4955_s0 + $0x108] sm:$0xff] }
 0x104   :  { %1699 = vmatmul.bf16.gmra.mxu3 %v4172_v35 }
 0x105   :  { %v2704_v0 = vadd.f32 %v3963_v28, %v2636_v9  ;;  %v3354_v59 = vpop.eup %3353  ;;  %v2373_v9 = vpop.permute.xlu1 %2372 }
 0x106   :  { %v1491_v16 = vpop.f32.mrf.mxu2  ;;  %v1155_v60 = vpop.f32.mrf.mxu0 }
 0x107   :  { %v1660_v46 = vpop.f32.mrf.mxu3  ;;  %3355 = vtanh.f32 %v2704_v0  ;;  %v1492_v38 = vadd.f32 %v1491_v16, %v1323_v8  ;;  %v1324_v55 = vpop.f32.mrf.mxu1  ;;  %2018 = vmatpush.bf16.msra.mxu1 %v3967_v32  ;;  %v4204_v32 = vpack.c.bf16 %v537_v6, %v533_v62  ;;  %v2208_v8 = vld [vmem:[%s4956_s1 + $0xf8] sm:$0xff]  ;;  %v282_v16 = vunpack.c.0.s8 %v122_v18 }
 0x108   :  { %v1325_v40 = vadd.f32 %v1324_v55, %v1155_v60  ;;  %2462 = vperm.xlu1 %3330, %v2208_v8   ;;  %v310_v55 = vunpack.c.0.s8 %v4221_v2  ;;  %v289_v8 = vunpack.c.3.s8 %v123_v61 }
 0x109   :  { %v1661_v31 = vadd.f32 %v1660_v46, %v1492_v38  ;;  %5017 = vst [vmem:[#allocation22_spill] sm:$0xff] %v4204_v32  ;;  %v286_v46 = vunpack.c.0.s8 %v123_v61  ;;  %v144_v38 = vld [vmem:[%s4955_s0 + $0x1b0] sm:$0xff] }
 0x10a   :  { %v370_v11 = vunpack.c.0.s8 %v144_v38  ;;  %v538_v38 = vcvt.s32.f32 %v282_v16  ;;  %v4254_v16 = vld [vmem:[%s4955_s0 + $0x118] sm:$0xff] }
 0x10b   :  { %v2637_v33 = vmul.f32 %v2368_v57, %v1661_v31  ;;  %2019 = vmatpush.bf16.msra.mxu1 %v3923_v23  ;;  %v306_v23 = vunpack.c.0.s8 %v4216_v21  ;;  %v283_v57 = vunpack.c.1.s8 %v122_v18 }
 0x10c   :  { %v626_v62 = vcvt.s32.f32 %v370_v11 }
 0x10d   :  { %v3356_v13 = vpop.eup %3355  ;;  %v2705_v60 = vadd.f32 %v3963_v28, %v2637_v33  ;;  %v562_v24 = vcvt.s32.f32 %v306_v23  ;;  %v542_v23 = vcvt.s32.f32 %v286_v46 }
 0x10e   :  { %v3165_v29 = vpack.c.bf16 %v3356_v13, %v3354_v59  ;;  %v1493_v27 = vpop.f32.mrf.mxu2  ;;  %v1158_v36 = vpop.f32.mrf.mxu0  ;;  %v284_v59 = vunpack.c.2.s8 %v122_v18  ;;  %v288_v13 = vunpack.c.2.s8 %v123_v61 }
 0x10f   :  { %v1662_v25 = vpop.f32.mrf.mxu3  ;;  %v1494_v47 = vadd.f32 %v1493_v27, %v1325_v40  ;;  %v1327_v58 = vpop.f32.mrf.mxu1  ;;  %v630_v40 = vcvt.s32.f32 %v374_v22  ;;  %3357 = vtanh.f32 %v2705_v60  ;;  %v285_v27 = vunpack.c.3.s8 %v122_v18  ;;  %v4249_v22 = vld [vmem:[%s4955_s0 + $0x110] sm:$0xff] }
 0x110   :  { %3301 = vst [vmem:[%s4958_s5 + $0x28] sm:$0xff] %v3165_v29   ;;  %v1328_v1 = vadd.f32 %v1327_v58, %v1158_v36  ;;  %v540_v18 = vcvt.s32.f32 %v284_v59  ;;  %v544_v26 = vcvt.s32.f32 %v288_v13 }
 0x111   :  { %v1663_v0 = vadd.f32 %v1662_v25, %v1494_v47  ;;  %1197 = vmatmul.bf16.gmra.mxu0 %v3670_v19  ;;  %v287_v19 = vunpack.c.1.s8 %v123_v61  ;;  %v541_v61 = vcvt.s32.f32 %v285_v27 }
 0x112   :  { %1366 = vmatmul.bf16.gmra.mxu1 %v4156_v42  ;;  %v566_v42 = vcvt.s32.f32 %v310_v55  ;;  %v539_v55 = vcvt.s32.f32 %v283_v57  ;;  %v4256_v57 = vpack.c.bf16 %v542_v23, %v538_v38  ;;  %v4270_v59 = vpack.c.bf16 %v544_v26, %v540_v18  ;;  %v2383_v26 = vpop.permute.xlu0 %2382 }
 0x113   :  { %v2638_v31 = vmul.f32 %v2373_v9, %v1663_v0  ;;  %1535 = vmatmul.bf16.gmra.mxu2 %v4202_v12  ;;  %v4239_v9 = vpack.c.bf16 %v630_v40, %v626_v62  ;;  %v2206_v0 = vld [vmem:[%s4956_s1 + $0xe8] sm:$0xff]  ;;  %v543_v60 = vcvt.s32.f32 %v287_v19 }
 0x114   :  { %1704 = vmatmul.bf16.gmra.mxu3 %v4204_v32  ;;  %v4237_v25 = vpack.c.bf16 %v566_v42, %v562_v24  ;;  %2452 = vperm.xlu2 %3331, %v2206_v0   ;;  %v4263_v24 = vld [vmem:[%s4955_s0 + $0x120] sm:$0xff]  ;;  %v4268_v42 = vld [vmem:[%s4955_s0 + $0x128] sm:$0xff]  ;;  %5018 = vst [vmem:[#allocation23_spill] sm:$0xff] %v4270_v59  ;;  %v294_v0 = vunpack.c.0.s8 %v4254_v16 }
 0x115   :  { %v2706_v6 = vadd.f32 %v3963_v28, %v2638_v31  ;;  %1988 = vmatpush.bf16.msrb.mxu3 %v4239_v9  ;;  %v545_v31 = vcvt.s32.f32 %v289_v8  ;;  %v3358_v46 = vpop.eup %3357  ;;  %v4258_v19 = vpack.c.bf16 %v543_v60, %v539_v55  ;;  %v298_v13 = vunpack.c.0.s8 %v4263_v24 }
 0x116   :  { %v1496_v29 = vpop.f32.mrf.mxu2  ;;  %v1160_v36 = vpop.f32.mrf.mxu0  ;;  %1974 = vmatpush.bf16.msrb.mxu2 %v4237_v25  ;;  %v302_v40 = vunpack.c.0.s8 %v4268_v42  ;;  %v290_v8 = vunpack.c.0.s8 %v4249_v22 }
 0x117   :  { %v1665_v33 = vpop.f32.mrf.mxu3  ;;  %3359 = vtanh.f32 %v2706_v6  ;;  %v1497_v47 = vadd.f32 %v1496_v29, %v1328_v1  ;;  %v1329_v58 = vpop.f32.mrf.mxu1  ;;  %v4276_v60 = vpack.c.bf16 %v545_v31, %v541_v61  ;;  %v550_v31 = vcvt.s32.f32 %v294_v0 }
 0x118   :  { %v2378_v1 = vpop.permute.xlu2 %2377  ;;  %v1330_v6 = vadd.f32 %v1329_v58, %v1160_v36  ;;  %v2210_v36 = vld [vmem:[%s4956_s1 + $0x108] sm:$0xff]  ;;  %v554_v58 = vcvt.s32.f32 %v298_v13  ;;  %v558_v18 = vcvt.s32.f32 %v302_v40  ;;  %v546_v61 = vcvt.s32.f32 %v290_v8 }
 0x119   :  { %v1666_v11 = vadd.f32 %v1665_v33, %v1497_v47  ;;  %5019 = vst [vmem:[#allocation24_spill] sm:$0xff] %v4276_v60  ;;  %2472 = vperm.xlu0 %3329, %v2210_v36   ;;  %v291_v40 = vunpack.c.1.s8 %v4249_v22  ;;  %v292_v8 = vunpack.c.2.s8 %v4249_v22  ;;  %v296_v0 = vunpack.c.2.s8 %v4254_v16 }
 0x11a   :  { %v293_v36 = vunpack.c.3.s8 %v4249_v22 }
 0x11b   :  { %v2639_v33 = vmul.f32 %v2378_v1, %v1666_v11 }
 0x11d   :  { %v3360_v62 = vpop.eup %3359  ;;  %v2707_v1 = vadd.f32 %v3963_v28, %v2639_v33 }
 0x11e   :  { %v3170_v29 = vpack.c.bf16 %v3360_v62, %v3358_v46  ;;  %v1498_v27 = vpop.f32.mrf.mxu2  ;;  %v1163_v23 = vpop.f32.mrf.mxu0  ;;  %v4287_v46 = vpack.c.bf16 %v558_v18, %v554_v58  ;;  %v297_v58 = vunpack.c.3.s8 %v4254_v16  ;;  %v2211_v18 = vld [vmem:[%s4956_s1 + $0x110] sm:$0xff] }
 0x11f   :  { %v1667_v47 = vpop.f32.mrf.mxu3  ;;  %v1499_v38 = vadd.f32 %v1498_v27, %v1330_v6  ;;  %v1332_v55 = vpop.f32.mrf.mxu1  ;;  %3361 = vtanh.f32 %v2707_v1  ;;  %2477 = vperm.xlu1 %3330, %v2211_v18  }
 0x120   :  { %3302 = vst [vmem:[%s4958_s5 + $0x30] sm:$0xff] %v3170_v29   ;;  %v1333_v62 = vadd.f32 %v1332_v55, %v1163_v23  ;;  %1975 = vmatpush.bf16.msrb.mxu2 %v4287_v46  ;;  %v295_v29 = vunpack.c.1.s8 %v4254_v16 }
 0x121   :  { %v1668_v11 = vadd.f32 %v1667_v47, %v1499_v38  ;;  %1202 = vmatmul.bf16.gmra.mxu0 %v4256_v57  ;;  %v734_v47 = vpack.c.bf16 %v550_v31, %v546_v61  ;;  %v2388_v61 = vpop.permute.xlu1 %2387  ;;  %v548_v31 = vcvt.s32.f32 %v292_v8 }
 0x122   :  { %1371 = vmatmul.bf16.gmra.mxu1 %v4258_v19  ;;  %v551_v1 = vcvt.s32.f32 %v295_v29 }
 0x123   :  { %v2640_v6 = vmul.f32 %v2383_v26, %v1668_v11  ;;  %1540 = vmatmul.bf16.gmra.mxu2 %v4270_v59  ;;  %v547_v11 = vcvt.s32.f32 %v291_v40 }
 0x124   :  { %1709 = vmatmul.bf16.gmra.mxu3 %v4276_v60  ;;  %1976 = vmatpush.bf16.msrb.mxu2 %v734_v47 }
 0x125   :  { %v2708_v13 = vadd.f32 %v3963_v28, %v2640_v6  ;;  %v552_v6 = vcvt.s32.f32 %v296_v0  ;;  %v4303_v32 = vpack.c.bf16 %v551_v1, %v547_v11  ;;  %v2209_v0 = vld [vmem:[%s4956_s1 + $0x100] sm:$0xff] }
 0x126   :  { %v1501_v33 = vpop.f32.mrf.mxu2  ;;  %v1165_v23 = vpop.f32.mrf.mxu0  ;;  %2467 = vperm.xlu2 %3331, %v2209_v0  }
 0x127   :  { %v1670_v27 = vpop.f32.mrf.mxu3  ;;  %3363 = vtanh.f32 %v2708_v13  ;;  %v1502_v38 = vadd.f32 %v1501_v33, %v1333_v62  ;;  %v1334_v55 = vpop.f32.mrf.mxu1  ;;  %v549_v13 = vcvt.s32.f32 %v293_v36  ;;  %v553_v62 = vcvt.s32.f32 %v297_v58 }
 0x128   :  { %v3362_v33 = vpop.eup %3361  ;;  %1977 = vmatpush.bf16.msrb.mxu2 %v4256_v57  ;;  %v1335_v60 = vadd.f32 %v1334_v55, %v1165_v23  ;;  %v4305_v29 = vpack.c.bf16 %v552_v6, %v548_v31  ;;  %v2393_v57 = vpop.permute.xlu2 %2392  ;;  %v299_v36 = vunpack.c.1.s8 %v4263_v24  ;;  %v301_v31 = vunpack.c.3.s8 %v4263_v24 }
 0x129   :  { %v1671_v26 = vadd.f32 %v1670_v27, %v1502_v38  ;;  %v4307_v8 = vpack.c.bf16 %v553_v62, %v549_v13  ;;  %v305_v6 = vunpack.c.3.s8 %v4268_v42 }
 0x12a   :  { %5020 = vst [vmem:[#allocation25_spill] sm:$0xff] %v4305_v29  ;;  %v555_v62 = vcvt.s32.f32 %v299_v36 }
 0x12b   :  { %v2641_v4 = vmul.f32 %v2388_v61, %v1671_v26  ;;  %5021 = vst [vmem:[#allocation26_spill] sm:$0xff] %v4307_v8 }
 0x12d   :  { %v3364_v22 = vpop.eup %3363  ;;  %v2709_v23 = vadd.f32 %v3963_v28, %v2641_v4  ;;  %v300_v4 = vunpack.c.2.s8 %v4263_v24 }
 0x12e   :  { %v3175_v16 = vpack.c.bf16 %v3364_v22, %v3362_v33  ;;  %v1503_v45 = vpop.f32.mrf.mxu2  ;;  %v1168_v27 = vpop.f32.mrf.mxu0 }
 0x12f   :  { %v1672_v35 = vpop.f32.mrf.mxu3  ;;  %v1504_v18 = vadd.f32 %v1503_v45, %v1335_v60  ;;  %v1337_v40 = vpop.f32.mrf.mxu1  ;;  %3365 = vtanh.f32 %v2709_v23 }
 0x130   :  { %3303 = vst [vmem:[%s4958_s5 + $0x38] sm:$0xff] %v3175_v16   ;;  %v1338_v45 = vadd.f32 %v1337_v40, %v1168_v27  ;;  %v2398_v22 = vpop.permute.xlu0 %2397  ;;  %v556_v16 = vcvt.s32.f32 %v300_v4  ;;  %v557_v27 = vcvt.s32.f32 %v301_v31  ;;  %v561_v40 = vcvt.s32.f32 %v305_v6  ;;  %v2403_v4 = vpop.permute.xlu1 %2402 }
 0x131   :  { %v1673_v38 = vadd.f32 %v1672_v35, %v1504_v18  ;;  %1207 = vmatmul.bf16.gmra.mxu0 %v734_v47  ;;  %v303_v35 = vunpack.c.1.s8 %v4268_v42  ;;  %v304_v47 = vunpack.c.2.s8 %v4268_v42 }
 0x132   :  { %1376 = vmatmul.bf16.gmra.mxu1 %v4303_v32  ;;  %v4333_v36 = vpack.c.bf16 %v561_v40, %v557_v27 }
 0x133   :  { %v2642_v60 = vmul.f32 %v2393_v57, %v1673_v38  ;;  %1545 = vmatmul.bf16.gmra.mxu2 %v4305_v29  ;;  %v559_v33 = vcvt.s32.f32 %v303_v35  ;;  %v560_v18 = vcvt.s32.f32 %v304_v47  ;;  %v2214_v35 = vld [vmem:[%s4956_s1 + $0x128] sm:$0xff] }
 0x134   :  { %1714 = vmatmul.bf16.gmra.mxu3 %v4307_v8  ;;  %5022 = vst [vmem:[#allocation27_spill] sm:$0xff] %v4333_v36  ;;  %2492 = vperm.xlu1 %3330, %v2214_v35  }
 0x135   :  { %v2710_v55 = vadd.f32 %v3963_v28, %v2642_v60  ;;  %v2213_v28 = vld [vmem:[%s4956_s1 + $0x120] sm:$0xff]  ;;  %v3366_v0 = vpop.eup %3365  ;;  %v4329_v60 = vpack.c.bf16 %v559_v33, %v555_v62 }
 0x136   :  { %v1506_v58 = vpop.f32.mrf.mxu2  ;;  %v1170_v1 = vpop.f32.mrf.mxu0  ;;  %2487 = vperm.xlu0 %3329, %v2213_v28  }
 0x137   :  { %v1675_v26 = vpop.f32.mrf.mxu3  ;;  %3367 = vtanh.f32 %v2710_v55  ;;  %v1507_v11 = vadd.f32 %v1506_v58, %v1338_v45  ;;  %v1339_v61 = vpop.f32.mrf.mxu1 }
 0x138   :  { %v1340_v38 = vadd.f32 %v1339_v61, %v1170_v1 }
 0x139   :  { %v1676_v13 = vadd.f32 %v1675_v26, %v1507_v11  ;;  %v4331_v26 = vpack.c.bf16 %v560_v18, %v556_v16  ;;  %v4344_v11 = vld [vmem:[%s4957_s3] ss:$0 sm:$0xff]  ;;  %v308_v16 = vunpack.c.2.s8 %v4216_v21 }
 0x13b   :  { %v2643_v24 = vmul.f32 %v2398_v22, %v1676_v13  ;;  %v307_v13 = vunpack.c.1.s8 %v4216_v21  ;;  %v311_v22 = vunpack.c.1.s8 %v4221_v2 }
 0x13d   :  { %v3368_v57 = vpop.eup %3367  ;;  %v2711_v1 = vadd.f32 %v4344_v11, %v2643_v24  ;;  %v563_v24 = vcvt.s32.f32 %v307_v13 }
 0x13e   :  { %v3180_v23 = vpack.c.bf16 %v3368_v57, %v3366_v0  ;;  %v1508_v45 = vpop.f32.mrf.mxu2  ;;  %v1173_v58 = vpop.f32.mrf.mxu0  ;;  %v309_v0 = vunpack.c.3.s8 %v4216_v21  ;;  %v313_v57 = vunpack.c.3.s8 %v4221_v2 }
 0x13f   :  { %v1677_v42 = vpop.f32.mrf.mxu3  ;;  %v1509_v55 = vadd.f32 %v1508_v45, %v1340_v38  ;;  %v1342_v28 = vpop.f32.mrf.mxu1  ;;  %3369 = vtanh.f32 %v2711_v1  ;;  %v2212_v38 = vld [vmem:[%s4956_s1 + $0x118] sm:$0xff]  ;;  %v567_v45 = vcvt.s32.f32 %v311_v22 }
 0x140   :  { %3304 = vst [vmem:[%s4958_s5 + $0x40] sm:$0xff] %v3180_v23   ;;  %v1343_v61 = vadd.f32 %v1342_v28, %v1173_v58  ;;  %2482 = vperm.xlu2 %3331, %v2212_v38   ;;  %v565_v28 = vcvt.s32.f32 %v309_v0  ;;  %v569_v35 = vcvt.s32.f32 %v313_v57  ;;  %v2216_v22 = vld [vmem:[%s4956_s1 + $0x138] sm:$0xff] }
 0x141   :  { %v1678_v47 = vadd.f32 %v1677_v42, %v1509_v55  ;;  %1212 = vmatmul.bf16.gmra.mxu0 %v4287_v46  ;;  %v312_v46 = vunpack.c.2.s8 %v4221_v2  ;;  %v2408_v42 = vpop.permute.xlu2 %2407  ;;  %v564_v55 = vcvt.s32.f32 %v308_v16  ;;  %v2413_v16 = vpop.permute.xlu0 %2412  ;;  %2502 = vperm.xlu0 %3329, %v2216_v22  }
 0x142   :  { %1381 = vmatmul.bf16.gmra.mxu1 %v4329_v60  ;;  %v4365_v13 = vpack.c.bf16 %v569_v35, %v565_v28 }
 0x143   :  { %v2644_v31 = vmul.f32 %v2403_v4, %v1678_v47  ;;  %1550 = vmatmul.bf16.gmra.mxu2 %v4331_v26  ;;  %v568_v58 = vcvt.s32.f32 %v312_v46 }
 0x144   :  { %1719 = vmatmul.bf16.gmra.mxu3 %v4333_v36  ;;  %5023 = vst [vmem:[#allocation28_spill] sm:$0xff] %v4365_v13 }
 0x145   :  { %v2712_v6 = vadd.f32 %v4344_v11, %v2644_v31  ;;  %v3370_v4 = vpop.eup %3369 }
 0x146   :  { %v1511_v62 = vpop.f32.mrf.mxu2  ;;  %v1175_v27 = vpop.f32.mrf.mxu0 }
 0x147   :  { %v1680_v33 = vpop.f32.mrf.mxu3  ;;  %3371 = vtanh.f32 %v2712_v6  ;;  %v1512_v18 = vadd.f32 %v1511_v62, %v1343_v61  ;;  %v1344_v40 = vpop.f32.mrf.mxu1  ;;  %v4361_v6 = vpack.c.bf16 %v567_v45, %v563_v24 }
 0x148   :  { %v1345_v1 = vadd.f32 %v1344_v40, %v1175_v27  ;;  %v4381_v27 = vld [vmem:[%s4955_s0 + $0x1a8] sm:$0xff] }
 0x149   :  { %v1681_v23 = vadd.f32 %v1680_v33, %v1512_v18  ;;  %v4363_v33 = vpack.c.bf16 %v568_v58, %v564_v55  ;;  %v4376_v18 = vld [vmem:[%s4955_s0 + $0x1a0] sm:$0xff]  ;;  %v366_v57 = vunpack.c.0.s8 %v4381_v27  ;;  %v315_v58 = vunpack.c.1.s8 %v4071_v14 }
 0x14a   :  { %v362_v0 = vunpack.c.0.s8 %v4376_v18 }
 0x14b   :  { %v2645_v21 = vmul.f32 %v2408_v42, %v1681_v23  ;;  %v622_v42 = vcvt.s32.f32 %v366_v57  ;;  %v571_v22 = vcvt.s32.f32 %v315_v58 }
 0x14c   :  { %v618_v45 = vcvt.s32.f32 %v362_v0 }
 0x14d   :  { %v3372_v47 = vpop.eup %3371  ;;  %v2713_v40 = vadd.f32 %v4344_v11, %v2645_v21 }
 0x14e   :  { %v3185_v61 = vpack.c.bf16 %v3372_v47, %v3370_v4  ;;  %v1513_v31 = vpop.f32.mrf.mxu2  ;;  %v1178_v8 = vpop.f32.mrf.mxu0  ;;  %v316_v4 = vunpack.c.2.s8 %v4071_v14  ;;  %v4395_v47 = vpack.c.bf16 %v622_v42, %v618_v45 }
 0x14f   :  { %v1682_v2 = vpop.f32.mrf.mxu3  ;;  %v1514_v62 = vadd.f32 %v1513_v31, %v1345_v1  ;;  %v1347_v38 = vpop.f32.mrf.mxu1  ;;  %3373 = vtanh.f32 %v2713_v40  ;;  %v317_v31 = vunpack.c.3.s8 %v4071_v14 }
 0x150   :  { %3305 = vst [vmem:[%s4958_s5 + $0x48] sm:$0xff] %v3185_v61   ;;  %v1348_v23 = vadd.f32 %v1347_v38, %v1178_v8  ;;  %v320_v8 = vunpack.c.2.s8 %v4076_v30  ;;  %1989 = vmatpush.bf16.msrb.mxu3 %v4395_v47  ;;  %v572_v40 = vcvt.s32.f32 %v316_v4  ;;  %v2423_v4 = vpop.permute.xlu2 %2422 }
 0x151   :  { %v1683_v46 = vadd.f32 %v1682_v2, %v1514_v62  ;;  %1217 = vmatmul.bf16.gmra.mxu0 %v4237_v25  ;;  %v319_v25 = vunpack.c.1.s8 %v4076_v30  ;;  %v321_v2 = vunpack.c.3.s8 %v4076_v30  ;;  %v2217_v62 = vld [vmem:[%s4956_s1 + $0x140] sm:$0xff]  ;;  %v573_v57 = vcvt.s32.f32 %v317_v31  ;;  %v3464_v31 = vld [vmem:[%s4955_s0 + $0x150] sm:$0xff] }
 0x152   :  { %1386 = vmatmul.bf16.gmra.mxu1 %v4361_v6  ;;  %2507 = vperm.xlu1 %3330, %v2217_v62   ;;  %v576_v0 = vcvt.s32.f32 %v320_v8 }
 0x153   :  { %v2646_v24 = vmul.f32 %v2413_v16, %v1683_v46  ;;  %1555 = vmatmul.bf16.gmra.mxu2 %v4363_v33  ;;  %v575_v16 = vcvt.s32.f32 %v319_v25  ;;  %v2418_v46 = vpop.permute.xlu1 %2417  ;;  %v2215_v25 = vld [vmem:[%s4956_s1 + $0x130] sm:$0xff] }
 0x154   :  { %1724 = vmatmul.bf16.gmra.mxu3 %v4365_v13  ;;  %2497 = vperm.xlu2 %3331, %v2215_v25  }
 0x155   :  { %v2714_v55 = vadd.f32 %v4344_v11, %v2646_v24  ;;  %v3374_v24 = vpop.eup %3373  ;;  %v4403_v36 = vpack.c.bf16 %v575_v16, %v571_v22  ;;  %v324_v22 = vunpack.c.2.s8 %v3464_v31 }
 0x156   :  { %v1516_v28 = vpop.f32.mrf.mxu2  ;;  %v1180_v61 = vpop.f32.mrf.mxu0 }
 0x157   :  { %v1685_v35 = vpop.f32.mrf.mxu3  ;;  %3375 = vtanh.f32 %v2714_v55  ;;  %v1517_v1 = vadd.f32 %v1516_v28, %v1348_v23  ;;  %v1349_v21 = vpop.f32.mrf.mxu1  ;;  %v577_v23 = vcvt.s32.f32 %v321_v2  ;;  %v323_v2 = vunpack.c.1.s8 %v3464_v31 }
 0x158   :  { %v1350_v14 = vadd.f32 %v1349_v21, %v1180_v61 }
 0x159   :  { %v1686_v38 = vadd.f32 %v1685_v35, %v1517_v1  ;;  %v4405_v35 = vpack.c.bf16 %v576_v0, %v572_v40  ;;  %v4407_v58 = vpack.c.bf16 %v577_v23, %v573_v57  ;;  %v325_v23 = vunpack.c.3.s8 %v3464_v31  ;;  %v4435_v31 = vld [vmem:[%s4955_s0 + $0x170] sm:$0xff] }
 0x15b   :  { %v2647_v30 = vmul.f32 %v2418_v46, %v1686_v38  ;;  %5024 = vst [vmem:[#allocation29_spill] sm:$0xff] %v4407_v58  ;;  %v581_v25 = vcvt.s32.f32 %v325_v23 }
 0x15d   :  { %v3376_v45 = vpop.eup %3375  ;;  %v2715_v1 = vadd.f32 %v4344_v11, %v2647_v30  ;;  %v580_v30 = vcvt.s32.f32 %v324_v22 }
 0x15e   :  { %v3190_v42 = vpack.c.bf16 %v3376_v45, %v3374_v24  ;;  %v1518_v55 = vpop.f32.mrf.mxu2  ;;  %v1183_v59 = vpop.f32.mrf.mxu0  ;;  %v2219_v45 = vld [vmem:[%s4956_s1 + $0x150] sm:$0xff] }
 0x15f   :  { %v1687_v28 = vpop.f32.mrf.mxu3  ;;  %v1519_v13 = vadd.f32 %v1518_v55, %v1350_v14  ;;  %v1352_v62 = vpop.f32.mrf.mxu1  ;;  %3377 = vtanh.f32 %v2715_v1  ;;  %v579_v14 = vcvt.s32.f32 %v323_v2  ;;  %2517 = vperm.xlu0 %3329, %v2219_v45   ;;  %v339_v2 = vunpack.c.1.s8 %v4435_v31 }
 0x160   :  { %3306 = vst [vmem:[%s4958_s5 + $0x50] sm:$0xff] %v3190_v42   ;;  %v1353_v61 = vadd.f32 %v1352_v62, %v1183_v59  ;;  %v2428_v62 = vpop.permute.xlu0 %2427 }
 0x161   :  { %v1688_v8 = vadd.f32 %v1687_v28, %v1519_v13  ;;  %1222 = vmatmul.bf16.gmra.mxu0 %v4102_v48  ;;  %v3465_v13 = vld [vmem:[%s4955_s0 + $0x158] sm:$0xff] }
 0x162   :  { %1391 = vmatmul.bf16.gmra.mxu1 %v4403_v36  ;;  %v327_v38 = vunpack.c.1.s8 %v3465_v13  ;;  %v328_v16 = vunpack.c.2.s8 %v3465_v13  ;;  %v329_v24 = vunpack.c.3.s8 %v3465_v13  ;;  %v4441_v13 = vld [vmem:[%s4955_s0 + $0x178] sm:$0xff] }
 0x163   :  { %v2648_v21 = vmul.f32 %v2423_v4, %v1688_v8  ;;  %1560 = vmatmul.bf16.gmra.mxu2 %v4405_v35 }
 0x164   :  { %1729 = vmatmul.bf16.gmra.mxu3 %v4407_v58  ;;  %v583_v42 = vcvt.s32.f32 %v327_v38  ;;  %v584_v55 = vcvt.s32.f32 %v328_v16  ;;  %v585_v4 = vcvt.s32.f32 %v329_v24  ;;  %v343_v38 = vunpack.c.1.s8 %v4441_v13 }
 0x165   :  { %v2716_v48 = vadd.f32 %v4344_v11, %v2648_v21  ;;  %v3378_v8 = vpop.eup %3377 }
 0x166   :  { %v1521_v59 = vpop.f32.mrf.mxu2  ;;  %v1185_v0 = vpop.f32.mrf.mxu0  ;;  %v751_v1 = vpack.c.bf16 %v583_v42, %v579_v14  ;;  %v4450_v42 = vpack.c.bf16 %v585_v4, %v581_v25 }
 0x167   :  { %v1690_v46 = vpop.f32.mrf.mxu3  ;;  %3379 = vtanh.f32 %v2716_v48  ;;  %v1522_v40 = vadd.f32 %v1521_v59, %v1353_v61  ;;  %v1354_v57 = vpop.f32.mrf.mxu1  ;;  %v4430_v48 = vpack.c.bf16 %v584_v55, %v580_v30  ;;  %v2220_v30 = vld [vmem:[%s4956_s1 + $0x158] sm:$0xff]  ;;  %v595_v55 = vcvt.s32.f32 %v339_v2 }
 0x168   :  { %v1355_v21 = vadd.f32 %v1354_v57, %v1185_v0  ;;  %v3469_v57 = vld [vmem:[%s4955_s0 + $0x168] sm:$0xff]  ;;  %5025 = vst [vmem:[#allocation30_spill] sm:$0xff] %v4450_v42  ;;  %2522 = vperm.xlu1 %3330, %v2220_v30  }
 0x169   :  { %v1691_v28 = vadd.f32 %v1690_v46, %v1522_v40  ;;  %v3468_v40 = vld [vmem:[%s4955_s0 + $0x160] sm:$0xff]  ;;  %v335_v23 = vunpack.c.1.s8 %v3469_v57  ;;  %v2218_v30 = vld [vmem:[%s4956_s1 + $0x148] sm:$0xff] }
 0x16a   :  { %v331_v0 = vunpack.c.1.s8 %v3468_v40  ;;  %2512 = vperm.xlu2 %3331, %v2218_v30  }
 0x16b   :  { %v2649_v16 = vmul.f32 %v2428_v62, %v1691_v28  ;;  %v599_v28 = vcvt.s32.f32 %v343_v38  ;;  %v2433_v62 = vpop.permute.xlu1 %2432  ;;  %v591_v4 = vcvt.s32.f32 %v335_v23 }
 0x16c   :  { %v587_v25 = vcvt.s32.f32 %v331_v0 }
 0x16d   :  { %v3380_v61 = vpop.eup %3379 }
 0x16e   :  { %v3195_v22 = vpack.c.bf16 %v3380_v61, %v3378_v8  ;;  %v1523_v59 = vpop.f32.mrf.mxu2  ;;  %v1188_v45 = vpop.f32.mrf.mxu0  ;;  %v2717_v61 = vadd.f32 %v4344_v11, %v2649_v16  ;;  %v755_v16 = vpack.c.bf16 %v591_v4, %v587_v25 }
 0x16f   :  { %v1692_v46 = vpop.f32.mrf.mxu3  ;;  %v1524_v24 = vadd.f32 %v1523_v59, %v1355_v21  ;;  %v1357_v14 = vpop.f32.mrf.mxu1  ;;  %v4460_v21 = vpack.c.bf16 %v599_v28, %v595_v55 }
 0x170   :  { %3307 = vst [vmem:[%s4958_s5 + $0x58] sm:$0xff] %v3195_v22   ;;  %v1358_v59 = vadd.f32 %v1357_v14, %v1188_v45  ;;  %3381 = vtanh.f32 %v2717_v61  ;;  %v333_v45 = vunpack.c.3.s8 %v3468_v40  ;;  %v337_v14 = vunpack.c.3.s8 %v3469_v57  ;;  %v2438_v28 = vpop.permute.xlu2 %2437 }
 0x171   :  { %v1693_v8 = vadd.f32 %v1692_v46, %v1524_v24  ;;  %1227 = vmatmul.bf16.gmra.mxu0 %v3912_v50  ;;  %2026 = vmatpush.bf16.msra.mxu2 %v4460_v21  ;;  %v332_v50 = vunpack.c.2.s8 %v3468_v40  ;;  %v336_v46 = vunpack.c.2.s8 %v3469_v57 }
 0x172   :  { %1396 = vmatmul.bf16.gmra.mxu1 %v751_v1  ;;  %v589_v61 = vcvt.s32.f32 %v333_v45  ;;  %v593_v25 = vcvt.s32.f32 %v337_v14  ;;  %v340_v45 = vunpack.c.2.s8 %v4435_v31 }
 0x173   :  { %v2650_v58 = vmul.f32 %v2433_v62, %v1693_v8  ;;  %1565 = vmatmul.bf16.gmra.mxu2 %v4430_v48  ;;  %v588_v62 = vcvt.s32.f32 %v332_v50  ;;  %v592_v8 = vcvt.s32.f32 %v336_v46 }
 0x174   :  { %1734 = vmatmul.bf16.gmra.mxu3 %v4450_v42 }
 0x175   :  { %v2718_v2 = vadd.f32 %v4344_v11, %v2650_v58  ;;  %v2222_v58 = vld [vmem:[%s4956_s1 + $0x168] sm:$0xff]  ;;  %2027 = vmatpush.bf16.msra.mxu2 %v755_v16  ;;  %v4472_v39 = vpack.c.bf16 %v592_v8, %v588_v62  ;;  %v596_v62 = vcvt.s32.f32 %v340_v45 }
 0x176   :  { %v1526_v38 = vpop.f32.mrf.mxu2  ;;  %v1190_v23 = vpop.f32.mrf.mxu0  ;;  %2532 = vperm.xlu0 %3329, %v2222_v58   ;;  %v4474_v58 = vpack.c.bf16 %v593_v25, %v589_v61 }
 0x177   :  { %v1695_v22 = vpop.f32.mrf.mxu3  ;;  %3383 = vtanh.f32 %v2718_v2  ;;  %v1527_v0 = vadd.f32 %v1526_v38, %v1358_v59  ;;  %v1359_v24 = vpop.f32.mrf.mxu1 }
 0x178   :  { %v3382_v4 = vpop.eup %3381  ;;  %v1360_v57 = vadd.f32 %v1359_v24, %v1190_v23  ;;  %5026 = vst [vmem:[#allocation31_spill] sm:$0xff] %v4474_v58  ;;  %v2448_v25 = vpop.permute.xlu1 %2447 }
 0x179   :  { %v1696_v55 = vadd.f32 %v1695_v22, %v1527_v0  ;;  %2028 = vmatpush.bf16.msra.mxu2 %v751_v1  ;;  %v2443_v22 = vpop.permute.xlu0 %2442  ;;  %v2225_v1 = vld [vmem:[%s4956_s1 + $0x180] sm:$0xff] }
 0x17b   :  { %v2651_v2 = vmul.f32 %v2438_v28, %v1696_v55  ;;  %v345_v55 = vunpack.c.3.s8 %v4441_v13  ;;  %v2228_v28 = vld [vmem:[%s4956_s1 + $0x198] sm:$0xff] }
 0x17d   :  { %v3384_v40 = vpop.eup %3383  ;;  %2029 = vmatpush.bf16.msra.mxu2 %v4403_v36  ;;  %v2719_v46 = vadd.f32 %v4344_v11, %v2651_v2  ;;  %v344_v36 = vunpack.c.2.s8 %v4441_v13  ;;  %v4503_v13 = vld [vmem:[%s4955_s0 + $0x180] sm:$0xff] }
 0x17e   :  { %v3200_v59 = vpack.c.bf16 %v3384_v40, %v3382_v4  ;;  %v1528_v38 = vpop.f32.mrf.mxu2  ;;  %v1193_v15 = vpop.f32.mrf.mxu0  ;;  %2547 = vperm.xlu0 %3329, %v2225_v1   ;;  %v4508_v40 = vld [vmem:[%s4955_s0 + $0x188] sm:$0xff] }
 0x17f   :  { %v1697_v30 = vpop.f32.mrf.mxu3  ;;  %v1529_v42 = vadd.f32 %v1528_v38, %v1360_v57  ;;  %v1362_v29 = vpop.f32.mrf.mxu1  ;;  %3385 = vtanh.f32 %v2719_v46  ;;  %v600_v8 = vcvt.s32.f32 %v344_v36  ;;  %v350_v45 = vunpack.c.0.s8 %v4508_v40 }
 0x180   :  { %3308 = vst [vmem:[%s4958_s5 + $0x60] sm:$0xff] %v3200_v59   ;;  %v1363_v0 = vadd.f32 %v1362_v29, %v1193_v15  ;;  %v341_v29 = vunpack.c.3.s8 %v4435_v31  ;;  %v601_v31 = vcvt.s32.f32 %v345_v55  ;;  %v4518_v59 = vld [vmem:[%s4955_s0 + $0x198] sm:$0xff]  ;;  %v2226_v55 = vld [vmem:[%s4956_s1 + $0x188] sm:$0xff] }
 0x181   :  { %v1698_v50 = vadd.f32 %v1697_v30, %v1529_v42  ;;  %1232 = vmatmul.bf16.gmra.mxu0 %v3748_v37  ;;  %2030 = vmatpush.bf16.msra.mxu2 %v4361_v6  ;;  %v2223_v6 = vld [vmem:[%s4956_s1 + $0x170] sm:$0xff]  ;;  %v4521_v30 = vpack.c.bf16 %v600_v8, %v596_v62  ;;  %v358_v1 = vunpack.c.0.s8 %v4518_v59 }
 0x182   :  { %1401 = vmatmul.bf16.gmra.mxu1 %v755_v16  ;;  %2537 = vperm.xlu1 %3330, %v2223_v6   ;;  %v597_v4 = vcvt.s32.f32 %v341_v29  ;;  %v2453_v29 = vpop.permute.xlu2 %2452  ;;  %v2231_v6 = vld [vmem:[%s4956_s1 + $0x1b0] sm:$0xff] }
 0x183   :  { %v2652_v23 = vmul.f32 %v2443_v22, %v1698_v50  ;;  %1570 = vmatmul.bf16.gmra.mxu2 %v4472_v39 }
 0x184   :  { %1739 = vmatmul.bf16.gmra.mxu3 %v4474_v58 }
 0x185   :  { %v2720_v24 = vadd.f32 %v4344_v11, %v2652_v23  ;;  %2031 = vmatpush.bf16.msra.mxu2 %v4329_v60  ;;  %v3386_v57 = vpop.eup %3385  ;;  %v4513_v60 = vld [vmem:[%s4955_s0 + $0x190] sm:$0xff] }
 0x186   :  { %v1531_v42 = vpop.f32.mrf.mxu2  ;;  %v1195_v16 = vpop.f32.mrf.mxu0  ;;  %2562 = vperm.xlu0 %3329, %v2228_v28   ;;  %v354_v22 = vunpack.c.0.s8 %v4513_v60 }
 0x187   :  { %v1700_v14 = vpop.f32.mrf.mxu3  ;;  %3387 = vtanh.f32 %v2720_v24  ;;  %v1532_v37 = vadd.f32 %v1531_v42, %v1363_v0  ;;  %v1364_v15 = vpop.f32.mrf.mxu1  ;;  %v346_v24 = vunpack.c.0.s8 %v4503_v13 }
 0x188   :  { %v1365_v38 = vadd.f32 %v1364_v15, %v1195_v16  ;;  %v610_v16 = vcvt.s32.f32 %v354_v22  ;;  %v614_v15 = vcvt.s32.f32 %v358_v1  ;;  %v348_v22 = vunpack.c.2.s8 %v4503_v13 }
 0x189   :  { %v1701_v61 = vadd.f32 %v1700_v14, %v1532_v37  ;;  %2032 = vmatpush.bf16.msra.mxu2 %v4303_v32  ;;  %v4527_v32 = vpack.c.bf16 %v601_v31, %v597_v4  ;;  %v2221_v37 = vld [vmem:[%s4956_s1 + $0x160] sm:$0xff]  ;;  %v602_v8 = vcvt.s32.f32 %v346_v24  ;;  %v352_v1 = vunpack.c.2.s8 %v4508_v40 }
 0x18a   :  { %2527 = vperm.xlu2 %3331, %v2221_v37   ;;  %2552 = vperm.xlu1 %3330, %v2226_v55   ;;  %v353_v24 = vunpack.c.3.s8 %v4508_v40 }
 0x18b   :  { %v2653_v46 = vmul.f32 %v2448_v25, %v1701_v61  ;;  %5027 = vst [vmem:[#allocation32_spill] sm:$0xff] %v4527_v32  ;;  %v606_v61 = vcvt.s32.f32 %v350_v45  ;;  %v4545_v25 = vpack.c.bf16 %v614_v15, %v610_v16  ;;  %v2229_v45 = vld [vmem:[%s4956_s1 + $0x1a0] sm:$0xff]  ;;  %v2458_v16 = vpop.permute.xlu0 %2457  ;;  %v604_v15 = vcvt.s32.f32 %v348_v22  ;;  %v2224_v22 = vld [vmem:[%s4956_s1 + $0x178] sm:$0xff] }
 0x18c   :  { %v609_v55 = vcvt.s32.f32 %v353_v24 }
 0x18d   :  { %v3388_v2 = vpop.eup %3387  ;;  %2033 = vmatpush.bf16.msra.mxu2 %v4258_v19  ;;  %v2721_v62 = vadd.f32 %v4344_v11, %v2653_v46  ;;  %1990 = vmatpush.bf16.msrb.mxu3 %v4545_v25 }
 0x18e   :  { %v3205_v50 = vpack.c.bf16 %v3388_v2, %v3386_v57  ;;  %v1533_v0 = vpop.f32.mrf.mxu2  ;;  %v1198_v42 = vpop.f32.mrf.mxu0  ;;  %2577 = vperm.xlu0 %3329, %v2231_v6   ;;  %v347_v57 = vunpack.c.1.s8 %v4503_v13 }
 0x18f   :  { %v1702_v23 = vpop.f32.mrf.mxu3  ;;  %v1534_v36 = vadd.f32 %v1533_v0, %v1365_v38  ;;  %v1367_v14 = vpop.f32.mrf.mxu1  ;;  %3389 = vtanh.f32 %v2721_v62  ;;  %v762_v38 = vpack.c.bf16 %v606_v61, %v602_v8 }
 0x190   :  { %3309 = vst [vmem:[%s4958_s5 + $0x68] sm:$0xff] %v3205_v50   ;;  %v1368_v4 = vadd.f32 %v1367_v14, %v1198_v42  ;;  %v603_v14 = vcvt.s32.f32 %v347_v57 }
 0x191   :  { %v1703_v28 = vadd.f32 %v1702_v23, %v1534_v36  ;;  %1237 = vmatmul.bf16.gmra.mxu0 %v3662_v17  ;;  %v351_v17 = vunpack.c.1.s8 %v4508_v40  ;;  %v349_v23 = vunpack.c.3.s8 %v4503_v13  ;;  %v2234_v36 = vld [vmem:[%s4956_s1 + $0x1c8] sm:$0xff]  ;;  %1991 = vmatpush.bf16.msrb.mxu3 %v762_v38 }
 0x192   :  { %1406 = vmatmul.bf16.gmra.mxu1 %v4460_v21  ;;  %2567 = vperm.xlu1 %3330, %v2229_v45  }
 0x193   :  { %v2654_v31 = vmul.f32 %v2453_v29, %v1703_v28  ;;  %1575 = vmatmul.bf16.gmra.mxu2 %v4521_v30  ;;  %v607_v37 = vcvt.s32.f32 %v351_v17  ;;  %v608_v29 = vcvt.s32.f32 %v352_v1  ;;  %v605_v13 = vcvt.s32.f32 %v349_v23  ;;  %v2463_v17 = vpop.permute.xlu1 %2462  ;;  %v2232_v1 = vld [vmem:[%s4956_s1 + $0x1b8] sm:$0xff]  ;;  %2542 = vperm.xlu2 %3331, %v2224_v22  }
 0x194   :  { %1744 = vmatmul.bf16.gmra.mxu3 %v4527_v32 }
 0x195   :  { %v2722_v19 = vadd.f32 %v4344_v11, %v2654_v31  ;;  %v3390_v40 = vpop.eup %3389  ;;  %v4563_v31 = vpack.c.bf16 %v607_v37, %v603_v14  ;;  %v4567_v57 = vpack.c.bf16 %v609_v55, %v605_v13 }
 0x196   :  { %v1536_v21 = vpop.f32.mrf.mxu2  ;;  %v1200_v46 = vpop.f32.mrf.mxu0  ;;  %2592 = vperm.xlu0 %3329, %v2234_v36  }
 0x197   :  { %v1705_v2 = vpop.f32.mrf.mxu3  ;;  %3391 = vtanh.f32 %v2722_v19  ;;  %v1537_v50 = vadd.f32 %v1536_v21, %v1368_v4  ;;  %v1369_v0 = vpop.f32.mrf.mxu1  ;;  %5029 = vst [vmem:[#allocation34_spill] sm:$0xff] %v4567_v57 }
 0x198   :  { %v1370_v28 = vadd.f32 %v1369_v0, %v1200_v46  ;;  %v2237_v46 = vld [vmem:[%s4956_s1 + $0x1e0] sm:$0xff] }
 0x199   :  { %v1706_v42 = vadd.f32 %v1705_v2, %v1537_v50  ;;  %v4565_v2 = vpack.c.bf16 %v608_v29, %v604_v15  ;;  %v360_v15 = vunpack.c.2.s8 %v4518_v59 }
 0x19a   :  { %2582 = vperm.xlu1 %3330, %v2232_v1  }
 0x19b   :  { %v2655_v8 = vmul.f32 %v2458_v16, %v1706_v42  ;;  %5028 = vst [vmem:[#allocation33_spill] sm:$0xff] %v4565_v2  ;;  %v355_v42 = vunpack.c.1.s8 %v4513_v60  ;;  %v359_v16 = vunpack.c.1.s8 %v4518_v59 }
 0x19d   :  { %v3392_v6 = vpop.eup %3391  ;;  %v2723_v0 = vadd.f32 %v4344_v11, %v2655_v8  ;;  %v2240_v8 = vld [vmem:[%s4956_s1 + $0x1f8] sm:$0xff] }
 0x19e   :  { %v3210_v62 = vpack.c.bf16 %v3392_v6, %v3390_v40  ;;  %v1538_v61 = vpop.f32.mrf.mxu2  ;;  %v1203_v21 = vpop.f32.mrf.mxu0  ;;  %2607 = vperm.xlu0 %3329, %v2237_v46   ;;  %v357_v40 = vunpack.c.3.s8 %v4513_v60  ;;  %v361_v6 = vunpack.c.3.s8 %v4518_v59  ;;  %v616_v59 = vcvt.s32.f32 %v360_v15  ;;  %v2230_v15 = vld [vmem:[%s4956_s1 + $0x1a8] sm:$0xff] }
 0x19f   :  { %v1707_v4 = vpop.f32.mrf.mxu3  ;;  %v1539_v19 = vadd.f32 %v1538_v61, %v1370_v28  ;;  %v1372_v45 = vpop.f32.mrf.mxu1  ;;  %3393 = vtanh.f32 %v2723_v0  ;;  %v2227_v28 = vld [vmem:[%s4956_s1 + $0x190] sm:$0xff] }
 0x1a0   :  { %3310 = vst [vmem:[%s4958_s5 + $0x70] sm:$0xff] %v3210_v62   ;;  %v1373_v23 = vadd.f32 %v1372_v45, %v1203_v21  ;;  %v2235_v62 = vld [vmem:[%s4956_s1 + $0x1d0] sm:$0xff]  ;;  %2557 = vperm.xlu2 %3331, %v2227_v28   ;;  %v613_v45 = vcvt.s32.f32 %v357_v40 }
 0x1a1   :  { %v1708_v50 = vadd.f32 %v1707_v4, %v1539_v19  ;;  %1242 = vmatmul.bf16.gmra.mxu0 %v762_v38  ;;  %v356_v38 = vunpack.c.2.s8 %v4513_v60  ;;  %v611_v4 = vcvt.s32.f32 %v355_v42  ;;  %v615_v19 = vcvt.s32.f32 %v359_v16  ;;  %v2468_v60 = vpop.permute.xlu2 %2467 }
 0x1a2   :  { %1411 = vmatmul.bf16.gmra.mxu1 %v4563_v31  ;;  %2597 = vperm.xlu1 %3330, %v2235_v62  }
 0x1a3   :  { %v2656_v24 = vmul.f32 %v2463_v17, %v1708_v50  ;;  %1580 = vmatmul.bf16.gmra.mxu2 %v4565_v2  ;;  %v612_v21 = vcvt.s32.f32 %v356_v38  ;;  %v617_v17 = vcvt.s32.f32 %v361_v6  ;;  %v2473_v38 = vpop.permute.xlu0 %2472 }
 0x1a4   :  { %1749 = vmatmul.bf16.gmra.mxu3 %v4567_v57 }
 0x1a5   :  { %v2724_v36 = vadd.f32 %v4344_v11, %v2656_v24  ;;  %v3394_v22 = vpop.eup %3393  ;;  %v4603_v42 = vpack.c.bf16 %v616_v59, %v612_v21  ;;  %v4605_v16 = vpack.c.bf16 %v617_v17, %v613_v45  ;;  %v365_v17 = vunpack.c.3.s8 %v4376_v18 }
 0x1a6   :  { %v1541_v14 = vpop.f32.mrf.mxu2  ;;  %v1205_v13 = vpop.f32.mrf.mxu0  ;;  %2622 = vperm.xlu0 %3329, %v2240_v8   ;;  %v363_v8 = vunpack.c.1.s8 %v4376_v18 }
 0x1a7   :  { %v1710_v37 = vpop.f32.mrf.mxu3  ;;  %3395 = vtanh.f32 %v2724_v36  ;;  %v1542_v29 = vadd.f32 %v1541_v14, %v1373_v23  ;;  %v1374_v55 = vpop.f32.mrf.mxu1  ;;  %v4601_v36 = vpack.c.bf16 %v615_v19, %v611_v4  ;;  %5030 = vst [vmem:[#allocation35_spill] sm:$0xff] %v4603_v42  ;;  %v367_v19 = vunpack.c.1.s8 %v4381_v27 }
 0x1a8   :  { %v1375_v50 = vadd.f32 %v1374_v55, %v1205_v13  ;;  %5031 = vst [vmem:[#allocation36_spill] sm:$0xff] %v4605_v16  ;;  %2572 = vperm.xlu2 %3331, %v2230_v15  }
 0x1a9   :  { %v1711_v61 = vadd.f32 %v1710_v37, %v1542_v29  ;;  %v2238_v29 = vld [vmem:[%s4956_s1 + $0x1e8] sm:$0xff] }
 0x1aa   :  { %2612 = vperm.xlu1 %3330, %v2238_v29  }
 0x1ab   :  { %v2657_v0 = vmul.f32 %v2468_v60, %v1711_v61  ;;  %v364_v60 = vunpack.c.2.s8 %v4376_v18 }
 0x1ad   :  { %v3396_v1 = vpop.eup %3395  ;;  %v2725_v55 = vadd.f32 %v4344_v11, %v2657_v0  ;;  %v623_v0 = vcvt.s32.f32 %v367_v19  ;;  %v2483_v19 = vpop.permute.xlu2 %2482 }
 0x1ae   :  { %v3215_v46 = vpack.c.bf16 %v3396_v1, %v3394_v22  ;;  %v1543_v23 = vpop.f32.mrf.mxu2  ;;  %v1208_v28 = vpop.f32.mrf.mxu0  ;;  %v369_v22 = vunpack.c.3.s8 %v4381_v27  ;;  %v2233_v1 = vld [vmem:[%s4956_s1 + $0x1c0] sm:$0xff] }
 0x1af   :  { %v1712_v24 = vpop.f32.mrf.mxu3  ;;  %v1544_v14 = vadd.f32 %v1543_v23, %v1375_v50  ;;  %v1377_v37 = vpop.f32.mrf.mxu1  ;;  %3397 = vtanh.f32 %v2725_v55 }
 0x1b0   :  { %3311 = vst [vmem:[%s4958_s5 + $0x78] sm:$0xff] %v3215_v46   ;;  %v1378_v40 = vadd.f32 %v1377_v37, %v1208_v28  ;;  %2587 = vperm.xlu2 %3331, %v2233_v1   ;;  %v619_v46 = vcvt.s32.f32 %v363_v8  ;;  %v2478_v23 = vpop.permute.xlu1 %2477  ;;  %v621_v28 = vcvt.s32.f32 %v365_v17  ;;  %v625_v37 = vcvt.s32.f32 %v369_v22  ;;  %v3470_v22 = vld [vmem:[%s4955_s0 + $0x1b0] sm:$0xff] }
 0x1b1   :  { %v1713_v13 = vadd.f32 %v1712_v24, %v1544_v14  ;;  %1247 = vmatmul.bf16.gmra.mxu0 %v4545_v25  ;;  %v368_v25 = vunpack.c.2.s8 %v4381_v27  ;;  %v620_v24 = vcvt.s32.f32 %v364_v60  ;;  %v2236_v60 = vld [vmem:[%s4956_s1 + $0x1d8] sm:$0xff]  ;;  %v371_v1 = vunpack.c.1.s8 %v3470_v22 }
 0x1b2   :  { %1416 = vmatmul.bf16.gmra.mxu1 %v4601_v36  ;;  %v4635_v8 = vpack.c.bf16 %v625_v37, %v621_v28 }
 0x1b3   :  { %v2658_v6 = vmul.f32 %v2473_v38, %v1713_v13  ;;  %1585 = vmatmul.bf16.gmra.mxu2 %v4603_v42  ;;  %v624_v14 = vcvt.s32.f32 %v368_v25 }
 0x1b4   :  { %1754 = vmatmul.bf16.gmra.mxu3 %v4605_v16  ;;  %5032 = vst [vmem:[#allocation37_spill] sm:$0xff] %v4635_v8 }
 0x1b5   :  { %v2726_v62 = vadd.f32 %v4344_v11, %v2658_v6  ;;  %v3398_v38 = vpop.eup %3397 }
 0x1b6   :  { %v1546_v61 = vpop.f32.mrf.mxu2  ;;  %v1210_v59 = vpop.f32.mrf.mxu0 }
 0x1b7   :  { %v1715_v4 = vpop.f32.mrf.mxu3  ;;  %3399 = vtanh.f32 %v2726_v62  ;;  %v1547_v21 = vadd.f32 %v1546_v61, %v1378_v40  ;;  %v1379_v45 = vpop.f32.mrf.mxu1  ;;  %v4631_v40 = vpack.c.bf16 %v623_v0, %v619_v46 }
 0x1b8   :  { %v1380_v29 = vadd.f32 %v1379_v45, %v1210_v59  ;;  %2602 = vperm.xlu2 %3331, %v2236_v60  }
 0x1b9   :  { %v1716_v50 = vadd.f32 %v1715_v4, %v1547_v21  ;;  %v4633_v4 = vpack.c.bf16 %v624_v14, %v620_v24 }
 0x1bb   :  { %v2659_v18 = vmul.f32 %v2478_v23, %v1716_v50  ;;  %v372_v23 = vunpack.c.2.s8 %v3470_v22 }
 0x1bd   :  { %v3400_v15 = vpop.eup %3399  ;;  %v2727_v21 = vadd.f32 %v4344_v11, %v2659_v18  ;;  %v627_v18 = vcvt.s32.f32 %v371_v1 }
 0x1be   :  { %v3220_v13 = vpack.c.bf16 %v3400_v15, %v3398_v38  ;;  %v1548_v55 = vpop.f32.mrf.mxu2  ;;  %v1213_v62 = vpop.f32.mrf.mxu0  ;;  %v373_v38 = vunpack.c.3.s8 %v3470_v22 }
 0x1bf   :  { %v1717_v27 = vpop.f32.mrf.mxu3  ;;  %v1549_v6 = vadd.f32 %v1548_v55, %v1380_v29  ;;  %v1382_v61 = vpop.f32.mrf.mxu1  ;;  %3401 = vtanh.f32 %v2727_v21  ;;  %v2239_v29 = vld [vmem:[%s4956_s1 + $0x1f0] sm:$0xff] }
 0x1c0   :  { %3312 = vst [vmem:[%s4958_s5 + $0x80] sm:$0xff] %v3220_v13   ;;  %v1383_v59 = vadd.f32 %v1382_v61, %v1213_v62  ;;  %2617 = vperm.xlu2 %3331, %v2239_v29   ;;  %v629_v61 = vcvt.s32.f32 %v373_v38  ;;  %v3472_v38 = vld [vmem:[%s4955_s0 + $0x1c0] sm:$0xff] }
 0x1c1   :  { %v1718_v25 = vadd.f32 %v1717_v27, %v1549_v6  ;;  %1252 = vmatmul.bf16.gmra.mxu0 %v4395_v47  ;;  %v3471_v47 = vld [vmem:[%s4955_s0 + $0x1b8] sm:$0xff]  ;;  %v2488_v27 = vpop.permute.xlu0 %2487  ;;  %v628_v6 = vcvt.s32.f32 %v372_v23 }
 0x1c2   :  { %1421 = vmatmul.bf16.gmra.mxu1 %v4631_v40  ;;  %v375_v0 = vunpack.c.1.s8 %v3471_v47  ;;  %v376_v24 = vunpack.c.2.s8 %v3471_v47  ;;  %v377_v15 = vunpack.c.3.s8 %v3471_v47 }
 0x1c3   :  { %v2660_v45 = vmul.f32 %v2483_v19, %v1718_v25  ;;  %1590 = vmatmul.bf16.gmra.mxu2 %v4633_v4 }
 0x1c4   :  { %1759 = vmatmul.bf16.gmra.mxu3 %v4635_v8  ;;  %v631_v55 = vcvt.s32.f32 %v375_v0  ;;  %v632_v62 = vcvt.s32.f32 %v376_v24  ;;  %v633_v19 = vcvt.s32.f32 %v377_v15  ;;  %v2493_v0 = vpop.permute.xlu1 %2492  ;;  %v379_v15 = vunpack.c.1.s8 %v3472_v38 }
 0x1c5   :  { %v2728_v17 = vadd.f32 %v4344_v11, %v2660_v45  ;;  %v3402_v60 = vpop.eup %3401 }
 0x1c6   :  { %v1551_v50 = vpop.f32.mrf.mxu2  ;;  %v1215_v28 = vpop.f32.mrf.mxu0  ;;  %v4662_v1 = vpack.c.bf16 %v633_v19, %v629_v61 }
 0x1c7   :  { %v1720_v46 = vpop.f32.mrf.mxu3  ;;  %3403 = vtanh.f32 %v2728_v17  ;;  %v1552_v14 = vadd.f32 %v1551_v50, %v1383_v59  ;;  %v1384_v37 = vpop.f32.mrf.mxu1  ;;  %v4658_v50 = vpack.c.bf16 %v631_v55, %v627_v18  ;;  %v380_v55 = vunpack.c.2.s8 %v3472_v38 }
 0x1c8   :  { %v1385_v21 = vadd.f32 %v1384_v37, %v1215_v28  ;;  %5033 = vst [vmem:[#allocation38_spill] sm:$0xff] %v4662_v1 }
 0x1c9   :  { %v1721_v13 = vadd.f32 %v1720_v46, %v1552_v14  ;;  %v4660_v46 = vpack.c.bf16 %v632_v62, %v628_v6 }
 0x1cb   :  { %v2661_v45 = vmul.f32 %v2488_v27, %v1721_v13 }
 0x1cd   :  { %v3404_v25 = vpop.eup %3403  ;;  %v2729_v24 = vadd.f32 %v4344_v11, %v2661_v45  ;;  %v636_v45 = vcvt.s32.f32 %v380_v55 }
 0x1ce   :  { %v3225_v59 = vpack.c.bf16 %v3404_v25, %v3402_v60  ;;  %v1553_v17 = vpop.f32.mrf.mxu2  ;;  %v1218_v57 = vpop.f32.mrf.mxu0  ;;  %v635_v25 = vcvt.s32.f32 %v379_v15 }
 0x1cf   :  { %v1722_v22 = vpop.f32.mrf.mxu3  ;;  %v1554_v47 = vadd.f32 %v1553_v17, %v1385_v21  ;;  %v1387_v29 = vpop.f32.mrf.mxu1  ;;  %3405 = vtanh.f32 %v2729_v24 }
 0x1d0   :  { %3313 = vst [vmem:[%s4958_s5 + $0x88] sm:$0xff] %v3225_v59   ;;  %v1388_v14 = vadd.f32 %v1387_v29, %v1218_v57  ;;  %v2498_v59 = vpop.permute.xlu2 %2497 }
 0x1d1   :  { %v1723_v23 = vadd.f32 %v1722_v22, %v1554_v47  ;;  %1257 = vmatmul.bf16.gmra.mxu0 %v4239_v9  ;;  %v3473_v9 = vld [vmem:[%s4955_s0 + $0x1c8] sm:$0xff] }
 0x1d2   :  { %1426 = vmatmul.bf16.gmra.mxu1 %v4658_v50  ;;  %v383_v57 = vunpack.c.1.s8 %v3473_v9  ;;  %v384_v27 = vunpack.c.2.s8 %v3473_v9  ;;  %v385_v19 = vunpack.c.3.s8 %v3473_v9 }
 0x1d3   :  { %v2662_v28 = vmul.f32 %v2493_v0, %v1723_v23  ;;  %1595 = vmatmul.bf16.gmra.mxu2 %v4660_v46 }
 0x1d4   :  { %1764 = vmatmul.bf16.gmra.mxu3 %v4662_v1  ;;  %v639_v21 = vcvt.s32.f32 %v383_v57  ;;  %v640_v17 = vcvt.s32.f32 %v384_v27  ;;  %v641_v47 = vcvt.s32.f32 %v385_v19  ;;  %v2503_v57 = vpop.permute.xlu0 %2502  ;;  %v4691_v27 = vld [vmem:[%s4955_s0 + $0x1f0] sm:$0xff]  ;;  %v4711_v19 = vld [vmem:[%s4955_s0 + $0x1e8] sm:$0xff] }
 0x1d5   :  { %v2730_v37 = vadd.f32 %v4344_v11, %v2662_v28  ;;  %v381_v11 = vunpack.c.3.s8 %v3472_v38  ;;  %v3406_v29 = vpop.eup %3405 }
 0x1d6   :  { %v1556_v13 = vpop.f32.mrf.mxu2  ;;  %v1220_v62 = vpop.f32.mrf.mxu0 }
 0x1d7   :  { %v1725_v18 = vpop.f32.mrf.mxu3  ;;  %3407 = vtanh.f32 %v2730_v37  ;;  %v1557_v6 = vadd.f32 %v1556_v13, %v1388_v14  ;;  %v1389_v61 = vpop.f32.mrf.mxu1  ;;  %v637_v22 = vcvt.s32.f32 %v381_v11  ;;  %v4679_v14 = vpack.c.bf16 %v639_v21, %v635_v25 }
 0x1d8   :  { %v1390_v23 = vadd.f32 %v1389_v61, %v1220_v62  ;;  %v4705_v61 = vld [vmem:[%s4955_s0 + $0x1e0] sm:$0xff] }
 0x1d9   :  { %v1726_v60 = vadd.f32 %v1725_v18, %v1557_v6  ;;  %v4681_v18 = vpack.c.bf16 %v640_v17, %v636_v45  ;;  %v4683_v15 = vpack.c.bf16 %v641_v47, %v637_v22  ;;  %v403_v6 = vunpack.c.1.s8 %v4691_v27  ;;  %v3479_v17 = vld [vmem:[%s4955_s0 + $0x1d0] sm:$0xff] }
 0x1da   :  { %v395_v11 = vunpack.c.1.s8 %v4705_v61  ;;  %v387_v22 = vunpack.c.1.s8 %v3479_v17  ;;  %v389_v8 = vunpack.c.3.s8 %v3479_v17 }
 0x1db   :  { %v2663_v28 = vmul.f32 %v2498_v59, %v1726_v60  ;;  %5034 = vst [vmem:[#allocation39_spill] sm:$0xff] %v4683_v15  ;;  %v399_v60 = vunpack.c.1.s8 %v4711_v19  ;;  %v659_v45 = vcvt.s32.f32 %v403_v6 }
 0x1dd   :  { %v3408_v0 = vpop.eup %3407 }
 0x1de   :  { %v3230_v24 = vpack.c.bf16 %v3408_v0, %v3406_v29  ;;  %v1558_v16 = vpop.f32.mrf.mxu2  ;;  %v1223_v38 = vpop.f32.mrf.mxu0  ;;  %v3480_v0 = vld [vmem:[%s4955_s0 + $0x1d8] sm:$0xff] }
 0x1df   :  { %v1727_v37 = vpop.f32.mrf.mxu3  ;;  %v1559_v13 = vadd.f32 %v1558_v16, %v1390_v23  ;;  %v1392_v9 = vpop.f32.mrf.mxu1  ;;  %v4697_v16 = vld [vmem:[%s4957_s3] ss:$0 sm:$0xff]  ;;  %v391_v23 = vunpack.c.1.s8 %v3480_v0 }
 0x1e0   :  { %3314 = vst [vmem:[%s4958_s5 + $0x90] sm:$0xff] %v3230_v24   ;;  %v2731_v62 = vadd.f32 %v4697_v16, %v2663_v28  ;;  %v1393_v21 = vadd.f32 %v1392_v9, %v1223_v38  ;;  %v388_v24 = vunpack.c.2.s8 %v3479_v17  ;;  %v392_v28 = vunpack.c.2.s8 %v3480_v0 }
 0x1e1   :  { %v1728_v55 = vadd.f32 %v1727_v37, %v1559_v13  ;;  %1262 = vmatmul.bf16.gmra.mxu0 %v4105_v41  ;;  %v4717_v41 = vld [vmem:[%s4955_s0 + $0x1f8] sm:$0xff]  ;;  %v651_v38 = vcvt.s32.f32 %v395_v11  ;;  %v655_v9 = vcvt.s32.f32 %v399_v60  ;;  %v647_v58 = vcvt.s32.f32 %v391_v23 }
 0x1e2   :  { %1431 = vmatmul.bf16.gmra.mxu1 %v4679_v14  ;;  %v407_v25 = vunpack.c.1.s8 %v4717_v41  ;;  %3409 = vtanh.f32 %v2731_v62  ;;  %v2508_v62 = vpop.permute.xlu1 %2507  ;;  %v644_v2 = vcvt.s32.f32 %v388_v24  ;;  %v648_v42 = vcvt.s32.f32 %v392_v28 }
 0x1e3   :  { %v2664_v59 = vmul.f32 %v2503_v57, %v1728_v55  ;;  %1600 = vmatmul.bf16.gmra.mxu2 %v4681_v18  ;;  %v4732_v32 = vpack.c.bf16 %v655_v9, %v651_v38  ;;  %v645_v11 = vcvt.s32.f32 %v389_v8  ;;  %v2513_v8 = vpop.permute.xlu2 %2512 }
 0x1e4   :  { %1769 = vmatmul.bf16.gmra.mxu3 %v4683_v15  ;;  %v663_v47 = vcvt.s32.f32 %v407_v25  ;;  %v643_v15 = vcvt.s32.f32 %v387_v22  ;;  %v4735_v38 = vpack.c.bf16 %v648_v42, %v644_v2 }
 0x1e5   :  { %v2732_v29 = vadd.f32 %v4697_v16, %v2664_v59  ;;  %v393_v59 = vunpack.c.3.s8 %v3480_v0 }
 0x1e6   :  { %v1561_v37 = vpop.f32.mrf.mxu2  ;;  %v4729_v57 = vpack.c.bf16 %v663_v47, %v659_v45  ;;  %v1225_v6 = vpop.f32.mrf.mxu0  ;;  %v783_v44 = vpack.c.bf16 %v647_v58, %v643_v15 }
 0x1e7   :  { %v1730_v13 = vpop.f32.mrf.mxu3  ;;  %3411 = vtanh.f32 %v2732_v29  ;;  %v1562_v55 = vadd.f32 %v1561_v37, %v1393_v21  ;;  %v1394_v25 = vpop.f32.mrf.mxu1  ;;  %v649_v60 = vcvt.s32.f32 %v393_v59  ;;  %v397_v59 = vunpack.c.3.s8 %v4705_v61 }
 0x1e8   :  { %2040 = vmatpush.bf16.msra.mxu3 %v4729_v57  ;;  %v3410_v45 = vpop.eup %3409  ;;  %v1395_v47 = vadd.f32 %v1394_v25, %v1225_v6  ;;  %v400_v6 = vunpack.c.2.s8 %v4711_v19 }
 0x1e9   :  { %v1731_v1 = vadd.f32 %v1730_v13, %v1562_v55  ;;  %v4737_v9 = vpack.c.bf16 %v649_v60, %v645_v11  ;;  %v396_v55 = vunpack.c.2.s8 %v4705_v61  ;;  %v2518_v11 = vpop.permute.xlu0 %2517 }
 0x1eb   :  { %v2665_v17 = vmul.f32 %v2508_v62, %v1731_v1  ;;  %v401_v62 = vunpack.c.3.s8 %v4711_v19  ;;  %v652_v60 = vcvt.s32.f32 %v396_v55  ;;  %v404_v55 = vunpack.c.2.s8 %v4691_v27 }
 0x1ec   :  { %2041 = vmatpush.bf16.msra.mxu3 %v4732_v32 }
 0x1ed   :  { %v3412_v21 = vpop.eup %3411  ;;  %v2733_v28 = vadd.f32 %v4697_v16, %v2665_v17 }
 0x1ee   :  { %v3235_v29 = vpack.c.bf16 %v3412_v21, %v3410_v45  ;;  %v1563_v0 = vpop.f32.mrf.mxu2  ;;  %v1228_v22 = vpop.f32.mrf.mxu0  ;;  %v656_v45 = vcvt.s32.f32 %v400_v6  ;;  %v653_v21 = vcvt.s32.f32 %v397_v59  ;;  %v408_v6 = vunpack.c.2.s8 %v4717_v41 }
 0x1ef   :  { %v1732_v37 = vpop.f32.mrf.mxu3  ;;  %v1564_v13 = vadd.f32 %v1563_v0, %v1395_v47  ;;  %v1397_v23 = vpop.f32.mrf.mxu1  ;;  %3413 = vtanh.f32 %v2733_v28  ;;  %v657_v47 = vcvt.s32.f32 %v401_v62 }
 0x1f0   :  { %3315 = vst [vmem:[%s4958_s5 + $0x98] sm:$0xff] %v3235_v29   ;;  %2042 = vmatpush.bf16.msra.mxu3 %v783_v44  ;;  %v1398_v58 = vadd.f32 %v1397_v23, %v1228_v22  ;;  %v2523_v28 = vpop.permute.xlu1 %2522  ;;  %v2528_v62 = vpop.permute.xlu2 %2527 }
 0x1f1   :  { %v1733_v24 = vadd.f32 %v1732_v37, %v1564_v13  ;;  %1267 = vmatmul.bf16.gmra.mxu0 %v3914_v53 }
 0x1f2   :  { %1436 = vmatmul.bf16.gmra.mxu1 %v783_v44 }
 0x1f3   :  { %v2666_v1 = vmul.f32 %v2513_v8, %v1733_v24  ;;  %1605 = vmatmul.bf16.gmra.mxu2 %v4735_v38  ;;  %v4754_v24 = vpack.c.bf16 %v656_v45, %v652_v60 }
 0x1f4   :  { %1774 = vmatmul.bf16.gmra.mxu3 %v4737_v9 }
 0x1f5   :  { %2043 = vmatpush.bf16.msra.mxu3 %v4679_v14  ;;  %v2734_v2 = vadd.f32 %v4697_v16, %v2666_v1  ;;  %v3414_v29 = vpop.eup %3413 }
 0x1f6   :  { %v1566_v42 = vpop.f32.mrf.mxu2  ;;  %v1230_v44 = vpop.f32.mrf.mxu0 }
 0x1f7   :  { %v1735_v15 = vpop.f32.mrf.mxu3  ;;  %3415 = vtanh.f32 %v2734_v2  ;;  %v1567_v53 = vadd.f32 %v1566_v42, %v1398_v58  ;;  %v1399_v25 = vpop.f32.mrf.mxu1 }
 0x1f8   :  { %v1400_v0 = vadd.f32 %v1399_v25, %v1230_v44  ;;  %v405_v44 = vunpack.c.3.s8 %v4691_v27  ;;  %v409_v25 = vunpack.c.3.s8 %v4717_v41 }
 0x1f9   :  { %2044 = vmatpush.bf16.msra.mxu3 %v4658_v50  ;;  %v1736_v14 = vadd.f32 %v1735_v15, %v1567_v53  ;;  %v4756_v50 = vpack.c.bf16 %v657_v47, %v653_v21 }
 0x1fa   :  { %v665_v60 = vcvt.s32.f32 %v409_v25  ;;  %v3136_v25 = vld [vmem:[%s4959_s4 + $0x14] sm:$0xf0] }
 0x1fb   :  { %v2667_v13 = vmul.f32 %v2518_v11, %v1736_v14  ;;  %v664_v14 = vcvt.s32.f32 %v408_v6  ;;  %v661_v11 = vcvt.s32.f32 %v405_v44  ;;  %v2538_v6 = vpop.permute.xlu1 %2537 }
 0x1fd   :  { %2045 = vmatpush.bf16.msra.mxu3 %v4631_v40  ;;  %v3416_v17 = vpop.eup %3415  ;;  %v2735_v58 = vadd.f32 %v4697_v16, %v2667_v13  ;;  %v4773_v27 = vpack.c.bf16 %v665_v60, %v661_v11 }
 0x1fe   :  { %v3240_v37 = vpack.c.bf16 %v3416_v17, %v3414_v29  ;;  %v1568_v22 = vpop.f32.mrf.mxu2  ;;  %v1233_v8 = vpop.f32.mrf.mxu0 }
 0x1ff   :  { %v1737_v23 = vpop.f32.mrf.mxu3  ;;  %v1569_v61 = vadd.f32 %v1568_v22, %v1400_v0  ;;  %v1402_v19 = vpop.f32.mrf.mxu1  ;;  %3417 = vtanh.f32 %v2735_v58 }
 0x200   :  { %3316 = vst [vmem:[%s4958_s5 + $0xa0] sm:$0xff] %v3240_v37   ;;  %v1403_v1 = vadd.f32 %v1402_v19, %v1233_v8  ;;  %v2533_v19 = vpop.permute.xlu0 %2532 }
 0x201   :  { %2046 = vmatpush.bf16.msra.mxu3 %v4601_v36  ;;  %v1738_v40 = vadd.f32 %v1737_v23, %v1569_v61  ;;  %1272 = vmatmul.bf16.gmra.mxu0 %v3751_v49 }
 0x202   :  { %1441 = vmatmul.bf16.gmra.mxu1 %v4732_v32 }
 0x203   :  { %v2668_v2 = vmul.f32 %v2523_v28, %v1738_v40  ;;  %1610 = vmatmul.bf16.gmra.mxu2 %v4754_v24 }
 0x204   :  { %1779 = vmatmul.bf16.gmra.mxu3 %v4756_v50 }
 0x205   :  { %2047 = vmatpush.bf16.msra.mxu3 %v4563_v31  ;;  %v2736_v42 = vadd.f32 %v4697_v16, %v2668_v2  ;;  %v660_v31 = vcvt.s32.f32 %v404_v55  ;;  %v3418_v45 = vpop.eup %3417 }
 0x206   :  { %v1571_v15 = vpop.f32.mrf.mxu2  ;;  %v1235_v32 = vpop.f32.mrf.mxu0 }
 0x207   :  { %v1740_v36 = vpop.f32.mrf.mxu3  ;;  %3419 = vtanh.f32 %v2736_v42  ;;  %v1572_v49 = vadd.f32 %v1571_v15, %v1403_v1  ;;  %v1404_v53 = vpop.f32.mrf.mxu1  ;;  %v792_v61 = vpack.c.bf16 %v664_v14, %v660_v31 }
 0x208   :  { %v1405_v47 = vadd.f32 %v1404_v53, %v1235_v32  ;;  %v3089_v32 = vld [vmem:[%s4959_s4 + $0x10] sm:$0xf0]  ;;  %v3095_v53 = vld [vmem:[%s4959_s4 + $0x8] sm:$0xf] }
 0x209   :  { %v1741_v59 = vadd.f32 %v1740_v36, %v1572_v49  ;;  %v3133_v49 = vld [vmem:[%s4959_s4 + $0x4] sm:$0xf] }
 0x20b   :  { %v2669_v17 = vmul.f32 %v2528_v62, %v1741_v59  ;;  %v3134_v59 = vld [vmem:[%s4959_s4 + $0xc] sm:$0xf]  ;;  %v3097_v62 = vld [vmem:[%s4959_s4 + $0x18] sm:$0xf0] }
 0x20d   :  { %v3420_v21 = vpop.eup %3419  ;;  %v2737_v8 = vadd.f32 %v4697_v16, %v2669_v17 }
 0x20e   :  { %v3245_v29 = vpack.c.bf16 %v3420_v21, %v3418_v45  ;;  %v1573_v0 = vpop.f32.mrf.mxu2  ;;  %v1238_v22 = vpop.f32.mrf.mxu0 }
 0x20f   :  { %v1742_v37 = vpop.f32.mrf.mxu3  ;;  %v1574_v13 = vadd.f32 %v1573_v0, %v1405_v47  ;;  %v1407_v23 = vpop.f32.mrf.mxu1  ;;  %3421 = vtanh.f32 %v2737_v8 }
 0x210   :  { %3317 = vst [vmem:[%s4958_s5 + $0xa8] sm:$0xff] %v3245_v29   ;;  %v1408_v40 = vadd.f32 %v1407_v23, %v1238_v22  ;;  %v4809_v29 = vor.u32 %v3133_v49, %v3089_v32  ;;  %v4813_v22 = vor.u32 %v3134_v59, %v3097_v62  ;;  %v2543_v8 = vpop.permute.xlu2 %2542  ;;  %v5037_v59 = vld [vmem:[#allocation25_spill] sm:$0xff]  ;;  %v5038_v62 = vld [vmem:[#allocation35_spill] sm:$0xff] }
 0x211   :  { %v1743_v41 = vadd.f32 %v1742_v37, %v1574_v13  ;;  %1277 = vmatmul.bf16.gmra.mxu0 %v3656_v10  ;;  %v3087_v10 = vld [vmem:[%s4959_s4] sm:$0xf]  ;;  %v4811_v13 = vor.u32 %v3136_v25, %v3095_v53 }
 0x212   :  { %1446 = vmatmul.bf16.gmra.mxu1 %v4729_v57  ;;  %v3135_v57 = vld [vmem:[%s4959_s4 + $0xc] sm:$0xf0] }
 0x213   :  { %v2670_v28 = vmul.f32 %v2533_v19, %v1743_v41  ;;  %1615 = vmatmul.bf16.gmra.mxu2 %v792_v61  ;;  %v4807_v47 = vor.u32 %v3135_v57, %v3087_v10 }
 0x214   :  { %1784 = vmatmul.bf16.gmra.mxu3 %v4773_v27 }
 0x215   :  { %v2738_v58 = vadd.f32 %v4697_v16, %v2670_v28  ;;  %v3422_v44 = vpop.eup %3421 }
 0x216   :  { %v1576_v1 = vpop.f32.mrf.mxu2  ;;  %v1240_v15 = vpop.f32.mrf.mxu0 }
 0x217   :  { %v1745_v2 = vpop.f32.mrf.mxu3  ;;  %3423 = vtanh.f32 %v2738_v58  ;;  %v1577_v42 = vadd.f32 %v1576_v1, %v1408_v40  ;;  %v1409_v36 = vpop.f32.mrf.mxu1 }
 0x218   :  { %v1410_v14 = vadd.f32 %v1409_v36, %v1240_v15 }
 0x219   :  { %v1746_v55 = vadd.f32 %v1745_v2, %v1577_v42 }
 0x21b   :  { %v2671_v60 = vmul.f32 %v2538_v6, %v1746_v55 }
 0x21d   :  { %v3424_v31 = vpop.eup %3423  ;;  %v2739_v41 = vadd.f32 %v4697_v16, %v2671_v60  ;;  %v5039_v60 = vld [vmem:[#allocation3_spill] sm:$0xff] }
 0x21e   :  { %v3250_v11 = vpack.c.bf16 %v3424_v31, %v3422_v44  ;;  %v1578_v45 = vpop.f32.mrf.mxu2  ;;  %v1243_v0 = vpop.f32.mrf.mxu0 }
 0x21f   :  { %v1747_v21 = vpop.f32.mrf.mxu3  ;;  %v1579_v17 = vadd.f32 %v1578_v45, %v1410_v14  ;;  %v1412_v37 = vpop.f32.mrf.mxu1  ;;  %3425 = vtanh.f32 %v2739_v41  ;;  %v5040_v45 = vld [vmem:[#allocation13_spill] sm:$0xff]  ;;  %v5043_v41 = vld [vmem:[#allocation12_spill] sm:$0xff] }
 0x220   :  { %3318 = vst [vmem:[%s4958_s5 + $0xb0] sm:$0xff] %v3250_v11   ;;  %v1413_v28 = vadd.f32 %v1412_v37, %v1243_v0  ;;  %v2558_v44 = vpop.permute.xlu2 %2557  ;;  %v5042_v0 = vld [vmem:[#allocation33_spill] sm:$0xff] }
 0x221   :  { %v1748_v23 = vadd.f32 %v1747_v21, %v1579_v17  ;;  %1950 = vmatmul.bf16.vlgmr.msrb.gmra.mxu0 %v4807_v47  ;;  %v5041_v17 = vld [vmem:[#allocation23_spill] sm:$0xff] }
 0x222   :  { %1964 = vmatmul.bf16.vlgmr.msrb.gmra.mxu1 %v4809_v29  ;;  %2054 = vmatpush.bf16.msrb.mxu0 %v3882_v63 }
 0x223   :  { %v2672_v19 = vmul.f32 %v2543_v8, %v1748_v23  ;;  %1978 = vmatmul.bf16.vlgmr.msrb.gmra.mxu2 %v4811_v13  ;;  %2068 = vmatpush.bf16.msrb.mxu1 %v4202_v12  ;;  %v5044_v8 = vld [vmem:[#allocation22_spill] sm:$0xff] }
 0x224   :  { %1992 = vmatmul.bf16.vlgmr.msrb.gmra.mxu3 %v4813_v22  ;;  %2082 = vmatpush.bf16.msrb.mxu2 %v4521_v30 }
 0x225   :  { %v2740_v40 = vadd.f32 %v4697_v16, %v2672_v19  ;;  %2096 = vmatpush.bf16.msrb.mxu3 %v792_v61  ;;  %v3426_v12 = vpop.eup %3425  ;;  %v2548_v61 = vpop.permute.xlu0 %2547 }
 0x226   :  { %v1581_v58 = vpop.f32.mrf.mxu2  ;;  %v1245_v42 = vpop.f32.mrf.mxu0  ;;  %2055 = vmatpush.bf16.msrb.mxu0 %v3865_v20 }
 0x227   :  { %v1750_v1 = vpop.f32.mrf.mxu3  ;;  %3427 = vtanh.f32 %v2740_v40  ;;  %v1582_v2 = vadd.f32 %v1581_v58, %v1413_v28  ;;  %v1414_v15 = vpop.f32.mrf.mxu1  ;;  %2069 = vmatpush.bf16.msrb.mxu1 %v4170_v43  ;;  %v5045_v40 = vld [vmem:[#allocation32_spill] sm:$0xff] }
 0x228   :  { %2083 = vmatpush.bf16.msrb.mxu2 %v4472_v39  ;;  %v1415_v36 = vadd.f32 %v1414_v15, %v1245_v42 }
 0x229   :  { %2097 = vmatpush.bf16.msrb.mxu3 %v4754_v24  ;;  %v1751_v63 = vadd.f32 %v1750_v1, %v1582_v2  ;;  %v5046_v1 = vld [vmem:[#allocation11_spill] sm:$0xff]  ;;  %v5047_v2 = vld [vmem:[#allocation21_spill] sm:$0xff] }
 0x22a   :  { %2056 = vmatpush.bf16.msrb.mxu0 %v3845_v34 }
 0x22b   :  { %2070 = vmatpush.bf16.msrb.mxu1 %v4089_v54  ;;  %v2673_v55 = vmul.f32 %v2548_v61, %v1751_v63  ;;  %v2553_v54 = vpop.permute.xlu1 %2552  ;;  %v5048_v63 = vld [vmem:[#allocation31_spill] sm:$0xff] }
 0x22c   :  { %2084 = vmatpush.bf16.msrb.mxu2 %v4430_v48 }
 0x22d   :  { %v3428_v30 = vpop.eup %3427  ;;  %2098 = vmatpush.bf16.msrb.mxu3 %v4735_v38  ;;  %v2741_v48 = vadd.f32 %v4697_v16, %v2673_v55  ;;  %v2563_v37 = vpop.permute.xlu0 %2562  ;;  %v5051_v55 = vld [vmem:[#allocation30_spill] sm:$0xff] }
 0x22e   :  { %v3255_v20 = vpack.c.bf16 %v3428_v30, %v3426_v12  ;;  %v1583_v43 = vpop.f32.mrf.mxu2  ;;  %v1248_v57 = vpop.f32.mrf.mxu0  ;;  %2057 = vmatpush.bf16.msrb.mxu0 %v3822_v7 }
 0x22f   :  { %v1752_v10 = vpop.f32.mrf.mxu3  ;;  %v1584_v39 = vadd.f32 %v1583_v43, %v1415_v36  ;;  %v1417_v24 = vpop.f32.mrf.mxu1  ;;  %2071 = vmatpush.bf16.msrb.mxu1 %v4114_v51  ;;  %3429 = vtanh.f32 %v2741_v48  ;;  %v5049_v36 = vld [vmem:[#allocation10_spill] sm:$0xff] }
 0x230   :  { %3319 = vst [vmem:[%s4958_s5 + $0xb8] sm:$0xff] %v3255_v20   ;;  %2085 = vmatpush.bf16.msrb.mxu2 %v4405_v35  ;;  %v1418_v6 = vadd.f32 %v1417_v24, %v1248_v57  ;;  %v5050_v20 = vld [vmem:[#allocation19_spill] sm:$0xff] }
 0x231   :  { %v1753_v34 = vadd.f32 %v1752_v10, %v1584_v39  ;;  %2099 = vmatpush.bf16.msrb.mxu3 %v4681_v18  ;;  %2006 = vmatmul.bf16.vlgmr.msra.gmra.mxu0 %v4807_v47 }
 0x232   :  { %2020 = vmatmul.bf16.vlgmr.msra.gmra.mxu1 %v4809_v29  ;;  %2058 = vmatpush.bf16.msrb.mxu0 %v3758_v56 }
 0x233   :  { %v2674_v38 = vmul.f32 %v2553_v54, %v1753_v34  ;;  %2034 = vmatmul.bf16.vlgmr.msra.gmra.mxu2 %v4811_v13  ;;  %2072 = vmatpush.bf16.msrb.mxu1 %v4049_v52  ;;  %v2568_v39 = vpop.permute.xlu1 %2567  ;;  %v5052_v54 = vld [vmem:[#allocation9_spill] sm:$0xff] }
 0x234   :  { %2048 = vmatmul.bf16.vlgmr.msra.gmra.mxu3 %v4813_v22  ;;  %2086 = vmatpush.bf16.msrb.mxu2 %v4363_v33  ;;  %v5035_v33 = vld [vmem:[#allocation5_spill] sm:$0xff] }
 0x235   :  { %v2742_v7 = vadd.f32 %v4697_v16, %v2674_v38  ;;  %2100 = vmatpush.bf16.msrb.mxu3 %v4660_v46  ;;  %v3430_v52 = vpop.eup %3429  ;;  %v5036_v46 = vld [vmem:[#allocation15_spill] sm:$0xff] }
 0x236   :  { %v1586_v51 = vpop.f32.mrf.mxu2  ;;  %v1250_v49 = vpop.f32.mrf.mxu0  ;;  %2059 = vmatpush.bf16.msrb.mxu0 %v3713_v3 }
 0x237   :  { %v1755_v35 = vpop.f32.mrf.mxu3  ;;  %3431 = vtanh.f32 %v2742_v7  ;;  %v1587_v18 = vadd.f32 %v1586_v51, %v1418_v6  ;;  %v1419_v32 = vpop.f32.mrf.mxu1  ;;  %2073 = vmatpush.bf16.msrb.mxu1 %v4015_v5  ;;  %v5054_v6 = vld [vmem:[#allocation29_spill] sm:$0xff]  ;;  %v5055_v7 = vld [vmem:[#allocation39_spill] sm:$0xff] }
 0x238   :  { %2087 = vmatpush.bf16.msrb.mxu2 %v4331_v26  ;;  %v1420_v25 = vadd.f32 %v1419_v32, %v1250_v49  ;;  %v2573_v49 = vpop.permute.xlu2 %2572 }
 0x239   :  { %2101 = vmatpush.bf16.msrb.mxu3 %v4633_v4  ;;  %v1756_v56 = vadd.f32 %v1755_v35, %v1587_v18 }
 0x23a   :  { %2060 = vmatpush.bf16.msrb.mxu0 %v5035_v33 }
 0x23b   :  { %2074 = vmatpush.bf16.msrb.mxu1 %v5036_v46  ;;  %v2675_v31 = vmul.f32 %v2558_v44, %v1756_v56  ;;  %v5056_v56 = vld [vmem:[#allocation8_spill] sm:$0xff]  ;;  %v5059_v44 = vld [vmem:[#allocation38_spill] sm:$0xff] }
 0x23c   :  { %2088 = vmatpush.bf16.msrb.mxu2 %v5037_v59  ;;  %v5060_v59 = vld [vmem:[#allocation7_spill] sm:$0xff] }
 0x23d   :  { %v3432_v53 = vpop.eup %3431  ;;  %2102 = vmatpush.bf16.msrb.mxu3 %v5038_v62  ;;  %v2743_v23 = vadd.f32 %v4697_v16, %v2675_v31  ;;  %v5061_v62 = vld [vmem:[#allocation17_spill] sm:$0xff] }
 0x23e   :  { %v3260_v3 = vpack.c.bf16 %v3432_v53, %v3430_v52  ;;  %v1588_v5 = vpop.f32.mrf.mxu2  ;;  %v1253_v11 = vpop.f32.mrf.mxu0  ;;  %2061 = vmatpush.bf16.msrb.mxu0 %v5039_v60  ;;  %v5057_v52 = vld [vmem:[#allocation18_spill] sm:$0xff]  ;;  %v5058_v53 = vld [vmem:[#allocation28_spill] sm:$0xff] }
 0x23f   :  { %v1757_v14 = vpop.f32.mrf.mxu3  ;;  %v1589_v26 = vadd.f32 %v1588_v5, %v1420_v25  ;;  %v1422_v4 = vpop.f32.mrf.mxu1  ;;  %2075 = vmatpush.bf16.msrb.mxu1 %v5040_v45  ;;  %3433 = vtanh.f32 %v2743_v23  ;;  %v5062_v5 = vld [vmem:[#allocation27_spill] sm:$0xff]  ;;  %v5064_v45 = vld [vmem:[#allocation6_spill] sm:$0xff] }
 0x240   :  { %3320 = vst [vmem:[%s4958_s5 + $0xc0] sm:$0xff] %v3260_v3   ;;  %2089 = vmatpush.bf16.msrb.mxu2 %v5041_v17  ;;  %v1423_v28 = vadd.f32 %v1422_v4, %v1253_v11  ;;  %v5066_v17 = vld [vmem:[#allocation26_spill] sm:$0xff] }
 0x241   :  { %v1758_v21 = vadd.f32 %v1757_v14, %v1589_v26  ;;  %2103 = vmatpush.bf16.msrb.mxu3 %v5042_v0  ;;  %2062 = vmatmul.bf16.vlgmr.msrb.gmra.mxu0 %v4807_v47  ;;  %v5063_v14 = vld [vmem:[#allocation37_spill] sm:$0xff]  ;;  %v5067_v0 = vld [vmem:[#allocation36_spill] sm:$0xff] }
 0x242   :  { %2110 = vmatpush.bf16.msra.mxu0 %v5043_v41  ;;  %2076 = vmatmul.bf16.vlgmr.msrb.gmra.mxu1 %v4809_v29  ;;  %v2578_v41 = vpop.permute.xlu0 %2577 }
 0x243   :  { %2124 = vmatpush.bf16.msra.mxu1 %v5044_v8  ;;  %v2676_v19 = vmul.f32 %v2563_v37, %v1758_v21  ;;  %2090 = vmatmul.bf16.vlgmr.msrb.gmra.mxu2 %v4811_v13  ;;  %v5065_v21 = vld [vmem:[#allocation16_spill] sm:$0xff] }
 0x244   :  { %2138 = vmatpush.bf16.msra.mxu2 %v5045_v40  ;;  %2104 = vmatmul.bf16.vlgmr.msrb.gmra.mxu3 %v4813_v22  ;;  %v5068_v40 = vld [vmem:[#allocation4_spill] sm:$0xff] }
 0x245   :  { %2152 = vmatpush.bf16.msra.mxu3 %v4773_v27  ;;  %v2744_v58 = vadd.f32 %v4697_v16, %v2676_v19  ;;  %v3434_v43 = vpop.eup %3433 }
 0x246   :  { %2111 = vmatpush.bf16.msra.mxu0 %v5046_v1  ;;  %v1591_v42 = vpop.f32.mrf.mxu2  ;;  %v1255_v12 = vpop.f32.mrf.mxu0 }
 0x247   :  { %2125 = vmatpush.bf16.msra.mxu1 %v5047_v2  ;;  %v1760_v15 = vpop.f32.mrf.mxu3  ;;  %3435 = vtanh.f32 %v2744_v58  ;;  %v1592_v27 = vadd.f32 %v1591_v42, %v1423_v28  ;;  %v1424_v30 = vpop.f32.mrf.mxu1  ;;  %v5069_v58 = vld [vmem:[#allocation14_spill] sm:$0xff]  ;;  %v5070_v42 = vld [vmem:[#allocation24_spill] sm:$0xff] }
 0x248   :  { %2139 = vmatpush.bf16.msra.mxu2 %v5048_v63  ;;  %v1425_v57 = vadd.f32 %v1424_v30, %v1255_v12 }
 0x249   :  { %2153 = vmatpush.bf16.msra.mxu3 %v4756_v50  ;;  %v1761_v61 = vadd.f32 %v1760_v15, %v1592_v27  ;;  %v5053_v50 = vld [vmem:[#allocation20_spill] sm:$0xff]  ;;  %v5071_v15 = vld [vmem:[#allocation34_spill] sm:$0xff] }
 0x24a   :  { %2112 = vmatpush.bf16.msra.mxu0 %v5049_v36 }
 0x24b   :  { %2126 = vmatpush.bf16.msra.mxu1 %v5050_v20  ;;  %v2677_v34 = vmul.f32 %v2568_v39, %v1761_v61  ;;  %v2583_v61 = vpop.permute.xlu1 %2582 }
 0x24c   :  { %2140 = vmatpush.bf16.msra.mxu2 %v5051_v55 }
 0x24d   :  { %2154 = vmatpush.bf16.msra.mxu3 %v4737_v9  ;;  %v3436_v10 = vpop.eup %3435  ;;  %v2745_v32 = vadd.f32 %v4697_v16, %v2677_v34 }
 0x24e   :  { %v3265_v24 = vpack.c.bf16 %v3436_v10, %v3434_v43  ;;  %2113 = vmatpush.bf16.msra.mxu0 %v5052_v54  ;;  %v1593_v48 = vpop.f32.mrf.mxu2  ;;  %v1258_v35 = vpop.f32.mrf.mxu0 }
 0x24f   :  { %2127 = vmatpush.bf16.msra.mxu1 %v5053_v50  ;;  %v1762_v38 = vpop.f32.mrf.mxu3  ;;  %v1594_v51 = vadd.f32 %v1593_v48, %v1425_v57  ;;  %v1427_v18 = vpop.f32.mrf.mxu1  ;;  %3437 = vtanh.f32 %v2745_v32 }
 0x250   :  { %2141 = vmatpush.bf16.msra.mxu2 %v5054_v6  ;;  %3321 = vst [vmem:[%s4958_s5 + $0xc8] sm:$0xff] %v3265_v24   ;;  %v1428_v46 = vadd.f32 %v1427_v18, %v1258_v35  ;;  %v2588_v50 = vpop.permute.xlu2 %2587 }
 0x251   :  { %2155 = vmatpush.bf16.msra.mxu3 %v5055_v7  ;;  %v1763_v9 = vadd.f32 %v1762_v38, %v1594_v51 }
 0x252   :  { %2114 = vmatpush.bf16.msra.mxu0 %v5056_v56 }
 0x253   :  { %2128 = vmatpush.bf16.msra.mxu1 %v5057_v52  ;;  %v2678_v33 = vmul.f32 %v2573_v49, %v1763_v9  ;;  %v2593_v9 = vpop.permute.xlu0 %2592 }
 0x254   :  { %2142 = vmatpush.bf16.msra.mxu2 %v5058_v53 }
 0x255   :  { %2156 = vmatpush.bf16.msra.mxu3 %v5059_v44  ;;  %v2746_v25 = vadd.f32 %v4697_v16, %v2678_v33  ;;  %v3438_v37 = vpop.eup %3437 }
 0x256   :  { %2115 = vmatpush.bf16.msra.mxu0 %v5060_v59  ;;  %v1596_v3 = vpop.f32.mrf.mxu2  ;;  %v1260_v11 = vpop.f32.mrf.mxu0 }
 0x257   :  { %2129 = vmatpush.bf16.msra.mxu1 %v5061_v62  ;;  %v1765_v31 = vpop.f32.mrf.mxu3  ;;  %3439 = vtanh.f32 %v2746_v25  ;;  %v1597_v26 = vadd.f32 %v1596_v3, %v1428_v46  ;;  %v1429_v4 = vpop.f32.mrf.mxu1 }
 0x258   :  { %2143 = vmatpush.bf16.msra.mxu2 %v5062_v5  ;;  %v1430_v8 = vadd.f32 %v1429_v4, %v1260_v11 }
 0x259   :  { %2157 = vmatpush.bf16.msra.mxu3 %v5063_v14  ;;  %v1766_v60 = vadd.f32 %v1765_v31, %v1597_v26  ;;  %v2598_v31 = vpop.permute.xlu1 %2597 }
 0x25a   :  { %2116 = vmatpush.bf16.msra.mxu0 %v5064_v45 }
 0x25b   :  { %2130 = vmatpush.bf16.msra.mxu1 %v5065_v21  ;;  %v2679_v28 = vmul.f32 %v2578_v41, %v1766_v60 }
 0x25c   :  { %2144 = vmatpush.bf16.msra.mxu2 %v5066_v17 }
 0x25d   :  { %2158 = vmatpush.bf16.msra.mxu3 %v5067_v0  ;;  %v3440_v23 = vpop.eup %3439  ;;  %v2747_v36 = vadd.f32 %v4697_v16, %v2679_v28  ;;  %v2603_v0 = vpop.permute.xlu2 %2602 }
 0x25e   :  { %v3270_v19 = vpack.c.bf16 %v3440_v23, %v3438_v37  ;;  %2117 = vmatpush.bf16.msra.mxu0 %v5068_v40  ;;  %v1598_v1 = vpop.f32.mrf.mxu2  ;;  %v1263_v27 = vpop.f32.mrf.mxu0 }
 0x25f   :  { %2131 = vmatpush.bf16.msra.mxu1 %v5069_v58  ;;  %v1767_v2 = vpop.f32.mrf.mxu3  ;;  %v1599_v63 = vadd.f32 %v1598_v1, %v1430_v8  ;;  %v1432_v12 = vpop.f32.mrf.mxu1  ;;  %3441 = vtanh.f32 %v2747_v36 }
 0x260   :  { %2145 = vmatpush.bf16.msra.mxu2 %v5070_v42  ;;  %3322 = vst [vmem:[%s4958_s5 + $0xd0] sm:$0xff] %v3270_v19   ;;  %v1433_v55 = vadd.f32 %v1432_v12, %v1263_v27 }
 0x261   :  { %2159 = vmatpush.bf16.msra.mxu3 %v5071_v15  ;;  %v1768_v30 = vadd.f32 %v1767_v2, %v1599_v63  ;;  %2118 = vmatmul.bf16.vlgmr.msra.gmra.mxu0 %v4807_v47  ;;  %v2608_v63 = vpop.permute.xlu0 %2607 }
 0x262   :  { %2132 = vmatmul.bf16.vlgmr.msra.gmra.mxu1 %v4809_v29 }
 0x263   :  { %2146 = vmatmul.bf16.vlgmr.msra.gmra.mxu2 %v4811_v13  ;;  %v2680_v20 = vmul.f32 %v2583_v61, %v1768_v30 }
 0x264   :  { %2160 = vmatmul.bf16.vlgmr.msra.gmra.mxu3 %v4813_v22 }
 0x265   :  { %v2748_v43 = vadd.f32 %v4697_v16, %v2680_v20  ;;  %v3442_v29 = vpop.eup %3441 }
 0x266   :  { %v1601_v10 = vpop.f32.mrf.mxu2  ;;  %v1265_v24 = vpop.f32.mrf.mxu0 }
 0x267   :  { %v1770_v39 = vpop.f32.mrf.mxu3  ;;  %3443 = vtanh.f32 %v2748_v43  ;;  %v1602_v57 = vadd.f32 %v1601_v10, %v1433_v55  ;;  %v1434_v47 = vpop.f32.mrf.mxu1 }
 0x268   :  { %v1435_v48 = vadd.f32 %v1434_v47, %v1265_v24 }
 0x269   :  { %v1771_v34 = vadd.f32 %v1770_v39, %v1602_v57  ;;  %v2613_v39 = vpop.permute.xlu1 %2612 }
 0x26b   :  { %v2681_v13 = vmul.f32 %v2588_v50, %v1771_v34 }
 0x26d   :  { %v3444_v54 = vpop.eup %3443  ;;  %v2749_v49 = vadd.f32 %v4697_v16, %v2681_v13 }
 0x26e   :  { %v3275_v38 = vpack.c.bf16 %v3444_v54, %v3442_v29  ;;  %v1603_v6 = vpop.f32.mrf.mxu2  ;;  %v1268_v51 = vpop.f32.mrf.mxu0 }
 0x26f   :  { %v1772_v22 = vpop.f32.mrf.mxu3  ;;  %v1604_v7 = vadd.f32 %v1603_v6, %v1435_v48  ;;  %v1437_v35 = vpop.f32.mrf.mxu1  ;;  %3445 = vtanh.f32 %v2749_v49 }
 0x270   :  { %3323 = vst [vmem:[%s4958_s5 + $0xd8] sm:$0xff] %v3275_v38   ;;  %v1438_v56 = vadd.f32 %v1437_v35, %v1268_v51 }
 0x271   :  { %v1773_v18 = vadd.f32 %v1772_v22, %v1604_v7  ;;  %v2618_v7 = vpop.permute.xlu2 %2617 }
 0x273   :  { %v2682_v32 = vmul.f32 %v2593_v9, %v1773_v18 }
 0x275   :  { %v2750_v52 = vadd.f32 %v4697_v16, %v2682_v32  ;;  %v3446_v62 = vpop.eup %3445 }
 0x276   :  { %v1606_v33 = vpop.f32.mrf.mxu2  ;;  %v1270_v44 = vpop.f32.mrf.mxu0 }
 0x277   :  { %v1775_v46 = vpop.f32.mrf.mxu3  ;;  %3447 = vtanh.f32 %v2750_v52  ;;  %v1607_v53 = vadd.f32 %v1606_v33, %v1438_v56  ;;  %v1439_v25 = vpop.f32.mrf.mxu1 }
 0x278   :  { %v1440_v5 = vadd.f32 %v1439_v25, %v1270_v44 }
 0x279   :  { %v1776_v59 = vadd.f32 %v1775_v46, %v1607_v53  ;;  %v2623_v46 = vpop.permute.xlu0 %2622 }
 0x27b   :  { %v2683_v26 = vmul.f32 %v2598_v31, %v1776_v59 }
 0x27d   :  { %v3448_v3 = vpop.eup %3447  ;;  %v2751_v37 = vadd.f32 %v4697_v16, %v2683_v26 }
 0x27e   :  { %v3280_v14 = vpack.c.bf16 %v3448_v3, %v3446_v62  ;;  %v1608_v11 = vpop.f32.mrf.mxu2  ;;  %v1273_v45 = vpop.f32.mrf.mxu0 }
 0x27f   :  { %v1777_v4 = vpop.f32.mrf.mxu3  ;;  %v1609_v60 = vadd.f32 %v1608_v11, %v1440_v5  ;;  %v1442_v21 = vpop.f32.mrf.mxu1  ;;  %3449 = vtanh.f32 %v2751_v37 }
 0x280   :  { %3324 = vst [vmem:[%s4958_s5 + $0xe0] sm:$0xff] %v3280_v14   ;;  %v1443_v41 = vadd.f32 %v1442_v21, %v1273_v45 }
 0x281   :  { %v1778_v17 = vadd.f32 %v1777_v4, %v1609_v60 }
 0x283   :  { %v2684_v23 = vmul.f32 %v2603_v0, %v1778_v17 }
 0x285   :  { %v2752_v8 = vadd.f32 %v4697_v16, %v2684_v23  ;;  %v3450_v42 = vpop.eup %3449 }
 0x286   :  { %v1611_v19 = vpop.f32.mrf.mxu2  ;;  %v1275_v58 = vpop.f32.mrf.mxu0 }
 0x287   :  { %v1780_v28 = vpop.f32.mrf.mxu3  ;;  %3451 = vtanh.f32 %v2752_v8  ;;  %v1612_v40 = vadd.f32 %v1611_v19, %v1443_v41  ;;  %v1444_v1 = vpop.f32.mrf.mxu1 }
 0x288   :  { %v1445_v27 = vadd.f32 %v1444_v1, %v1275_v58 }
 0x289   :  { %v1781_v2 = vadd.f32 %v1780_v28, %v1612_v40 }
 0x28b   :  { %v2685_v30 = vmul.f32 %v2608_v63, %v1781_v2 }
 0x28d   :  { %v3452_v15 = vpop.eup %3451  ;;  %v2753_v57 = vadd.f32 %v4697_v16, %v2685_v30 }
 0x28e   :  { %v3285_v12 = vpack.c.bf16 %v3452_v15, %v3450_v42  ;;  %v1613_v61 = vpop.f32.mrf.mxu2  ;;  %v1278_v55 = vpop.f32.mrf.mxu0 }
 0x28f   :  { %v1782_v36 = vpop.f32.mrf.mxu3  ;;  %v1614_v20 = vadd.f32 %v1613_v61, %v1445_v27  ;;  %v1447_v43 = vpop.f32.mrf.mxu1  ;;  %3453 = vtanh.f32 %v2753_v57 }
 0x290   :  { %3325 = vst [vmem:[%s4958_s5 + $0xe8] sm:$0xff] %v3285_v12   ;;  %v1448_v47 = vadd.f32 %v1447_v43, %v1278_v55 }
 0x291   :  { %v1783_v10 = vadd.f32 %v1782_v36, %v1614_v20 }
 0x293   :  { %v2686_v24 = vmul.f32 %v2613_v39, %v1783_v10 }
 0x295   :  { %v2754_v34 = vadd.f32 %v4697_v16, %v2686_v24  ;;  %v3454_v6 = vpop.eup %3453 }
 0x296   :  { %v1616_v29 = vpop.f32.mrf.mxu2  ;;  %v1280_v48 = vpop.f32.mrf.mxu0 }
 0x297   :  { %v1785_v54 = vpop.f32.mrf.mxu3  ;;  %3455 = vtanh.f32 %v2754_v34  ;;  %v1617_v50 = vadd.f32 %v1616_v29, %v1448_v47  ;;  %v1449_v38 = vpop.f32.mrf.mxu1 }
 0x298   :  { %v1450_v51 = vadd.f32 %v1449_v38, %v1280_v48 }
 0x299   :  { %v1786_v13 = vadd.f32 %v1785_v54, %v1617_v50 }
 0x29b   :  { %v2687_v18 = vmul.f32 %v2618_v7, %v1786_v13 }
 0x29d   :  { %v3456_v22 = vpop.eup %3455  ;;  %v2755_v53 = vadd.f32 %v4697_v16, %v2687_v18 }
 0x29e   :  { %v3290_v35 = vpack.c.bf16 %v3456_v22, %v3454_v6  ;;  %v1618_v9 = vpop.f32.mrf.mxu2  ;;  %v1951_v56 = vpop.f32.mrf.mxu0 }
 0x29f   :  { %v1787_v49 = vpop.f32.mrf.mxu3  ;;  %v1619_v32 = vadd.f32 %v1618_v9, %v1450_v51  ;;  %v1965_v52 = vpop.f32.mrf.mxu1  ;;  %3457 = vtanh.f32 %v2755_v53 }
 0x2a0   :  { %3326 = vst [vmem:[%s4958_s5 + $0xf0] sm:$0xff] %v3290_v35   ;;  %v1966_v21 = vadd.f32 %v1965_v52, %v1951_v56 }
 0x2a1   :  { %v1788_v33 = vadd.f32 %v1787_v49, %v1619_v32 }
 0x2a3   :  { %v2688_v44 = vmul.f32 %v2623_v46, %v1788_v33 }
 0x2a5   :  { %v2756_v25 = vadd.f32 %v4697_v16, %v2688_v44  ;;  %v3458_v5 = vpop.eup %3457 }
 0x2a6   :  { %v1979_v59 = vpop.f32.mrf.mxu2  ;;  %v1953_v3 = vpop.f32.mrf.mxu0 }
 0x2a7   :  { %v1993_v62 = vpop.f32.mrf.mxu3  ;;  %3459 = vtanh.f32 %v2756_v25  ;;  %v1967_v31 = vpop.f32.mrf.mxu1  ;;  %v1980_v16 = vadd.f32 %v1979_v59, %v1966_v21 }
 0x2a8   :  { %v1968_v40 = vadd.f32 %v1967_v31, %v1953_v3 }
 0x2a9   :  { %v1994_v19 = vadd.f32 %v1993_v62, %v1980_v16 }
 0x2ad   :  { %v3460_v14 = vpop.eup %3459 }
 0x2ae   :  { %v3295_v26 = vpack.c.bf16 %v3460_v14, %v3458_v5  ;;  %v1981_v11 = vpop.f32.mrf.mxu2  ;;  %v2007_v60 = vpop.f32.mrf.mxu0 }
 0x2af   :  { %v1995_v4 = vpop.f32.mrf.mxu3  ;;  %v2021_v45 = vpop.f32.mrf.mxu1  ;;  %v1982_v2 = vadd.f32 %v1981_v11, %v1968_v40 }
 0x2b0   :  { %3327 = vst [vmem:[%s4958_s5 + $0xf8] sm:$0xff] %v3295_v26   ;;  %v2022_v17 = vadd.f32 %v2021_v45, %v2007_v60 }
 0x2b1   :  { %v1996_v27 = vadd.f32 %v1995_v4, %v1982_v2 }
 0x2b6   :  { %v2035_v0 = vpop.f32.mrf.mxu2  ;;  %v2009_v41 = vpop.f32.mrf.mxu0 }
 0x2b7   :  { %v2049_v37 = vpop.f32.mrf.mxu3  ;;  %v2036_v23 = vadd.f32 %v2035_v0, %v2022_v17  ;;  %v2023_v8 = vpop.f32.mrf.mxu1 }
 0x2b8   :  { %v2024_v1 = vadd.f32 %v2023_v8, %v2009_v41 }
 0x2b9   :  { %v2050_v28 = vadd.f32 %v2049_v37, %v2036_v23 }
 0x2bb   :  { %v2166_v58 = vpack.c.bf16 %v2050_v28, %v1994_v19 }
 0x2bd   :  { %2170 = vst [vmem:[%s4960_s6] sm:$0xff] %v2166_v58 }
 0x2be   :  { %v2037_v42 = vpop.f32.mrf.mxu2  ;;  %v2063_v61 = vpop.f32.mrf.mxu0 }
 0x2bf   :  { %v2051_v15 = vpop.f32.mrf.mxu3  ;;  %v2038_v63 = vadd.f32 %v2037_v42, %v2024_v1  ;;  %v2077_v36 = vpop.f32.mrf.mxu1 }
 0x2c0   :  { %v2078_v34 = vadd.f32 %v2077_v36, %v2063_v61 }
 0x2c1   :  { %v2052_v12 = vadd.f32 %v2051_v15, %v2038_v63 }
 0x2c3   :  { %v2168_v30 = vpack.c.bf16 %v2052_v12, %v1996_v27 }
 0x2c5   :  { %2172 = vst [vmem:[%s4960_s6 + $0x10] sm:$0xff] %v2168_v30 }
 0x2c6   :  { %v2091_v20 = vpop.f32.mrf.mxu2  ;;  %v2065_v43 = vpop.f32.mrf.mxu0 }
 0x2c7   :  { %v2105_v55 = vpop.f32.mrf.mxu3  ;;  %v2079_v10 = vpop.f32.mrf.mxu1  ;;  %v2092_v54 = vadd.f32 %v2091_v20, %v2078_v34 }
 0x2c8   :  { %v2080_v6 = vadd.f32 %v2079_v10, %v2065_v43 }
 0x2c9   :  { %v2106_v13 = vadd.f32 %v2105_v55, %v2092_v54 }
 0x2ce   :  { %v2093_v39 = vpop.f32.mrf.mxu2 }
 0x2cf   :  { %v2107_v57 = vpop.f32.mrf.mxu3  ;;  %v2094_v18 = vadd.f32 %v2093_v39, %v2080_v6 }
 0x2d1   :  { %v2108_v52 = vadd.f32 %v2107_v57, %v2094_v18 }
 0x2de   :  { %v2119_v24 = vpop.f32.mrf.mxu0 }
 0x2df   :  { %v2133_v47 = vpop.f32.mrf.mxu1 }
 0x2e0   :  { %v2134_v29 = vadd.f32 %v2133_v47, %v2119_v24 }
 0x2e6   :  { %v2147_v50 = vpop.f32.mrf.mxu2  ;;  %v2121_v7 = vpop.f32.mrf.mxu0 }
 0x2e7   :  { %v2161_v48 = vpop.f32.mrf.mxu3  ;;  %v2148_v38 = vadd.f32 %v2147_v50, %v2134_v29  ;;  %v2135_v51 = vpop.f32.mrf.mxu1 }
 0x2e8   :  { %v2136_v9 = vadd.f32 %v2135_v51, %v2121_v7 }
 0x2e9   :  { %v2162_v22 = vadd.f32 %v2161_v48, %v2148_v38 }
 0x2eb   :  { %v2167_v35 = vpack.c.bf16 %v2162_v22, %v2106_v13 }
 0x2ed   :  { %2171 = vst [vmem:[%s4960_s6 + $0x8] sm:$0xff] %v2167_v35 }
 0x2ee   :  { %v2149_v49 = vpop.f32.mrf.mxu2 }
 0x2ef   :  { %v2150_v32 = vadd.f32 %v2149_v49, %v2136_v9  ;;  %v2163_v56 = vpop.f32.mrf.mxu3 }
 0x2f1   :  { %v2164_v33 = vadd.f32 %v2163_v56, %v2150_v32 }
 0x2f3   :  { %v2169_v46 = vpack.c.bf16 %v2164_v33, %v2108_v52 }
 0x2f5   :  { %2173 = vst [vmem:[%s4960_s6 + $0x18] sm:$0xff] %v2169_v46 }

</bundles_post_ra>
